<compile_context>
chip_gen: v6e
topology: v6e:2x2x1
jax: 0.10.0
libtpu: 0.0.40
codegen_flags: <defaults>
</compile_context>

<pallas_src>
import math
from functools import partial

import jax
import jax.numpy as jnp
from jax.experimental import pallas as pl
from jax.experimental.pallas import tpu as pltpu


def _seg_corr_kernel(q_ref, k_ref, v_ref, o_ref, *,
                     n_seg_q, n_seg_pre, seg_len, head_dim, heads,
                     scale, compute_dtype):
    """One (batch element, head-chunk) grid step.

    q_ref: (M,  L_s, hc*D)  query segments, natural (segment, in-segment row, head*dim) order
    k_ref: (Nf, L_s, hc*D)  key   segments; only segments [0, Nf-1) are used ("pre")
    v_ref: (Nf, L_s, hc*D)  value segments; only segments [1, Nf)   are used ("aft")
    o_ref: (M,  L_s, hc*D)  output, already rolled by one segment
    """
    M = n_seg_q
    NP = n_seg_pre          # = Nf - 1, number of "pre"/"aft" segments
    L_s = seg_len
    D = head_dim

    f32 = jnp.float32
    exact_f32 = jnp.dtype(compute_dtype) == jnp.dtype(jnp.float32)
    precision = jax.lax.Precision.HIGHEST if exact_f32 else None

    for h in range(heads):                      # static loop over heads in this chunk
        c0, c1 = h * D, (h + 1) * D

        # ---- correlation scores for this head: s[m, n] = sum_{l, d} q * k  (f32 acc) ----
        s = jnp.zeros((M, NP), f32)
        for l in range(L_s):                    # static loop over in-segment rows
            qh = q_ref[:, l, c0:c1].astype(compute_dtype)       # (M,  D)
            kh = k_ref[:NP, l, c0:c1].astype(compute_dtype)     # (NP, D)
            s = s + jax.lax.dot_general(
                qh, kh, (((1,), (1,)), ((), ())),
                preferred_element_type=f32, precision=precision)

        # ---- softmax over n; scale folded into the exp, exact normalizer ----
        if scale > 0:        # static Python branch (scale is a trace-time float)
            e = jnp.exp((s - jnp.max(s, axis=-1, keepdims=True)) * scale)
        else:
            ss = s * scale
            e = jnp.exp(ss - jnp.max(ss, axis=-1, keepdims=True))
        a = e / jnp.sum(e, axis=-1, keepdims=True)               # (M, NP), f32

        # ---- fold torch.roll(tmp_V, shifts=1, dims=segment) into the weights ----
        # rolled_out[m] = sum_n A[m-1, n] * V_aft[n]  ->  roll A's rows by +1 (with wrap).
        a = jnp.concatenate([a[-1:], a[:-1]], axis=0)            # (equivalently pltpu.roll)
        a = a.astype(compute_dtype)

        # ---- aggregate the "aft" value segments; store lane slices of the output block ----
        for l in range(L_s):
            vh = v_ref[1:, l, c0:c1].astype(compute_dtype)       # (NP, D) segments 1..Nf-1
            o = jnp.dot(a, vh, preferred_element_type=f32, precision=precision)   # (M, D)
            o_ref[:, l, c0:c1] = o.astype(o_ref.dtype)


def segment_correlation3(queries, keys, values, attn_mask=None, *,
                         factor=1, scale=None, mask_flag=True,
                         attention_dropout=0.1, output_attention=False,
                         head_flag=True, head_chunk=None,
                         compute_dtype=jnp.bfloat16):
    """Pallas implementation of SegmentCorrelation3.forward (eval mode).

    queries / keys / values: (B, L, H, D).  Returns (V, None) with V of shape (B, L_q, H, D).
    """
    del attn_mask, mask_flag, attention_dropout    # never used by the reference forward
    if output_attention:
        # TODO(synk): returning the attention map A is not implemented.
        raise NotImplementedError("output_attention=True not implemented")

    B, L_q, H, D = queries.shape
    _, L_k, _, D_k = keys.shape
    _, L_v, _, D_v = values.shape
    L_s = factor
    assert L_k == L_v
    assert D == D_k == D_v
    assert L_s <= L_q and L_s <= L_v
    scl = float(scale) if scale is not None else 1.0 / math.sqrt(L_s * D)

    add_q = L_q % L_s
    add_v = L_v % L_s
    if head_flag:
        q = queries[:, add_q:, ...]
        k = keys[:, add_v:, ...]
        v = values[:, add_v:, ...]
        addition_Q = q[:, :add_q, ...] if add_q != 0 else None
    else:
        q = queries[:, :L_q - add_q, ...] if add_q != 0 else queries
        k = keys[:, :L_k - add_v, ...] if add_v != 0 else keys
        v = values[:, :L_v - add_v, ...] if add_v != 0 else values
        addition_Q = q[:, q.shape[1] - add_q:, ...] if add_q != 0 else None

    M = q.shape[1] // L_s          # query segments
    Nf = k.shape[1] // L_s         # key/value segments
    NP = Nf - 1                    # "pre" / "aft" segments used in the correlation
    assert NP >= 1, "SegmentCorrelation3 needs at least 2 key/value segments"
    HD = H * D

    hc = H if head_chunk is None else int(head_chunk)
    assert H % hc == 0
    assert hc == H or (hc * D) % 128 == 0, "head_chunk * D must be lane-aligned (128)"
    n_hc = H // hc

    # Free, contiguous reshapes only -- no HBM transpose passes around the kernel.
    q4 = q.reshape(B, M, L_s, HD)
    k4 = k.reshape(B, Nf, L_s, HD)
    v4 = v.reshape(B, Nf, L_s, HD)

    kernel = partial(_seg_corr_kernel, n_seg_q=M, n_seg_pre=NP, seg_len=L_s,
                     head_dim=D, heads=hc, scale=scl, compute_dtype=compute_dtype)

    out4 = pl.pallas_call(
        kernel,
        out_shape=jax.ShapeDtypeStruct((B, M, L_s, HD), values.dtype),
        grid=(B, n_hc),
        in_specs=[
            pl.BlockSpec((None, M, L_s, hc * D), lambda b, hi: (b, 0, 0, hi)),   # Q
            pl.BlockSpec((None, Nf, L_s, hc * D), lambda b, hi: (b, 0, 0, hi)),  # K (pre used)
            pl.BlockSpec((None, Nf, L_s, hc * D), lambda b, hi: (b, 0, 0, hi)),  # V (aft used)
        ],
        out_specs=pl.BlockSpec((None, M, L_s, hc * D), lambda b, hi: (b, 0, 0, hi)),
        compiler_params=pltpu.CompilerParams(
            dimension_semantics=("parallel", "parallel")),
    )(q4, k4, v4)

    # Free reshape back to sequence layout; the segment roll already happened in-kernel.
    V = out4.reshape(B, M * L_s, H, D)

    if addition_Q is not None:
        V = (jnp.concatenate([addition_Q, V], axis=1) if head_flag
             else jnp.concatenate([V, addition_Q], axis=1))

    return V, None


def _reference(queries, keys, values, *, factor=1, scale=None, head_flag=True):
    """Plain-JAX mirror of the PyTorch forward (HIGHEST precision) for verification."""
    B, L_q, H, D_q = queries.shape
    _, L_k, _, D_k = keys.shape
    _, L_v, _, D_v = values.shape
    L_s = factor
    scl = scale if scale is not None else 1.0 / math.sqrt(L_s * D_q)
    add_q = L_q % L_s
    add_v = L_v % L_s
    if head_flag:
        q = queries[:, add_q:, ...]
        k = keys[:, add_v:, ...]
        v = values[:, add_v:, ...]
        addition_Q = q[:, :add_q, ...] if add_q != 0 else None
    else:
        q = queries[:, :L_q - add_q, ...] if add_q != 0 else queries
        k = keys[:, :L_k - add_v, ...] if add_v != 0 else keys
        v = values[:, :L_v - add_v, ...] if add_v != 0 else values
        addition_Q = q[:, q.shape[1] - add_q:, ...] if add_q != 0 else None
    seg_q = q.reshape(B, -1, L_s, H, D_q)
    seg_k = k.reshape(B, -1, L_s, H, D_k)[:, :-1]
    seg_v = v.reshape(B, -1, L_s, H, D_v)[:, 1:]
    hi = jax.lax.Precision.HIGHEST
    scores = jnp.einsum('bmlhd,bnlhd->bhmn', seg_q, seg_k, precision=hi)
    A = jax.nn.softmax(scl * scores, axis=-1)
    tmp_V = jnp.einsum('bhmn,bnlhd->bmlhd', A, seg_v, precision=hi)
    V = jnp.roll(tmp_V, shift=1, axis=1).reshape(B, -1, H, D_v)
    if head_flag:
        if addition_Q is not None:
            V = jnp.concatenate([addition_Q, V], axis=1)
    else:
        if addition_Q is not None:
            V = jnp.concatenate([V, addition_Q], axis=1)
    return V


if __name__ == "__main__":
    # B=2, seq=18 (18 % 4 = 2 -> remainder path exercised), H=4 heads, D=32 channels,
    # factor=4 -> 4 query segments, 3 "pre"/"aft" segments, H*D = 128 (lane-dense blocks).
    B, L, H, D = 2, 18, 4, 32
    factor = 4

    key = jax.random.PRNGKey(0)
    kq, kk, kv = jax.random.split(key, 3)
    queries = jax.random.normal(kq, (B, L, H, D), dtype=jnp.float32)
    keys_ = jax.random.normal(kk, (B, L, H, D), dtype=jnp.float32)
    values = jax.random.normal(kv, (B, L, H, D), dtype=jnp.float32)

    for head_flag in (True, False):
        fn = jax.jit(partial(segment_correlation3, factor=factor, head_flag=head_flag))
        V, attn = fn(queries, keys_, values)
        V = jax.block_until_ready(V)
        V_ref = _reference(queries, keys_, values, factor=factor, head_flag=head_flag)
        assert V.shape == (B, L, H, D), V.shape
        assert attn is None
        # Kernel matmuls use bf16 operands (f32 accumulation) on the MXU, while the reference
        # uses HIGHEST-precision f32 einsums, so allow bf16-grade rounding noise.  A genuine
        # layout / roll / segment-slicing bug would produce O(1) errors and still fail here.
        err = jnp.max(jnp.abs(V - V_ref))
        assert jnp.allclose(V, V_ref, atol=5e-2, rtol=5e-2), (
            f"mismatch vs reference (head_flag={head_flag}), max abs err={err}")

    print("KERNEL_OK")
</pallas_src>

<mosaic_0001>
module attributes {stable_mosaic.version = 11 : i64} {
  func.func @_seg_corr_kernel(%arg0: i32, %arg1: i32, %arg2: memref<1x4x4x128xf32, #tpu.memory_space<vmem>>, %arg3: memref<1x4x4x128xf32, #tpu.memory_space<vmem>>, %arg4: memref<1x4x4x128xf32, #tpu.memory_space<vmem>>, %arg5: memref<1x4x4x128xf32, #tpu.memory_space<vmem>>) attributes {dimension_semantics = [#tpu.dimension_semantics<parallel>, #tpu.dimension_semantics<parallel>], iteration_bounds = array<i64: 2, 1>, scalar_prefetch = 0 : i64, scratch_operands = 0 : i64, tpu.core_type = #tpu.core_type<tc>, window_params = [{transform_indices = @transform_0, window_bounds = array<i64: 1, 4, 4, 128>}, {transform_indices = @transform_1, window_bounds = array<i64: 1, 4, 4, 128>}, {transform_indices = @transform_2, window_bounds = array<i64: 1, 4, 4, 128>}, {transform_indices = @transform_3, window_bounds = array<i64: 1, 4, 4, 128>}]} {
    %cst = arith.constant 0.000000e+00 : f32
    %0 = vector.broadcast %cst : f32 to vector<4x3xf32>
    %c0 = arith.constant 0 : index
    %c0_0 = arith.constant 0 : index
    %c0_1 = arith.constant 0 : index
    %c0_2 = arith.constant 0 : index
    %1 = vector.load %arg2[%c0, %c0_0, %c0_1, %c0_2] : memref<1x4x4x128xf32, #tpu.memory_space<vmem>>, vector<1x4x1x32xf32>
    %2 = vector.shape_cast %1 : vector<1x4x1x32xf32> to vector<4x32xf32>
    %3 = arith.truncf %2 : vector<4x32xf32> to vector<4x32xbf16>
    %c0_3 = arith.constant 0 : index
    %c0_4 = arith.constant 0 : index
    %c0_5 = arith.constant 0 : index
    %c0_6 = arith.constant 0 : index
    %4 = vector.load %arg3[%c0_3, %c0_4, %c0_5, %c0_6] : memref<1x4x4x128xf32, #tpu.memory_space<vmem>>, vector<1x3x1x32xf32>
    %5 = vector.shape_cast %4 : vector<1x3x1x32xf32> to vector<3x32xf32>
    %6 = arith.truncf %5 : vector<3x32xf32> to vector<3x32xbf16>
    %cst_7 = arith.constant dense<0.000000e+00> : vector<4x3xf32>
    %7 = tpu.matmul %3, %6, %cst_7 {dimension_numbers = #tpu.dot_dimension_numbers<[1], [1], [0], [0], [0, 0, 1, 0], [], []>} : vector<4x32xbf16>, vector<3x32xbf16>, vector<4x3xf32> -> vector<4x3xf32>
    %8 = arith.addf %0, %7 : vector<4x3xf32>
    %c0_8 = arith.constant 0 : index
    %c0_9 = arith.constant 0 : index
    %c1 = arith.constant 1 : index
    %c0_10 = arith.constant 0 : index
    %9 = vector.load %arg2[%c0_8, %c0_9, %c1, %c0_10] : memref<1x4x4x128xf32, #tpu.memory_space<vmem>>, vector<1x4x1x32xf32>
    %10 = vector.shape_cast %9 : vector<1x4x1x32xf32> to vector<4x32xf32>
    %11 = arith.truncf %10 : vector<4x32xf32> to vector<4x32xbf16>
    %c0_11 = arith.constant 0 : index
    %c0_12 = arith.constant 0 : index
    %c1_13 = arith.constant 1 : index
    %c0_14 = arith.constant 0 : index
    %12 = vector.load %arg3[%c0_11, %c0_12, %c1_13, %c0_14] : memref<1x4x4x128xf32, #tpu.memory_space<vmem>>, vector<1x3x1x32xf32>
    %13 = vector.shape_cast %12 : vector<1x3x1x32xf32> to vector<3x32xf32>
    %14 = arith.truncf %13 : vector<3x32xf32> to vector<3x32xbf16>
    %cst_15 = arith.constant dense<0.000000e+00> : vector<4x3xf32>
    %15 = tpu.matmul %11, %14, %cst_15 {dimension_numbers = #tpu.dot_dimension_numbers<[1], [1], [0], [0], [0, 0, 1, 0], [], []>} : vector<4x32xbf16>, vector<3x32xbf16>, vector<4x3xf32> -> vector<4x3xf32>
    %16 = arith.addf %8, %15 : vector<4x3xf32>
    %c0_16 = arith.constant 0 : index
    %c0_17 = arith.constant 0 : index
    %c2 = arith.constant 2 : index
    %c0_18 = arith.constant 0 : index
    %17 = vector.load %arg2[%c0_16, %c0_17, %c2, %c0_18] : memref<1x4x4x128xf32, #tpu.memory_space<vmem>>, vector<1x4x1x32xf32>
    %18 = vector.shape_cast %17 : vector<1x4x1x32xf32> to vector<4x32xf32>
    %19 = arith.truncf %18 : vector<4x32xf32> to vector<4x32xbf16>
    %c0_19 = arith.constant 0 : index
    %c0_20 = arith.constant 0 : index
    %c2_21 = arith.constant 2 : index
    %c0_22 = arith.constant 0 : index
    %20 = vector.load %arg3[%c0_19, %c0_20, %c2_21, %c0_22] : memref<1x4x4x128xf32, #tpu.memory_space<vmem>>, vector<1x3x1x32xf32>
    %21 = vector.shape_cast %20 : vector<1x3x1x32xf32> to vector<3x32xf32>
    %22 = arith.truncf %21 : vector<3x32xf32> to vector<3x32xbf16>
    %cst_23 = arith.constant dense<0.000000e+00> : vector<4x3xf32>
    %23 = tpu.matmul %19, %22, %cst_23 {dimension_numbers = #tpu.dot_dimension_numbers<[1], [1], [0], [0], [0, 0, 1, 0], [], []>} : vector<4x32xbf16>, vector<3x32xbf16>, vector<4x3xf32> -> vector<4x3xf32>
    %24 = arith.addf %16, %23 : vector<4x3xf32>
    %c0_24 = arith.constant 0 : index
    %c0_25 = arith.constant 0 : index
    %c3 = arith.constant 3 : index
    %c0_26 = arith.constant 0 : index
    %25 = vector.load %arg2[%c0_24, %c0_25, %c3, %c0_26] : memref<1x4x4x128xf32, #tpu.memory_space<vmem>>, vector<1x4x1x32xf32>
    %26 = vector.shape_cast %25 : vector<1x4x1x32xf32> to vector<4x32xf32>
    %27 = arith.truncf %26 : vector<4x32xf32> to vector<4x32xbf16>
    %c0_27 = arith.constant 0 : index
    %c0_28 = arith.constant 0 : index
    %c3_29 = arith.constant 3 : index
    %c0_30 = arith.constant 0 : index
    %28 = vector.load %arg3[%c0_27, %c0_28, %c3_29, %c0_30] : memref<1x4x4x128xf32, #tpu.memory_space<vmem>>, vector<1x3x1x32xf32>
    %29 = vector.shape_cast %28 : vector<1x3x1x32xf32> to vector<3x32xf32>
    %30 = arith.truncf %29 : vector<3x32xf32> to vector<3x32xbf16>
    %cst_31 = arith.constant dense<0.000000e+00> : vector<4x3xf32>
    %31 = tpu.matmul %27, %30, %cst_31 {dimension_numbers = #tpu.dot_dimension_numbers<[1], [1], [0], [0], [0, 0, 1, 0], [], []>} : vector<4x32xbf16>, vector<3x32xbf16>, vector<4x3xf32> -> vector<4x3xf32>
    %32 = arith.addf %24, %31 : vector<4x3xf32>
    %cst_32 = arith.constant dense<0xFF800000> : vector<4xf32>
    %33 = vector.multi_reduction <maximumf>, %32, %cst_32 [1] : vector<4x3xf32> to vector<4xf32>
    %34 = vector.shape_cast %33 : vector<4xf32> to vector<4x1xf32>
    %35 = vector.broadcast %34 : vector<4x1xf32> to vector<4x3xf32>
    %36 = arith.subf %32, %35 : vector<4x3xf32>
    %cst_33 = arith.constant 0.0883883461 : f32
    %37 = vector.broadcast %cst_33 : f32 to vector<4x3xf32>
    %38 = arith.mulf %36, %37 : vector<4x3xf32>
    %39 = math.exp %38 : vector<4x3xf32>
    %cst_34 = arith.constant dense<0.000000e+00> : vector<4xf32>
    %40 = vector.multi_reduction <add>, %39, %cst_34 [1] : vector<4x3xf32> to vector<4xf32>
    %41 = vector.shape_cast %40 : vector<4xf32> to vector<4x1xf32>
    %42 = vector.broadcast %41 : vector<4x1xf32> to vector<4x3xf32>
    %43 = arith.divf %39, %42 : vector<4x3xf32>
    %44 = vector.extract_strided_slice %43 {offsets = [3, 0], sizes = [1, 3], strides = [1, 1]} : vector<4x3xf32> to vector<1x3xf32>
    %45 = vector.extract_strided_slice %43 {offsets = [0, 0], sizes = [3, 3], strides = [1, 1]} : vector<4x3xf32> to vector<3x3xf32>
    %46 = tpu.concatenate %44, %45 in 0 : vector<1x3xf32>, vector<3x3xf32> -> vector<4x3xf32>
    %47 = arith.truncf %46 : vector<4x3xf32> to vector<4x3xbf16>
    %c0_35 = arith.constant 0 : index
    %c1_36 = arith.constant 1 : index
    %c0_37 = arith.constant 0 : index
    %c0_38 = arith.constant 0 : index
    %48 = vector.load %arg4[%c0_35, %c1_36, %c0_37, %c0_38] : memref<1x4x4x128xf32, #tpu.memory_space<vmem>>, vector<1x3x1x32xf32>
    %49 = vector.shape_cast %48 : vector<1x3x1x32xf32> to vector<3x32xf32>
    %50 = arith.truncf %49 : vector<3x32xf32> to vector<3x32xbf16>
    %cst_39 = arith.constant dense<0.000000e+00> : vector<4x32xf32>
    %51 = tpu.matmul %47, %50, %cst_39 {dimension_numbers = #tpu.dot_dimension_numbers<[1], [0], [0], [1], [0, 0, 1, 1], [], []>} : vector<4x3xbf16>, vector<3x32xbf16>, vector<4x32xf32> -> vector<4x32xf32>
    %c0_40 = arith.constant 0 : index
    %c0_41 = arith.constant 0 : index
    %c0_42 = arith.constant 0 : index
    %c0_43 = arith.constant 0 : index
    %52 = vector.load %arg5[%c0_40, %c0_41, %c0_42, %c0_43] : memref<1x4x4x128xf32, #tpu.memory_space<vmem>>, vector<1x4x1x32xf32>
    %53 = vector.shape_cast %52 : vector<1x4x1x32xf32> to vector<4x32xf32>
    %54 = vector.shape_cast %51 : vector<4x32xf32> to vector<1x4x1x32xf32>
    tpu.vector_store %arg5[%c0_40, %c0_41, %c0_42, %c0_43], %54 {strides = array<i32>} : memref<1x4x4x128xf32, #tpu.memory_space<vmem>>, vector<1x4x1x32xf32>,
    %c0_44 = arith.constant 0 : index
    %c1_45 = arith.constant 1 : index
    %c1_46 = arith.constant 1 : index
    %c0_47 = arith.constant 0 : index
    %55 = vector.load %arg4[%c0_44, %c1_45, %c1_46, %c0_47] : memref<1x4x4x128xf32, #tpu.memory_space<vmem>>, vector<1x3x1x32xf32>
    %56 = vector.shape_cast %55 : vector<1x3x1x32xf32> to vector<3x32xf32>
    %57 = arith.truncf %56 : vector<3x32xf32> to vector<3x32xbf16>
    %cst_48 = arith.constant dense<0.000000e+00> : vector<4x32xf32>
    %58 = tpu.matmul %47, %57, %cst_48 {dimension_numbers = #tpu.dot_dimension_numbers<[1], [0], [0], [1], [0, 0, 1, 1], [], []>} : vector<4x3xbf16>, vector<3x32xbf16>, vector<4x32xf32> -> vector<4x32xf32>
    %c0_49 = arith.constant 0 : index
    %c0_50 = arith.constant 0 : index
    %c1_51 = arith.constant 1 : index
    %c0_52 = arith.constant 0 : index
    %59 = vector.load %arg5[%c0_49, %c0_50, %c1_51, %c0_52] : memref<1x4x4x128xf32, #tpu.memory_space<vmem>>, vector<1x4x1x32xf32>
    %60 = vector.shape_cast %59 : vector<1x4x1x32xf32> to vector<4x32xf32>
    %61 = vector.shape_cast %58 : vector<4x32xf32> to vector<1x4x1x32xf32>
    tpu.vector_store %arg5[%c0_49, %c0_50, %c1_51, %c0_52], %61 {strides = array<i32>} : memref<1x4x4x128xf32, #tpu.memory_space<vmem>>, vector<1x4x1x32xf32>,
    %c0_53 = arith.constant 0 : index
    %c1_54 = arith.constant 1 : index
    %c2_55 = arith.constant 2 : index
    %c0_56 = arith.constant 0 : index
    %62 = vector.load %arg4[%c0_53, %c1_54, %c2_55, %c0_56] : memref<1x4x4x128xf32, #tpu.memory_space<vmem>>, vector<1x3x1x32xf32>
    %63 = vector.shape_cast %62 : vector<1x3x1x32xf32> to vector<3x32xf32>
    %64 = arith.truncf %63 : vector<3x32xf32> to vector<3x32xbf16>
    %cst_57 = arith.constant dense<0.000000e+00> : vector<4x32xf32>
    %65 = tpu.matmul %47, %64, %cst_57 {dimension_numbers = #tpu.dot_dimension_numbers<[1], [0], [0], [1], [0, 0, 1, 1], [], []>} : vector<4x3xbf16>, vector<3x32xbf16>, vector<4x32xf32> -> vector<4x32xf32>
    %c0_58 = arith.constant 0 : index
    %c0_59 = arith.constant 0 : index
    %c2_60 = arith.constant 2 : index
    %c0_61 = arith.constant 0 : index
    %66 = vector.load %arg5[%c0_58, %c0_59, %c2_60, %c0_61] : memref<1x4x4x128xf32, #tpu.memory_space<vmem>>, vector<1x4x1x32xf32>
    %67 = vector.shape_cast %66 : vector<1x4x1x32xf32> to vector<4x32xf32>
    %68 = vector.shape_cast %65 : vector<4x32xf32> to vector<1x4x1x32xf32>
    tpu.vector_store %arg5[%c0_58, %c0_59, %c2_60, %c0_61], %68 {strides = array<i32>} : memref<1x4x4x128xf32, #tpu.memory_space<vmem>>, vector<1x4x1x32xf32>,
    %c0_62 = arith.constant 0 : index
    %c1_63 = arith.constant 1 : index
    %c3_64 = arith.constant 3 : index
    %c0_65 = arith.constant 0 : index
    %69 = vector.load %arg4[%c0_62, %c1_63, %c3_64, %c0_65] : memref<1x4x4x128xf32, #tpu.memory_space<vmem>>, vector<1x3x1x32xf32>
    %70 = vector.shape_cast %69 : vector<1x3x1x32xf32> to vector<3x32xf32>
    %71 = arith.truncf %70 : vector<3x32xf32> to vector<3x32xbf16>
    %cst_66 = arith.constant dense<0.000000e+00> : vector<4x32xf32>
    %72 = tpu.matmul %47, %71, %cst_66 {dimension_numbers = #tpu.dot_dimension_numbers<[1], [0], [0], [1], [0, 0, 1, 1], [], []>} : vector<4x3xbf16>, vector<3x32xbf16>, vector<4x32xf32> -> vector<4x32xf32>
    %c0_67 = arith.constant 0 : index
    %c0_68 = arith.constant 0 : index
    %c3_69 = arith.constant 3 : index
    %c0_70 = arith.constant 0 : index
    %73 = vector.load %arg5[%c0_67, %c0_68, %c3_69, %c0_70] : memref<1x4x4x128xf32, #tpu.memory_space<vmem>>, vector<1x4x1x32xf32>
    %74 = vector.shape_cast %73 : vector<1x4x1x32xf32> to vector<4x32xf32>
    %75 = vector.shape_cast %72 : vector<4x32xf32> to vector<1x4x1x32xf32>
    tpu.vector_store %arg5[%c0_67, %c0_68, %c3_69, %c0_70], %75 {strides = array<i32>} : memref<1x4x4x128xf32, #tpu.memory_space<vmem>>, vector<1x4x1x32xf32>,
    %cst_71 = arith.constant 0.000000e+00 : f32
    %76 = vector.broadcast %cst_71 : f32 to vector<4x3xf32>
    %c0_72 = arith.constant 0 : index
    %c0_73 = arith.constant 0 : index
    %c0_74 = arith.constant 0 : index
    %c32 = arith.constant 32 : index
    %77 = vector.load %arg2[%c0_72, %c0_73, %c0_74, %c32] : memref<1x4x4x128xf32, #tpu.memory_space<vmem>>, vector<1x4x1x32xf32>
    %78 = vector.shape_cast %77 : vector<1x4x1x32xf32> to vector<4x32xf32>
    %79 = arith.truncf %78 : vector<4x32xf32> to vector<4x32xbf16>
    %c0_75 = arith.constant 0 : index
    %c0_76 = arith.constant 0 : index
    %c0_77 = arith.constant 0 : index
    %c32_78 = arith.constant 32 : index
    %80 = vector.load %arg3[%c0_75, %c0_76, %c0_77, %c32_78] : memref<1x4x4x128xf32, #tpu.memory_space<vmem>>, vector<1x3x1x32xf32>
    %81 = vector.shape_cast %80 : vector<1x3x1x32xf32> to vector<3x32xf32>
    %82 = arith.truncf %81 : vector<3x32xf32> to vector<3x32xbf16>
    %cst_79 = arith.constant dense<0.000000e+00> : vector<4x3xf32>
    %83 = tpu.matmul %79, %82, %cst_79 {dimension_numbers = #tpu.dot_dimension_numbers<[1], [1], [0], [0], [0, 0, 1, 0], [], []>} : vector<4x32xbf16>, vector<3x32xbf16>, vector<4x3xf32> -> vector<4x3xf32>
    %84 = arith.addf %76, %83 : vector<4x3xf32>
    %c0_80 = arith.constant 0 : index
    %c0_81 = arith.constant 0 : index
    %c1_82 = arith.constant 1 : index
    %c32_83 = arith.constant 32 : index
    %85 = vector.load %arg2[%c0_80, %c0_81, %c1_82, %c32_83] : memref<1x4x4x128xf32, #tpu.memory_space<vmem>>, vector<1x4x1x32xf32>
    %86 = vector.shape_cast %85 : vector<1x4x1x32xf32> to vector<4x32xf32>
    %87 = arith.truncf %86 : vector<4x32xf32> to vector<4x32xbf16>
    %c0_84 = arith.constant 0 : index
    %c0_85 = arith.constant 0 : index
    %c1_86 = arith.constant 1 : index
    %c32_87 = arith.constant 32 : index
    %88 = vector.load %arg3[%c0_84, %c0_85, %c1_86, %c32_87] : memref<1x4x4x128xf32, #tpu.memory_space<vmem>>, vector<1x3x1x32xf32>
    %89 = vector.shape_cast %88 : vector<1x3x1x32xf32> to vector<3x32xf32>
    %90 = arith.truncf %89 : vector<3x32xf32> to vector<3x32xbf16>
    %cst_88 = arith.constant dense<0.000000e+00> : vector<4x3xf32>
    %91 = tpu.matmul %87, %90, %cst_88 {dimension_numbers = #tpu.dot_dimension_numbers<[1], [1], [0], [0], [0, 0, 1, 0], [], []>} : vector<4x32xbf16>, vector<3x32xbf16>, vector<4x3xf32> -> vector<4x3xf32>
    %92 = arith.addf %84, %91 : vector<4x3xf32>
    %c0_89 = arith.constant 0 : index
    %c0_90 = arith.constant 0 : index
    %c2_91 = arith.constant 2 : index
    %c32_92 = arith.constant 32 : index
    %93 = vector.load %arg2[%c0_89, %c0_90, %c2_91, %c32_92] : memref<1x4x4x128xf32, #tpu.memory_space<vmem>>, vector<1x4x1x32xf32>
    %94 = vector.shape_cast %93 : vector<1x4x1x32xf32> to vector<4x32xf32>
    %95 = arith.truncf %94 : vector<4x32xf32> to vector<4x32xbf16>
    %c0_93 = arith.constant 0 : index
    %c0_94 = arith.constant 0 : index
    %c2_95 = arith.constant 2 : index
    %c32_96 = arith.constant 32 : index
    %96 = vector.load %arg3[%c0_93, %c0_94, %c2_95, %c32_96] : memref<1x4x4x128xf32, #tpu.memory_space<vmem>>, vector<1x3x1x32xf32>
    %97 = vector.shape_cast %96 : vector<1x3x1x32xf32> to vector<3x32xf32>
    %98 = arith.truncf %97 : vector<3x32xf32> to vector<3x32xbf16>
    %cst_97 = arith.constant dense<0.000000e+00> : vector<4x3xf32>
    %99 = tpu.matmul %95, %98, %cst_97 {dimension_numbers = #tpu.dot_dimension_numbers<[1], [1], [0], [0], [0, 0, 1, 0], [], []>} : vector<4x32xbf16>, vector<3x32xbf16>, vector<4x3xf32> -> vector<4x3xf32>
    %100 = arith.addf %92, %99 : vector<4x3xf32>
    %c0_98 = arith.constant 0 : index
    %c0_99 = arith.constant 0 : index
    %c3_100 = arith.constant 3 : index
    %c32_101 = arith.constant 32 : index
    %101 = vector.load %arg2[%c0_98, %c0_99, %c3_100, %c32_101] : memref<1x4x4x128xf32, #tpu.memory_space<vmem>>, vector<1x4x1x32xf32>
    %102 = vector.shape_cast %101 : vector<1x4x1x32xf32> to vector<4x32xf32>
    %103 = arith.truncf %102 : vector<4x32xf32> to vector<4x32xbf16>
    %c0_102 = arith.constant 0 : index
    %c0_103 = arith.constant 0 : index
    %c3_104 = arith.constant 3 : index
    %c32_105 = arith.constant 32 : index
    %104 = vector.load %arg3[%c0_102, %c0_103, %c3_104, %c32_105] : memref<1x4x4x128xf32, #tpu.memory_space<vmem>>, vector<1x3x1x32xf32>
    %105 = vector.shape_cast %104 : vector<1x3x1x32xf32> to vector<3x32xf32>
    %106 = arith.truncf %105 : vector<3x32xf32> to vector<3x32xbf16>
    %cst_106 = arith.constant dense<0.000000e+00> : vector<4x3xf32>
    %107 = tpu.matmul %103, %106, %cst_106 {dimension_numbers = #tpu.dot_dimension_numbers<[1], [1], [0], [0], [0, 0, 1, 0], [], []>} : vector<4x32xbf16>, vector<3x32xbf16>, vector<4x3xf32> -> vector<4x3xf32>
    %108 = arith.addf %100, %107 : vector<4x3xf32>
    %cst_107 = arith.constant dense<0xFF800000> : vector<4xf32>
    %109 = vector.multi_reduction <maximumf>, %108, %cst_107 [1] : vector<4x3xf32> to vector<4xf32>
    %110 = vector.shape_cast %109 : vector<4xf32> to vector<4x1xf32>
    %111 = vector.broadcast %110 : vector<4x1xf32> to vector<4x3xf32>
    %112 = arith.subf %108, %111 : vector<4x3xf32>
    %cst_108 = arith.constant 0.0883883461 : f32
    %113 = vector.broadcast %cst_108 : f32 to vector<4x3xf32>
    %114 = arith.mulf %112, %113 : vector<4x3xf32>
    %115 = math.exp %114 : vector<4x3xf32>
    %cst_109 = arith.constant dense<0.000000e+00> : vector<4xf32>
    %116 = vector.multi_reduction <add>, %115, %cst_109 [1] : vector<4x3xf32> to vector<4xf32>
    %117 = vector.shape_cast %116 : vector<4xf32> to vector<4x1xf32>
    %118 = vector.broadcast %117 : vector<4x1xf32> to vector<4x3xf32>
    %119 = arith.divf %115, %118 : vector<4x3xf32>
    %120 = vector.extract_strided_slice %119 {offsets = [3, 0], sizes = [1, 3], strides = [1, 1]} : vector<4x3xf32> to vector<1x3xf32>
    %121 = vector.extract_strided_slice %119 {offsets = [0, 0], sizes = [3, 3], strides = [1, 1]} : vector<4x3xf32> to vector<3x3xf32>
    %122 = tpu.concatenate %120, %121 in 0 : vector<1x3xf32>, vector<3x3xf32> -> vector<4x3xf32>
    %123 = arith.truncf %122 : vector<4x3xf32> to vector<4x3xbf16>
    %c0_110 = arith.constant 0 : index
    %c1_111 = arith.constant 1 : index
    %c0_112 = arith.constant 0 : index
    %c32_113 = arith.constant 32 : index
    %124 = vector.load %arg4[%c0_110, %c1_111, %c0_112, %c32_113] : memref<1x4x4x128xf32, #tpu.memory_space<vmem>>, vector<1x3x1x32xf32>
    %125 = vector.shape_cast %124 : vector<1x3x1x32xf32> to vector<3x32xf32>
    %126 = arith.truncf %125 : vector<3x32xf32> to vector<3x32xbf16>
    %cst_114 = arith.constant dense<0.000000e+00> : vector<4x32xf32>
    %127 = tpu.matmul %123, %126, %cst_114 {dimension_numbers = #tpu.dot_dimension_numbers<[1], [0], [0], [1], [0, 0, 1, 1], [], []>} : vector<4x3xbf16>, vector<3x32xbf16>, vector<4x32xf32> -> vector<4x32xf32>
    %c0_115 = arith.constant 0 : index
    %c0_116 = arith.constant 0 : index
    %c0_117 = arith.constant 0 : index
    %c32_118 = arith.constant 32 : index
    %128 = vector.load %arg5[%c0_115, %c0_116, %c0_117, %c32_118] : memref<1x4x4x128xf32, #tpu.memory_space<vmem>>, vector<1x4x1x32xf32>
    %129 = vector.shape_cast %128 : vector<1x4x1x32xf32> to vector<4x32xf32>
    %130 = vector.shape_cast %127 : vector<4x32xf32> to vector<1x4x1x32xf32>
    tpu.vector_store %arg5[%c0_115, %c0_116, %c0_117, %c32_118], %130 {strides = array<i32>} : memref<1x4x4x128xf32, #tpu.memory_space<vmem>>, vector<1x4x1x32xf32>,
    %c0_119 = arith.constant 0 : index
    %c1_120 = arith.constant 1 : index
    %c1_121 = arith.constant 1 : index
    %c32_122 = arith.constant 32 : index
    %131 = vector.load %arg4[%c0_119, %c1_120, %c1_121, %c32_122] : memref<1x4x4x128xf32, #tpu.memory_space<vmem>>, vector<1x3x1x32xf32>
    %132 = vector.shape_cast %131 : vector<1x3x1x32xf32> to vector<3x32xf32>
    %133 = arith.truncf %132 : vector<3x32xf32> to vector<3x32xbf16>
    %cst_123 = arith.constant dense<0.000000e+00> : vector<4x32xf32>
    %134 = tpu.matmul %123, %133, %cst_123 {dimension_numbers = #tpu.dot_dimension_numbers<[1], [0], [0], [1], [0, 0, 1, 1], [], []>} : vector<4x3xbf16>, vector<3x32xbf16>, vector<4x32xf32> -> vector<4x32xf32>
    %c0_124 = arith.constant 0 : index
    %c0_125 = arith.constant 0 : index
    %c1_126 = arith.constant 1 : index
    %c32_127 = arith.constant 32 : index
    %135 = vector.load %arg5[%c0_124, %c0_125, %c1_126, %c32_127] : memref<1x4x4x128xf32, #tpu.memory_space<vmem>>, vector<1x4x1x32xf32>
    %136 = vector.shape_cast %135 : vector<1x4x1x32xf32> to vector<4x32xf32>
    %137 = vector.shape_cast %134 : vector<4x32xf32> to vector<1x4x1x32xf32>
    tpu.vector_store %arg5[%c0_124, %c0_125, %c1_126, %c32_127], %137 {strides = array<i32>} : memref<1x4x4x128xf32, #tpu.memory_space<vmem>>, vector<1x4x1x32xf32>,
    %c0_128 = arith.constant 0 : index
    %c1_129 = arith.constant 1 : index
    %c2_130 = arith.constant 2 : index
    %c32_131 = arith.constant 32 : index
    %138 = vector.load %arg4[%c0_128, %c1_129, %c2_130, %c32_131] : memref<1x4x4x128xf32, #tpu.memory_space<vmem>>, vector<1x3x1x32xf32>
    %139 = vector.shape_cast %138 : vector<1x3x1x32xf32> to vector<3x32xf32>
    %140 = arith.truncf %139 : vector<3x32xf32> to vector<3x32xbf16>
    %cst_132 = arith.constant dense<0.000000e+00> : vector<4x32xf32>
    %141 = tpu.matmul %123, %140, %cst_132 {dimension_numbers = #tpu.dot_dimension_numbers<[1], [0], [0], [1], [0, 0, 1, 1], [], []>} : vector<4x3xbf16>, vector<3x32xbf16>, vector<4x32xf32> -> vector<4x32xf32>
    %c0_133 = arith.constant 0 : index
    %c0_134 = arith.constant 0 : index
    %c2_135 = arith.constant 2 : index
    %c32_136 = arith.constant 32 : index
    %142 = vector.load %arg5[%c0_133, %c0_134, %c2_135, %c32_136] : memref<1x4x4x128xf32, #tpu.memory_space<vmem>>, vector<1x4x1x32xf32>
    %143 = vector.shape_cast %142 : vector<1x4x1x32xf32> to vector<4x32xf32>
    %144 = vector.shape_cast %141 : vector<4x32xf32> to vector<1x4x1x32xf32>
    tpu.vector_store %arg5[%c0_133, %c0_134, %c2_135, %c32_136], %144 {strides = array<i32>} : memref<1x4x4x128xf32, #tpu.memory_space<vmem>>, vector<1x4x1x32xf32>,
    %c0_137 = arith.constant 0 : index
    %c1_138 = arith.constant 1 : index
    %c3_139 = arith.constant 3 : index
    %c32_140 = arith.constant 32 : index
    %145 = vector.load %arg4[%c0_137, %c1_138, %c3_139, %c32_140] : memref<1x4x4x128xf32, #tpu.memory_space<vmem>>, vector<1x3x1x32xf32>
    %146 = vector.shape_cast %145 : vector<1x3x1x32xf32> to vector<3x32xf32>
    %147 = arith.truncf %146 : vector<3x32xf32> to vector<3x32xbf16>
    %cst_141 = arith.constant dense<0.000000e+00> : vector<4x32xf32>
    %148 = tpu.matmul %123, %147, %cst_141 {dimension_numbers = #tpu.dot_dimension_numbers<[1], [0], [0], [1], [0, 0, 1, 1], [], []>} : vector<4x3xbf16>, vector<3x32xbf16>, vector<4x32xf32> -> vector<4x32xf32>
    %c0_142 = arith.constant 0 : index
    %c0_143 = arith.constant 0 : index
    %c3_144 = arith.constant 3 : index
    %c32_145 = arith.constant 32 : index
    %149 = vector.load %arg5[%c0_142, %c0_143, %c3_144, %c32_145] : memref<1x4x4x128xf32, #tpu.memory_space<vmem>>, vector<1x4x1x32xf32>
    %150 = vector.shape_cast %149 : vector<1x4x1x32xf32> to vector<4x32xf32>
    %151 = vector.shape_cast %148 : vector<4x32xf32> to vector<1x4x1x32xf32>
    tpu.vector_store %arg5[%c0_142, %c0_143, %c3_144, %c32_145], %151 {strides = array<i32>} : memref<1x4x4x128xf32, #tpu.memory_space<vmem>>, vector<1x4x1x32xf32>,
    %cst_146 = arith.constant 0.000000e+00 : f32
    %152 = vector.broadcast %cst_146 : f32 to vector<4x3xf32>
    %c0_147 = arith.constant 0 : index
    %c0_148 = arith.constant 0 : index
    %c0_149 = arith.constant 0 : index
    %c64 = arith.constant 64 : index
    %153 = vector.load %arg2[%c0_147, %c0_148, %c0_149, %c64] : memref<1x4x4x128xf32, #tpu.memory_space<vmem>>, vector<1x4x1x32xf32>
    %154 = vector.shape_cast %153 : vector<1x4x1x32xf32> to vector<4x32xf32>
    %155 = arith.truncf %154 : vector<4x32xf32> to vector<4x32xbf16>
    %c0_150 = arith.constant 0 : index
    %c0_151 = arith.constant 0 : index
    %c0_152 = arith.constant 0 : index
    %c64_153 = arith.constant 64 : index
    %156 = vector.load %arg3[%c0_150, %c0_151, %c0_152, %c64_153] : memref<1x4x4x128xf32, #tpu.memory_space<vmem>>, vector<1x3x1x32xf32>
    %157 = vector.shape_cast %156 : vector<1x3x1x32xf32> to vector<3x32xf32>
    %158 = arith.truncf %157 : vector<3x32xf32> to vector<3x32xbf16>
    %cst_154 = arith.constant dense<0.000000e+00> : vector<4x3xf32>
    %159 = tpu.matmul %155, %158, %cst_154 {dimension_numbers = #tpu.dot_dimension_numbers<[1], [1], [0], [0], [0, 0, 1, 0], [], []>} : vector<4x32xbf16>, vector<3x32xbf16>, vector<4x3xf32> -> vector<4x3xf32>
    %160 = arith.addf %152, %159 : vector<4x3xf32>
    %c0_155 = arith.constant 0 : index
    %c0_156 = arith.constant 0 : index
    %c1_157 = arith.constant 1 : index
    %c64_158 = arith.constant 64 : index
    %161 = vector.load %arg2[%c0_155, %c0_156, %c1_157, %c64_158] : memref<1x4x4x128xf32, #tpu.memory_space<vmem>>, vector<1x4x1x32xf32>
    %162 = vector.shape_cast %161 : vector<1x4x1x32xf32> to vector<4x32xf32>
    %163 = arith.truncf %162 : vector<4x32xf32> to vector<4x32xbf16>
    %c0_159 = arith.constant 0 : index
    %c0_160 = arith.constant 0 : index
    %c1_161 = arith.constant 1 : index
    %c64_162 = arith.constant 64 : index
    %164 = vector.load %arg3[%c0_159, %c0_160, %c1_161, %c64_162] : memref<1x4x4x128xf32, #tpu.memory_space<vmem>>, vector<1x3x1x32xf32>
    %165 = vector.shape_cast %164 : vector<1x3x1x32xf32> to vector<3x32xf32>
    %166 = arith.truncf %165 : vector<3x32xf32> to vector<3x32xbf16>
    %cst_163 = arith.constant dense<0.000000e+00> : vector<4x3xf32>
    %167 = tpu.matmul %163, %166, %cst_163 {dimension_numbers = #tpu.dot_dimension_numbers<[1], [1], [0], [0], [0, 0, 1, 0], [], []>} : vector<4x32xbf16>, vector<3x32xbf16>, vector<4x3xf32> -> vector<4x3xf32>
    %168 = arith.addf %160, %167 : vector<4x3xf32>
    %c0_164 = arith.constant 0 : index
    %c0_165 = arith.constant 0 : index
    %c2_166 = arith.constant 2 : index
    %c64_167 = arith.constant 64 : index
    %169 = vector.load %arg2[%c0_164, %c0_165, %c2_166, %c64_167] : memref<1x4x4x128xf32, #tpu.memory_space<vmem>>, vector<1x4x1x32xf32>
    %170 = vector.shape_cast %169 : vector<1x4x1x32xf32> to vector<4x32xf32>
    %171 = arith.truncf %170 : vector<4x32xf32> to vector<4x32xbf16>
    %c0_168 = arith.constant 0 : index
    %c0_169 = arith.constant 0 : index
    %c2_170 = arith.constant 2 : index
    %c64_171 = arith.constant 64 : index
    %172 = vector.load %arg3[%c0_168, %c0_169, %c2_170, %c64_171] : memref<1x4x4x128xf32, #tpu.memory_space<vmem>>, vector<1x3x1x32xf32>
    %173 = vector.shape_cast %172 : vector<1x3x1x32xf32> to vector<3x32xf32>
    %174 = arith.truncf %173 : vector<3x32xf32> to vector<3x32xbf16>
    %cst_172 = arith.constant dense<0.000000e+00> : vector<4x3xf32>
    %175 = tpu.matmul %171, %174, %cst_172 {dimension_numbers = #tpu.dot_dimension_numbers<[1], [1], [0], [0], [0, 0, 1, 0], [], []>} : vector<4x32xbf16>, vector<3x32xbf16>, vector<4x3xf32> -> vector<4x3xf32>
    %176 = arith.addf %168, %175 : vector<4x3xf32>
    %c0_173 = arith.constant 0 : index
    %c0_174 = arith.constant 0 : index
    %c3_175 = arith.constant 3 : index
    %c64_176 = arith.constant 64 : index
    %177 = vector.load %arg2[%c0_173, %c0_174, %c3_175, %c64_176] : memref<1x4x4x128xf32, #tpu.memory_space<vmem>>, vector<1x4x1x32xf32>
    %178 = vector.shape_cast %177 : vector<1x4x1x32xf32> to vector<4x32xf32>
    %179 = arith.truncf %178 : vector<4x32xf32> to vector<4x32xbf16>
    %c0_177 = arith.constant 0 : index
    %c0_178 = arith.constant 0 : index
    %c3_179 = arith.constant 3 : index
    %c64_180 = arith.constant 64 : index
    %180 = vector.load %arg3[%c0_177, %c0_178, %c3_179, %c64_180] : memref<1x4x4x128xf32, #tpu.memory_space<vmem>>, vector<1x3x1x32xf32>
    %181 = vector.shape_cast %180 : vector<1x3x1x32xf32> to vector<3x32xf32>
    %182 = arith.truncf %181 : vector<3x32xf32> to vector<3x32xbf16>
    %cst_181 = arith.constant dense<0.000000e+00> : vector<4x3xf32>
    %183 = tpu.matmul %179, %182, %cst_181 {dimension_numbers = #tpu.dot_dimension_numbers<[1], [1], [0], [0], [0, 0, 1, 0], [], []>} : vector<4x32xbf16>, vector<3x32xbf16>, vector<4x3xf32> -> vector<4x3xf32>
    %184 = arith.addf %176, %183 : vector<4x3xf32>
    %cst_182 = arith.constant dense<0xFF800000> : vector<4xf32>
    %185 = vector.multi_reduction <maximumf>, %184, %cst_182 [1] : vector<4x3xf32> to vector<4xf32>
    %186 = vector.shape_cast %185 : vector<4xf32> to vector<4x1xf32>
    %187 = vector.broadcast %186 : vector<4x1xf32> to vector<4x3xf32>
    %188 = arith.subf %184, %187 : vector<4x3xf32>
    %cst_183 = arith.constant 0.0883883461 : f32
    %189 = vector.broadcast %cst_183 : f32 to vector<4x3xf32>
    %190 = arith.mulf %188, %189 : vector<4x3xf32>
    %191 = math.exp %190 : vector<4x3xf32>
    %cst_184 = arith.constant dense<0.000000e+00> : vector<4xf32>
    %192 = vector.multi_reduction <add>, %191, %cst_184 [1] : vector<4x3xf32> to vector<4xf32>
    %193 = vector.shape_cast %192 : vector<4xf32> to vector<4x1xf32>
    %194 = vector.broadcast %193 : vector<4x1xf32> to vector<4x3xf32>
    %195 = arith.divf %191, %194 : vector<4x3xf32>
    %196 = vector.extract_strided_slice %195 {offsets = [3, 0], sizes = [1, 3], strides = [1, 1]} : vector<4x3xf32> to vector<1x3xf32>
    %197 = vector.extract_strided_slice %195 {offsets = [0, 0], sizes = [3, 3], strides = [1, 1]} : vector<4x3xf32> to vector<3x3xf32>
    %198 = tpu.concatenate %196, %197 in 0 : vector<1x3xf32>, vector<3x3xf32> -> vector<4x3xf32>
    %199 = arith.truncf %198 : vector<4x3xf32> to vector<4x3xbf16>
    %c0_185 = arith.constant 0 : index
    %c1_186 = arith.constant 1 : index
    %c0_187 = arith.constant 0 : index
    %c64_188 = arith.constant 64 : index
    %200 = vector.load %arg4[%c0_185, %c1_186, %c0_187, %c64_188] : memref<1x4x4x128xf32, #tpu.memory_space<vmem>>, vector<1x3x1x32xf32>
    %201 = vector.shape_cast %200 : vector<1x3x1x32xf32> to vector<3x32xf32>
    %202 = arith.truncf %201 : vector<3x32xf32> to vector<3x32xbf16>
    %cst_189 = arith.constant dense<0.000000e+00> : vector<4x32xf32>
    %203 = tpu.matmul %199, %202, %cst_189 {dimension_numbers = #tpu.dot_dimension_numbers<[1], [0], [0], [1], [0, 0, 1, 1], [], []>} : vector<4x3xbf16>, vector<3x32xbf16>, vector<4x32xf32> -> vector<4x32xf32>
    %c0_190 = arith.constant 0 : index
    %c0_191 = arith.constant 0 : index
    %c0_192 = arith.constant 0 : index
    %c64_193 = arith.constant 64 : index
    %204 = vector.load %arg5[%c0_190, %c0_191, %c0_192, %c64_193] : memref<1x4x4x128xf32, #tpu.memory_space<vmem>>, vector<1x4x1x32xf32>
    %205 = vector.shape_cast %204 : vector<1x4x1x32xf32> to vector<4x32xf32>
    %206 = vector.shape_cast %203 : vector<4x32xf32> to vector<1x4x1x32xf32>
    tpu.vector_store %arg5[%c0_190, %c0_191, %c0_192, %c64_193], %206 {strides = array<i32>} : memref<1x4x4x128xf32, #tpu.memory_space<vmem>>, vector<1x4x1x32xf32>,
    %c0_194 = arith.constant 0 : index
    %c1_195 = arith.constant 1 : index
    %c1_196 = arith.constant 1 : index
    %c64_197 = arith.constant 64 : index
    %207 = vector.load %arg4[%c0_194, %c1_195, %c1_196, %c64_197] : memref<1x4x4x128xf32, #tpu.memory_space<vmem>>, vector<1x3x1x32xf32>
    %208 = vector.shape_cast %207 : vector<1x3x1x32xf32> to vector<3x32xf32>
    %209 = arith.truncf %208 : vector<3x32xf32> to vector<3x32xbf16>
    %cst_198 = arith.constant dense<0.000000e+00> : vector<4x32xf32>
    %210 = tpu.matmul %199, %209, %cst_198 {dimension_numbers = #tpu.dot_dimension_numbers<[1], [0], [0], [1], [0, 0, 1, 1], [], []>} : vector<4x3xbf16>, vector<3x32xbf16>, vector<4x32xf32> -> vector<4x32xf32>
    %c0_199 = arith.constant 0 : index
    %c0_200 = arith.constant 0 : index
    %c1_201 = arith.constant 1 : index
    %c64_202 = arith.constant 64 : index
    %211 = vector.load %arg5[%c0_199, %c0_200, %c1_201, %c64_202] : memref<1x4x4x128xf32, #tpu.memory_space<vmem>>, vector<1x4x1x32xf32>
    %212 = vector.shape_cast %211 : vector<1x4x1x32xf32> to vector<4x32xf32>
    %213 = vector.shape_cast %210 : vector<4x32xf32> to vector<1x4x1x32xf32>
    tpu.vector_store %arg5[%c0_199, %c0_200, %c1_201, %c64_202], %213 {strides = array<i32>} : memref<1x4x4x128xf32, #tpu.memory_space<vmem>>, vector<1x4x1x32xf32>,
    %c0_203 = arith.constant 0 : index
    %c1_204 = arith.constant 1 : index
    %c2_205 = arith.constant 2 : index
    %c64_206 = arith.constant 64 : index
    %214 = vector.load %arg4[%c0_203, %c1_204, %c2_205, %c64_206] : memref<1x4x4x128xf32, #tpu.memory_space<vmem>>, vector<1x3x1x32xf32>
    %215 = vector.shape_cast %214 : vector<1x3x1x32xf32> to vector<3x32xf32>
    %216 = arith.truncf %215 : vector<3x32xf32> to vector<3x32xbf16>
    %cst_207 = arith.constant dense<0.000000e+00> : vector<4x32xf32>
    %217 = tpu.matmul %199, %216, %cst_207 {dimension_numbers = #tpu.dot_dimension_numbers<[1], [0], [0], [1], [0, 0, 1, 1], [], []>} : vector<4x3xbf16>, vector<3x32xbf16>, vector<4x32xf32> -> vector<4x32xf32>
    %c0_208 = arith.constant 0 : index
    %c0_209 = arith.constant 0 : index
    %c2_210 = arith.constant 2 : index
    %c64_211 = arith.constant 64 : index
    %218 = vector.load %arg5[%c0_208, %c0_209, %c2_210, %c64_211] : memref<1x4x4x128xf32, #tpu.memory_space<vmem>>, vector<1x4x1x32xf32>
    %219 = vector.shape_cast %218 : vector<1x4x1x32xf32> to vector<4x32xf32>
    %220 = vector.shape_cast %217 : vector<4x32xf32> to vector<1x4x1x32xf32>
    tpu.vector_store %arg5[%c0_208, %c0_209, %c2_210, %c64_211], %220 {strides = array<i32>} : memref<1x4x4x128xf32, #tpu.memory_space<vmem>>, vector<1x4x1x32xf32>,
    %c0_212 = arith.constant 0 : index
    %c1_213 = arith.constant 1 : index
    %c3_214 = arith.constant 3 : index
    %c64_215 = arith.constant 64 : index
    %221 = vector.load %arg4[%c0_212, %c1_213, %c3_214, %c64_215] : memref<1x4x4x128xf32, #tpu.memory_space<vmem>>, vector<1x3x1x32xf32>
    %222 = vector.shape_cast %221 : vector<1x3x1x32xf32> to vector<3x32xf32>
    %223 = arith.truncf %222 : vector<3x32xf32> to vector<3x32xbf16>
    %cst_216 = arith.constant dense<0.000000e+00> : vector<4x32xf32>
    %224 = tpu.matmul %199, %223, %cst_216 {dimension_numbers = #tpu.dot_dimension_numbers<[1], [0], [0], [1], [0, 0, 1, 1], [], []>} : vector<4x3xbf16>, vector<3x32xbf16>, vector<4x32xf32> -> vector<4x32xf32>
    %c0_217 = arith.constant 0 : index
    %c0_218 = arith.constant 0 : index
    %c3_219 = arith.constant 3 : index
    %c64_220 = arith.constant 64 : index
    %225 = vector.load %arg5[%c0_217, %c0_218, %c3_219, %c64_220] : memref<1x4x4x128xf32, #tpu.memory_space<vmem>>, vector<1x4x1x32xf32>
    %226 = vector.shape_cast %225 : vector<1x4x1x32xf32> to vector<4x32xf32>
    %227 = vector.shape_cast %224 : vector<4x32xf32> to vector<1x4x1x32xf32>
    tpu.vector_store %arg5[%c0_217, %c0_218, %c3_219, %c64_220], %227 {strides = array<i32>} : memref<1x4x4x128xf32, #tpu.memory_space<vmem>>, vector<1x4x1x32xf32>,
    %cst_221 = arith.constant 0.000000e+00 : f32
    %228 = vector.broadcast %cst_221 : f32 to vector<4x3xf32>
    %c0_222 = arith.constant 0 : index
    %c0_223 = arith.constant 0 : index
    %c0_224 = arith.constant 0 : index
    %c96 = arith.constant 96 : index
    %229 = vector.load %arg2[%c0_222, %c0_223, %c0_224, %c96] : memref<1x4x4x128xf32, #tpu.memory_space<vmem>>, vector<1x4x1x32xf32>
    %230 = vector.shape_cast %229 : vector<1x4x1x32xf32> to vector<4x32xf32>
    %231 = arith.truncf %230 : vector<4x32xf32> to vector<4x32xbf16>
    %c0_225 = arith.constant 0 : index
    %c0_226 = arith.constant 0 : index
    %c0_227 = arith.constant 0 : index
    %c96_228 = arith.constant 96 : index
    %232 = vector.load %arg3[%c0_225, %c0_226, %c0_227, %c96_228] : memref<1x4x4x128xf32, #tpu.memory_space<vmem>>, vector<1x3x1x32xf32>
    %233 = vector.shape_cast %232 : vector<1x3x1x32xf32> to vector<3x32xf32>
    %234 = arith.truncf %233 : vector<3x32xf32> to vector<3x32xbf16>
    %cst_229 = arith.constant dense<0.000000e+00> : vector<4x3xf32>
    %235 = tpu.matmul %231, %234, %cst_229 {dimension_numbers = #tpu.dot_dimension_numbers<[1], [1], [0], [0], [0, 0, 1, 0], [], []>} : vector<4x32xbf16>, vector<3x32xbf16>, vector<4x3xf32> -> vector<4x3xf32>
    %236 = arith.addf %228, %235 : vector<4x3xf32>
    %c0_230 = arith.constant 0 : index
    %c0_231 = arith.constant 0 : index
    %c1_232 = arith.constant 1 : index
    %c96_233 = arith.constant 96 : index
    %237 = vector.load %arg2[%c0_230, %c0_231, %c1_232, %c96_233] : memref<1x4x4x128xf32, #tpu.memory_space<vmem>>, vector<1x4x1x32xf32>
    %238 = vector.shape_cast %237 : vector<1x4x1x32xf32> to vector<4x32xf32>
    %239 = arith.truncf %238 : vector<4x32xf32> to vector<4x32xbf16>
    %c0_234 = arith.constant 0 : index
    %c0_235 = arith.constant 0 : index
    %c1_236 = arith.constant 1 : index
    %c96_237 = arith.constant 96 : index
    %240 = vector.load %arg3[%c0_234, %c0_235, %c1_236, %c96_237] : memref<1x4x4x128xf32, #tpu.memory_space<vmem>>, vector<1x3x1x32xf32>
    %241 = vector.shape_cast %240 : vector<1x3x1x32xf32> to vector<3x32xf32>
    %242 = arith.truncf %241 : vector<3x32xf32> to vector<3x32xbf16>
    %cst_238 = arith.constant dense<0.000000e+00> : vector<4x3xf32>
    %243 = tpu.matmul %239, %242, %cst_238 {dimension_numbers = #tpu.dot_dimension_numbers<[1], [1], [0], [0], [0, 0, 1, 0], [], []>} : vector<4x32xbf16>, vector<3x32xbf16>, vector<4x3xf32> -> vector<4x3xf32>
    %244 = arith.addf %236, %243 : vector<4x3xf32>
    %c0_239 = arith.constant 0 : index
    %c0_240 = arith.constant 0 : index
    %c2_241 = arith.constant 2 : index
    %c96_242 = arith.constant 96 : index
    %245 = vector.load %arg2[%c0_239, %c0_240, %c2_241, %c96_242] : memref<1x4x4x128xf32, #tpu.memory_space<vmem>>, vector<1x4x1x32xf32>
    %246 = vector.shape_cast %245 : vector<1x4x1x32xf32> to vector<4x32xf32>
    %247 = arith.truncf %246 : vector<4x32xf32> to vector<4x32xbf16>
    %c0_243 = arith.constant 0 : index
    %c0_244 = arith.constant 0 : index
    %c2_245 = arith.constant 2 : index
    %c96_246 = arith.constant 96 : index
    %248 = vector.load %arg3[%c0_243, %c0_244, %c2_245, %c96_246] : memref<1x4x4x128xf32, #tpu.memory_space<vmem>>, vector<1x3x1x32xf32>
    %249 = vector.shape_cast %248 : vector<1x3x1x32xf32> to vector<3x32xf32>
    %250 = arith.truncf %249 : vector<3x32xf32> to vector<3x32xbf16>
    %cst_247 = arith.constant dense<0.000000e+00> : vector<4x3xf32>
    %251 = tpu.matmul %247, %250, %cst_247 {dimension_numbers = #tpu.dot_dimension_numbers<[1], [1], [0], [0], [0, 0, 1, 0], [], []>} : vector<4x32xbf16>, vector<3x32xbf16>, vector<4x3xf32> -> vector<4x3xf32>
    %252 = arith.addf %244, %251 : vector<4x3xf32>
    %c0_248 = arith.constant 0 : index
    %c0_249 = arith.constant 0 : index
    %c3_250 = arith.constant 3 : index
    %c96_251 = arith.constant 96 : index
    %253 = vector.load %arg2[%c0_248, %c0_249, %c3_250, %c96_251] : memref<1x4x4x128xf32, #tpu.memory_space<vmem>>, vector<1x4x1x32xf32>
    %254 = vector.shape_cast %253 : vector<1x4x1x32xf32> to vector<4x32xf32>
    %255 = arith.truncf %254 : vector<4x32xf32> to vector<4x32xbf16>
    %c0_252 = arith.constant 0 : index
    %c0_253 = arith.constant 0 : index
    %c3_254 = arith.constant 3 : index
    %c96_255 = arith.constant 96 : index
    %256 = vector.load %arg3[%c0_252, %c0_253, %c3_254, %c96_255] : memref<1x4x4x128xf32, #tpu.memory_space<vmem>>, vector<1x3x1x32xf32>
    %257 = vector.shape_cast %256 : vector<1x3x1x32xf32> to vector<3x32xf32>
    %258 = arith.truncf %257 : vector<3x32xf32> to vector<3x32xbf16>
    %cst_256 = arith.constant dense<0.000000e+00> : vector<4x3xf32>
    %259 = tpu.matmul %255, %258, %cst_256 {dimension_numbers = #tpu.dot_dimension_numbers<[1], [1], [0], [0], [0, 0, 1, 0], [], []>} : vector<4x32xbf16>, vector<3x32xbf16>, vector<4x3xf32> -> vector<4x3xf32>
    %260 = arith.addf %252, %259 : vector<4x3xf32>
    %cst_257 = arith.constant dense<0xFF800000> : vector<4xf32>
    %261 = vector.multi_reduction <maximumf>, %260, %cst_257 [1] : vector<4x3xf32> to vector<4xf32>
    %262 = vector.shape_cast %261 : vector<4xf32> to vector<4x1xf32>
    %263 = vector.broadcast %262 : vector<4x1xf32> to vector<4x3xf32>
    %264 = arith.subf %260, %263 : vector<4x3xf32>
    %cst_258 = arith.constant 0.0883883461 : f32
    %265 = vector.broadcast %cst_258 : f32 to vector<4x3xf32>
    %266 = arith.mulf %264, %265 : vector<4x3xf32>
    %267 = math.exp %266 : vector<4x3xf32>
    %cst_259 = arith.constant dense<0.000000e+00> : vector<4xf32>
    %268 = vector.multi_reduction <add>, %267, %cst_259 [1] : vector<4x3xf32> to vector<4xf32>
    %269 = vector.shape_cast %268 : vector<4xf32> to vector<4x1xf32>
    %270 = vector.broadcast %269 : vector<4x1xf32> to vector<4x3xf32>
    %271 = arith.divf %267, %270 : vector<4x3xf32>
    %272 = vector.extract_strided_slice %271 {offsets = [3, 0], sizes = [1, 3], strides = [1, 1]} : vector<4x3xf32> to vector<1x3xf32>
    %273 = vector.extract_strided_slice %271 {offsets = [0, 0], sizes = [3, 3], strides = [1, 1]} : vector<4x3xf32> to vector<3x3xf32>
    %274 = tpu.concatenate %272, %273 in 0 : vector<1x3xf32>, vector<3x3xf32> -> vector<4x3xf32>
    %275 = arith.truncf %274 : vector<4x3xf32> to vector<4x3xbf16>
    %c0_260 = arith.constant 0 : index
    %c1_261 = arith.constant 1 : index
    %c0_262 = arith.constant 0 : index
    %c96_263 = arith.constant 96 : index
    %276 = vector.load %arg4[%c0_260, %c1_261, %c0_262, %c96_263] : memref<1x4x4x128xf32, #tpu.memory_space<vmem>>, vector<1x3x1x32xf32>
    %277 = vector.shape_cast %276 : vector<1x3x1x32xf32> to vector<3x32xf32>
    %278 = arith.truncf %277 : vector<3x32xf32> to vector<3x32xbf16>
    %cst_264 = arith.constant dense<0.000000e+00> : vector<4x32xf32>
    %279 = tpu.matmul %275, %278, %cst_264 {dimension_numbers = #tpu.dot_dimension_numbers<[1], [0], [0], [1], [0, 0, 1, 1], [], []>} : vector<4x3xbf16>, vector<3x32xbf16>, vector<4x32xf32> -> vector<4x32xf32>
    %c0_265 = arith.constant 0 : index
    %c0_266 = arith.constant 0 : index
    %c0_267 = arith.constant 0 : index
    %c96_268 = arith.constant 96 : index
    %280 = vector.load %arg5[%c0_265, %c0_266, %c0_267, %c96_268] : memref<1x4x4x128xf32, #tpu.memory_space<vmem>>, vector<1x4x1x32xf32>
    %281 = vector.shape_cast %280 : vector<1x4x1x32xf32> to vector<4x32xf32>
    %282 = vector.shape_cast %279 : vector<4x32xf32> to vector<1x4x1x32xf32>
    tpu.vector_store %arg5[%c0_265, %c0_266, %c0_267, %c96_268], %282 {strides = array<i32>} : memref<1x4x4x128xf32, #tpu.memory_space<vmem>>, vector<1x4x1x32xf32>,
    %c0_269 = arith.constant 0 : index
    %c1_270 = arith.constant 1 : index
    %c1_271 = arith.constant 1 : index
    %c96_272 = arith.constant 96 : index
    %283 = vector.load %arg4[%c0_269, %c1_270, %c1_271, %c96_272] : memref<1x4x4x128xf32, #tpu.memory_space<vmem>>, vector<1x3x1x32xf32>
    %284 = vector.shape_cast %283 : vector<1x3x1x32xf32> to vector<3x32xf32>
    %285 = arith.truncf %284 : vector<3x32xf32> to vector<3x32xbf16>
    %cst_273 = arith.constant dense<0.000000e+00> : vector<4x32xf32>
    %286 = tpu.matmul %275, %285, %cst_273 {dimension_numbers = #tpu.dot_dimension_numbers<[1], [0], [0], [1], [0, 0, 1, 1], [], []>} : vector<4x3xbf16>, vector<3x32xbf16>, vector<4x32xf32> -> vector<4x32xf32>
    %c0_274 = arith.constant 0 : index
    %c0_275 = arith.constant 0 : index
    %c1_276 = arith.constant 1 : index
    %c96_277 = arith.constant 96 : index
    %287 = vector.load %arg5[%c0_274, %c0_275, %c1_276, %c96_277] : memref<1x4x4x128xf32, #tpu.memory_space<vmem>>, vector<1x4x1x32xf32>
    %288 = vector.shape_cast %287 : vector<1x4x1x32xf32> to vector<4x32xf32>
    %289 = vector.shape_cast %286 : vector<4x32xf32> to vector<1x4x1x32xf32>
    tpu.vector_store %arg5[%c0_274, %c0_275, %c1_276, %c96_277], %289 {strides = array<i32>} : memref<1x4x4x128xf32, #tpu.memory_space<vmem>>, vector<1x4x1x32xf32>,
    %c0_278 = arith.constant 0 : index
    %c1_279 = arith.constant 1 : index
    %c2_280 = arith.constant 2 : index
    %c96_281 = arith.constant 96 : index
    %290 = vector.load %arg4[%c0_278, %c1_279, %c2_280, %c96_281] : memref<1x4x4x128xf32, #tpu.memory_space<vmem>>, vector<1x3x1x32xf32>
    %291 = vector.shape_cast %290 : vector<1x3x1x32xf32> to vector<3x32xf32>
    %292 = arith.truncf %291 : vector<3x32xf32> to vector<3x32xbf16>
    %cst_282 = arith.constant dense<0.000000e+00> : vector<4x32xf32>
    %293 = tpu.matmul %275, %292, %cst_282 {dimension_numbers = #tpu.dot_dimension_numbers<[1], [0], [0], [1], [0, 0, 1, 1], [], []>} : vector<4x3xbf16>, vector<3x32xbf16>, vector<4x32xf32> -> vector<4x32xf32>
    %c0_283 = arith.constant 0 : index
    %c0_284 = arith.constant 0 : index
    %c2_285 = arith.constant 2 : index
    %c96_286 = arith.constant 96 : index
    %294 = vector.load %arg5[%c0_283, %c0_284, %c2_285, %c96_286] : memref<1x4x4x128xf32, #tpu.memory_space<vmem>>, vector<1x4x1x32xf32>
    %295 = vector.shape_cast %294 : vector<1x4x1x32xf32> to vector<4x32xf32>
    %296 = vector.shape_cast %293 : vector<4x32xf32> to vector<1x4x1x32xf32>
    tpu.vector_store %arg5[%c0_283, %c0_284, %c2_285, %c96_286], %296 {strides = array<i32>} : memref<1x4x4x128xf32, #tpu.memory_space<vmem>>, vector<1x4x1x32xf32>,
    %c0_287 = arith.constant 0 : index
    %c1_288 = arith.constant 1 : index
    %c3_289 = arith.constant 3 : index
    %c96_290 = arith.constant 96 : index
    %297 = vector.load %arg4[%c0_287, %c1_288, %c3_289, %c96_290] : memref<1x4x4x128xf32, #tpu.memory_space<vmem>>, vector<1x3x1x32xf32>
    %298 = vector.shape_cast %297 : vector<1x3x1x32xf32> to vector<3x32xf32>
    %299 = arith.truncf %298 : vector<3x32xf32> to vector<3x32xbf16>
    %cst_291 = arith.constant dense<0.000000e+00> : vector<4x32xf32>
    %300 = tpu.matmul %275, %299, %cst_291 {dimension_numbers = #tpu.dot_dimension_numbers<[1], [0], [0], [1], [0, 0, 1, 1], [], []>} : vector<4x3xbf16>, vector<3x32xbf16>, vector<4x32xf32> -> vector<4x32xf32>
    %c0_292 = arith.constant 0 : index
    %c0_293 = arith.constant 0 : index
    %c3_294 = arith.constant 3 : index
    %c96_295 = arith.constant 96 : index
    %301 = vector.load %arg5[%c0_292, %c0_293, %c3_294, %c96_295] : memref<1x4x4x128xf32, #tpu.memory_space<vmem>>, vector<1x4x1x32xf32>
    %302 = vector.shape_cast %301 : vector<1x4x1x32xf32> to vector<4x32xf32>
    %303 = vector.shape_cast %300 : vector<4x32xf32> to vector<1x4x1x32xf32>
    tpu.vector_store %arg5[%c0_292, %c0_293, %c3_294, %c96_295], %303 {strides = array<i32>} : memref<1x4x4x128xf32, #tpu.memory_space<vmem>>, vector<1x4x1x32xf32>,
    return
  }
  func.func @transform_0(%arg0: i32, %arg1: i32) -> (i32, i32, i32, i32) {
    %c0_i32 = arith.constant 0 : i32
    %c0_i32_0 = arith.constant 0 : i32
    %c0_i32_1 = arith.constant 0 : i32
    return %arg0, %c0_i32, %c0_i32_0, %arg1 : i32, i32, i32, i32
  }
  func.func @transform_1(%arg0: i32, %arg1: i32) -> (i32, i32, i32, i32) {
    %c0_i32 = arith.constant 0 : i32
    %c0_i32_0 = arith.constant 0 : i32
    %c0_i32_1 = arith.constant 0 : i32
    return %arg0, %c0_i32, %c0_i32_0, %arg1 : i32, i32, i32, i32
  }
  func.func @transform_2(%arg0: i32, %arg1: i32) -> (i32, i32, i32, i32) {
    %c0_i32 = arith.constant 0 : i32
    %c0_i32_0 = arith.constant 0 : i32
    %c0_i32_1 = arith.constant 0 : i32
    return %arg0, %c0_i32, %c0_i32_0, %arg1 : i32, i32, i32, i32
  }
  func.func @transform_3(%arg0: i32, %arg1: i32) -> (i32, i32, i32, i32) {
    %c0_i32 = arith.constant 0 : i32
    %c0_i32_0 = arith.constant 0 : i32
    %c0_i32_1 = arith.constant 0 : i32
    return %arg0, %c0_i32, %c0_i32_0, %arg1 : i32, i32, i32, i32
  }
}

</mosaic_0001>

<bundles_post_ra>
// kernel: segment_correlation3.1
= control target key start
LH: loop header
LB: loop body
LE: loop exit
PB: predicated region body
PF: predicated region fallthrough
CT: control target
= control target key end

     0   :  { %s4172_s12 = smov 0   ;;  %s4174_s13 = smov 0   ;;  %s5087_s0 = inlined_call_operand.vmem [shape: f32[2,4,4,128], index: 0, kind: input, shape index: {}]   ;;  %s5088_s1 = inlined_call_operand.vmem [shape: f32[2,4,4,128], index: 1, kind: input, shape index: {}]   ;;  %s5089_s2 = inlined_call_operand.vmem [shape: f32[2,4,4,128], index: 2, kind: input, shape index: {}]   ;;  %s5090_s3 = inlined_call_operand.vmem [shape: f32[2,4,4,128], index: 3, kind: output, shape index: {}]  }
   0x1   :  { %s4176_s14 = smov 0  }
   0x2 LB: > { %s25_s15 = sadd.s32 1, %s4139_s13  ;;  %p3723_p0 = scmp.ge.s32.totalorder %s4143_s14, 1  ;;  %s4143_s14 = sphi %s4176_s14, %s13_s14   ;;  %s4139_s13 = sphi %s4174_s13, %s5092_s13   ;;  %s4135_s12 = sphi %s4172_s12, %s5091_s12  }
   0x3   : > { %p27_p1 = scmp.ge.s32.totalorder %s25_s15, 2  ;;  %p186_p2 = scmp.lt.s32.totalorder %s4143_s14, 3 }
   0x5   : > { %s5094_s15 = smov (%p27_p1, %s25_s15), 0  ;;  %p187_p3 = pnand %p3723_p0, %p186_p2 }
   0x6   : > { %p232_p4 = scmp.lt.s32.totalorder (!%p187_p3), %s4135_s12, 1  ;;  %s4147_s23 = smov (!%p187_p3), 96  }
   0x7   : > { %190 = sbr.rel (%p187_p3) target bundleno = 2528 (0x9e0), region = 32  ;;  %s4150_s30 = smov (!%p187_p3), 64  }
   0x8   : > { %s4151_s4 = smov (!%p187_p3), 32  }
   0xc   : > { %v4145_v0 = vmov 0.0   ;;  %s5096_s12 = smov (!%p232_p4, %s4135_s12), 1  ;;  %vm4146_vm0 = vmmov 0   ;;  %vm302_vm1 = vcmask 1041409   ;;  %vm305_vm2 = vcmask 1042434  }
   0xd   : > { %3882 = vmatprep.subr.bf16.mxu0 %v4145_v0  ;;  %3888 = vmatprep.subr.bf16.mxu1 %v4145_v0  ;;  %s4196_s16 = sshll.u32 %s5096_s12, 4  ;;  %vm322_vm3 = vcmask 261120   ;;  %vm308_vm4 = vcmask 1043459   ;;  %vm615_vm5 = vcmask 19456   ;;  %vm633_vm6 = vcmask 1040384  }
   0xe   : > { %3884 = vmatprep.mubr.msk.bf16.mxu0 %vm4146_vm0, %v4145_v0  ;;  %3890 = vmatprep.mubr.msk.bf16.mxu1 %vm4146_vm0, %v4145_v0  ;;  %s4202_s19 = scalar_lea.vmem %s5087_s0, %s4196_s16  ;;  %s4208_s22 = scalar_lea.vmem %s5088_s1, %s4196_s16  ;;  %vm658_vm7 = vcmask 1041408   ;;  %vm654_vm8 = vcmask 23552   ;;  %vm733_vm9 = vcmask 253952   ;;  %vm1516_vm10 = vcmask 516352  }
   0xf   : > { %v287_v1 = vld [vmem:[%s4208_s22 + $0x1] sm:$0x1]  ;;  %v288_v2 = vld [vmem:[%s4208_s22 + $0x5] sm:$0x1]  ;;  %v289_v3 = vld [vmem:[%s4208_s22 + $0x9] sm:$0x1]  ;;  %s4346_s26 = scalar_lea.vmem %s5089_s2, %s4196_s16  ;;  %s4425_s29 = scalar_lea.vmem %s5090_s3, %s4196_s16 }
  0x10   : > { %v290_v4 = vpack.c.bf16 %v287_v1, %v287_v1  ;;  %v291_v5 = vpack.c.bf16 %v288_v2, %v288_v2  ;;  %v292_v6 = vpack.c.bf16 %v289_v3, %v289_v3  ;;  %v273_v7 = vld [vmem:[%s4208_s22] sm:$0x1]  ;;  %v274_v8 = vld [vmem:[%s4208_s22 + $0x4] sm:$0x1]  ;;  %v275_v9 = vld [vmem:[%s4208_s22 + $0x8] sm:$0x1] }
  0x11   : > { %v276_v10 = vpack.c.bf16 %v273_v7, %v273_v7  ;;  %v277_v11 = vpack.c.bf16 %v274_v8, %v274_v8  ;;  %v278_v12 = vpack.c.bf16 %v275_v9, %v275_v9  ;;  %v279_v13 = vld [vmem:[%s4202_s19 + $0x1] sm:$0x1]  ;;  %v280_v14 = vld [vmem:[%s4202_s19 + $0x5] sm:$0x1]  ;;  %v281_v15 = vld [vmem:[%s4202_s19 + $0x9] sm:$0x1] }
  0x12   : > { %v314_v16 = vunpack.c.l.b16 %v290_v4  ;;  %v315_v17 = vunpack.c.l.b16 %v291_v5  ;;  %v316_v18 = vunpack.c.l.b16 %v292_v6  ;;  %v282_v19 = vld [vmem:[%s4202_s19 + $0xd] sm:$0x1]  ;;  %v283_v20 = vpack.c.bf16 %v279_v13, %v279_v13  ;;  %v265_v25 = vld [vmem:[%s4202_s19] sm:$0x1]  ;;  %v266_v30 = vld [vmem:[%s4202_s19 + $0x4] sm:$0x1] }
  0x13   : > { %v387_v21 = vunpack.c.l.b16 %v276_v10  ;;  %v388_v22 = vunpack.c.l.b16 %v277_v11  ;;  %v389_v23 = vunpack.c.l.b16 %v278_v12  ;;  %v284_v24 = vpack.c.bf16 %v280_v14, %v280_v14  ;;  %v267_v38 = vld [vmem:[%s4202_s19 + $0x8] sm:$0x1]  ;;  %v268_v39 = vld [vmem:[%s4202_s19 + $0xc] sm:$0x1]  ;;  %v449_v53 = vld [vmem:[%s4208_s22 + $0x2] sm:$0x1] }
  0x14   : > { %v317_v26 = vrot.slane %v315_v17, 7  ;;  %v319_v27 = vrot.slane %v316_v18, 6  ;;  %v285_v28 = vpack.c.bf16 %v281_v15, %v281_v15  ;;  %v286_v29 = vpack.c.bf16 %v282_v19, %v282_v19  ;;  %v450_v54 = vld [vmem:[%s4208_s22 + $0x6] sm:$0x1]  ;;  %v451_v59 = vld [vmem:[%s4208_s22 + $0xa] sm:$0x1] }
  0x15   : > { %v390_v31 = vrot.slane %v388_v22, 7  ;;  %v392_v32 = vrot.slane %v389_v23, 6  ;;  %v297_v33 = vunpack.c.l.b16 %v283_v20  ;;  %v298_v34 = vunpack.c.l.b16 %v284_v24  ;;  %v536_v60 = vld [vmem:[%s4208_s22 + $0x3] sm:$0x1]  ;;  %v537_v2 = vld [vmem:[%s4208_s22 + $0x7] sm:$0x1] }
  0x16   : > { %v318_v35 = vsel %vm302_vm1, %v317_v26, %v314_v16  ;;  %v299_v36 = vunpack.c.l.b16 %v285_v28  ;;  %v300_v37 = vunpack.c.l.b16 %v286_v29  ;;  %v269_v40 = vpack.c.bf16 %v265_v25, %v265_v25  ;;  %v538_v7 = vld [vmem:[%s4208_s22 + $0xb] sm:$0x1]  ;;  %v441_v12 = vld [vmem:[%s4202_s19 + $0x2] sm:$0x1]  ;;  %v442_v17 = vld [vmem:[%s4202_s19 + $0x6] sm:$0x1] }
  0x17   : > { %v320_v41 = vsel %vm305_vm2, %v319_v27, %v318_v35  ;;  %v391_v42 = vsel %vm302_vm1, %v390_v31, %v387_v21  ;;  %v301_v43 = vrot.slane %v298_v34, 7  ;;  %v270_v44 = vpack.c.bf16 %v266_v30, %v266_v30  ;;  %v443_v22 = vld [vmem:[%s4202_s19 + $0xa] sm:$0x1]  ;;  %v444_v23 = vld [vmem:[%s4202_s19 + $0xe] sm:$0x1] }
  0x18   : > { %v321_v45 = vpack.c.b16 %v320_v41, %v320_v41  ;;  %v393_v46 = vsel %vm305_vm2, %v392_v32, %v391_v42  ;;  %v304_v47 = vrot.slane %v299_v36, 6  ;;  %v307_v48 = vrot.slane %v300_v37, 5  ;;  %v528_v36 = vld [vmem:[%s4202_s19 + $0x3] sm:$0x1]  ;;  %v529_v37 = vld [vmem:[%s4202_s19 + $0x7] sm:$0x1] }
  0x19   : > { %v394_v49 = vpack.c.b16 %v393_v46, %v393_v46  ;;  %v303_v50 = vsel %vm302_vm1, %v301_v43, %v297_v33  ;;  %v271_v51 = vpack.c.bf16 %v267_v38, %v267_v38  ;;  %v272_v52 = vpack.c.bf16 %v268_v39, %v268_v39  ;;  %v530_v46 = vld [vmem:[%s4202_s19 + $0xb] sm:$0x1] }
  0x1a   : > { %v327_v55 = vsel %vm322_vm3, %v321_v45, 0  ;;  %v306_v56 = vsel %vm305_vm2, %v304_v47, %v303_v50  ;;  %v373_v57 = vunpack.c.l.b16 %v269_v40  ;;  %v374_v58 = vunpack.c.l.b16 %v270_v44  ;;  %v531_v47 = vld [vmem:[%s4202_s19 + $0xf] sm:$0x1] }
  0x1b   : > { %3883 = vmatpush3.bf16.xpose.msra.mxu0 %v327_v55  ;;  %v399_v61 = vsel %vm322_vm3, %v394_v49, 0  ;;  %v309_v62 = vsel %vm308_vm4, %v307_v48, %v306_v56  ;;  %v375_v63 = vunpack.c.l.b16 %v271_v51  ;;  %v376_v1 = vunpack.c.l.b16 %v272_v52 }
  0x1c   : > { %3889 = vmatpush3.bf16.xpose.msra.mxu1 %v399_v61  ;;  %v310_v3 = vpack.c.b16 %v309_v62, %v309_v62  ;;  %v377_v4 = vrot.slane %v374_v58, 7  ;;  %3894 = vmatprep.subr.bf16.mxu0 %v4145_v0  ;;  %v452_v5 = vpack.c.bf16 %v449_v53, %v449_v53  ;;  %v453_v6 = vpack.c.bf16 %v450_v54, %v450_v54 }
  0x1d   : > { %v379_v8 = vrot.slane %v375_v63, 6  ;;  %v381_v9 = vrot.slane %v376_v1, 5  ;;  %3900 = vmatprep.subr.bf16.mxu1 %v4145_v0  ;;  %v454_v10 = vpack.c.bf16 %v451_v59, %v451_v59  ;;  %v539_v11 = vpack.c.bf16 %v536_v60, %v536_v60 }
  0x1e   : > { %v378_v13 = vsel %vm302_vm1, %v377_v4, %v373_v57  ;;  %v473_v14 = vunpack.c.l.b16 %v452_v5  ;;  %v474_v15 = vunpack.c.l.b16 %v453_v6  ;;  %v540_v16 = vpack.c.bf16 %v537_v2, %v537_v2 }
  0x1f   : > { %v380_v18 = vsel %vm305_vm2, %v379_v8, %v378_v13  ;;  %v475_v19 = vunpack.c.l.b16 %v454_v10  ;;  %v541_v20 = vpack.c.bf16 %v538_v7, %v538_v7  ;;  %v560_v21 = vunpack.c.l.b16 %v539_v11 }
  0x20   : > { %v382_v24 = vsel %vm308_vm4, %v381_v9, %v380_v18  ;;  %v476_v25 = vrot.slane %v474_v15, 7  ;;  %v561_v26 = vunpack.c.l.b16 %v540_v16  ;;  %v445_v27 = vpack.c.bf16 %v441_v12, %v441_v12 }
  0x21   : > { %v383_v28 = vpack.c.b16 %v382_v24, %v382_v24  ;;  %v478_v29 = vrot.slane %v475_v19, 6  ;;  %v562_v30 = vunpack.c.l.b16 %v541_v20  ;;  %v446_v31 = vpack.c.bf16 %v442_v17, %v442_v17 }
  0x22   : > { %3885 = vmatmul.mubr.msk.bf16.vlgmr.msra.gmra.mxu0 %vm322_vm3, %v310_v3  ;;  %v477_v32 = vsel %vm302_vm1, %v476_v25, %v473_v14  ;;  %v563_v33 = vrot.slane %v561_v26, 7  ;;  %v447_v34 = vpack.c.bf16 %v443_v22, %v443_v22  ;;  %v448_v35 = vpack.c.bf16 %v444_v23, %v444_v23 }
  0x23   : > { %3891 = vmatmul.mubr.msk.bf16.vlgmr.msra.gmra.mxu1 %vm322_vm3, %v383_v28  ;;  %v479_v38 = vsel %vm305_vm2, %v478_v29, %v477_v32  ;;  %v565_v39 = vrot.slane %v562_v30, 6  ;;  %3896 = vmatprep.mubr.msk.bf16.mxu0 %vm4146_vm0, %v4145_v0  ;;  %v459_v40 = vunpack.c.l.b16 %v445_v27  ;;  %v460_v41 = vunpack.c.l.b16 %v446_v31  ;;  %v1039_v31 = vld [vmem:[%s4208_s22 + $0x1] sm:$0x1]  ;;  %v1040_v32 = vld [vmem:[%s4208_s22 + $0x5] sm:$0x1] }
  0x24   : > { %v480_v42 = vpack.c.b16 %v479_v38, %v479_v38  ;;  %v564_v43 = vsel %vm302_vm1, %v563_v33, %v560_v21  ;;  %3902 = vmatprep.mubr.msk.bf16.mxu1 %vm4146_vm0, %v4145_v0  ;;  %v461_v44 = vunpack.c.l.b16 %v447_v34  ;;  %v462_v45 = vunpack.c.l.b16 %v448_v35  ;;  %v1041_v33 = vld [vmem:[%s4208_s22 + $0x9] sm:$0x1]  ;;  %v1026_v38 = vld [vmem:[%s4208_s22 + $0x4] sm:$0x1] }
  0x25   : > { %v566_v48 = vsel %vm305_vm2, %v565_v39, %v564_v43  ;;  %v463_v49 = vrot.slane %v460_v41, 7  ;;  %v532_v50 = vpack.c.bf16 %v528_v36, %v528_v36  ;;  %v533_v51 = vpack.c.bf16 %v529_v37, %v529_v37  ;;  %v1025_v37 = vld [vmem:[%s4208_s22] sm:$0x1]  ;;  %v1027_v39 = vld [vmem:[%s4208_s22 + $0x8] sm:$0x1] }
  0x26   : > { %v485_v52 = vsel %vm322_vm3, %v480_v42, 0  ;;  %v567_v53 = vpack.c.b16 %v566_v48, %v566_v48  ;;  %v465_v54 = vrot.slane %v461_v44, 6  ;;  %v467_v55 = vrot.slane %v462_v45, 5  ;;  %v1205_v42 = vld [vmem:[%s4208_s22 + $0x2] sm:$0x1] }
  0x27   : > { %3895 = vmatpush3.bf16.xpose.msra.mxu0 %v485_v52  ;;  %v464_v56 = vsel %vm302_vm1, %v463_v49, %v459_v40  ;;  %v534_v57 = vpack.c.bf16 %v530_v46, %v530_v46  ;;  %v535_v58 = vpack.c.bf16 %v531_v47, %v531_v47  ;;  %v546_v61 = vunpack.c.l.b16 %v532_v50  ;;  %v1206_v43 = vld [vmem:[%s4208_s22 + $0x6] sm:$0x1]  ;;  %v1207_v48 = vld [vmem:[%s4208_s22 + $0xa] sm:$0x1]  ;;  %v1017_v49 = vld [vmem:[%s4202_s19] sm:$0x1] }
  0x28   : > { %v572_v59 = vsel %vm322_vm3, %v567_v53, 0  ;;  %v466_v60 = vsel %vm305_vm2, %v465_v54, %v464_v56  ;;  %v547_v62 = vunpack.c.l.b16 %v533_v51  ;;  %3906 = vmatprep.subr.bf16.mxu0 %v4145_v0  ;;  %v1042_v34 = vpack.c.bf16 %v1039_v31, %v1039_v31  ;;  %v1018_v54 = vld [vmem:[%s4202_s19 + $0x4] sm:$0x1] }
  0x29   : > { %3901 = vmatpush3.bf16.xpose.msra.mxu1 %v572_v59  ;;  %v468_v63 = vsel %vm308_vm4, %v467_v55, %v466_v60  ;;  %v548_v1 = vunpack.c.l.b16 %v534_v57  ;;  %v549_v2 = vunpack.c.l.b16 %v535_v58  ;;  %v1043_v35 = vpack.c.bf16 %v1040_v32, %v1040_v32  ;;  %v1019_v59 = vld [vmem:[%s4202_s19 + $0x8] sm:$0x1] }
  0x2a   : > { %v469_v3 = vpack.c.b16 %v468_v63, %v468_v63  ;;  %v550_v4 = vrot.slane %v547_v62, 7  ;;  %3912 = vmatprep.subr.bf16.mxu1 %v4145_v0  ;;  %v1044_v36 = vpack.c.bf16 %v1041_v33, %v1041_v33  ;;  %v1028_v40 = vpack.c.bf16 %v1025_v37, %v1025_v37  ;;  %v1020_v63 = vld [vmem:[%s4202_s19 + $0xc] sm:$0x1] }
  0x2b   : > { %v552_v5 = vrot.slane %v548_v1, 6  ;;  %v554_v6 = vrot.slane %v549_v2, 5  ;;  %v1029_v41 = vpack.c.bf16 %v1026_v38, %v1026_v38  ;;  %v1065_v44 = vunpack.c.l.b16 %v1042_v34 }
  0x2c   : > { %v551_v7 = vsel %vm302_vm1, %v550_v4, %v546_v61  ;;  %v1066_v45 = vunpack.c.l.b16 %v1043_v35  ;;  %v1067_v46 = vunpack.c.l.b16 %v1044_v36  ;;  %v1030_v47 = vpack.c.bf16 %v1027_v39, %v1027_v39 }
  0x2d   : > { %v553_v8 = vsel %vm305_vm2, %v552_v5, %v551_v7  ;;  %v1141_v50 = vunpack.c.l.b16 %v1028_v40  ;;  %v1142_v51 = vunpack.c.l.b16 %v1029_v41  ;;  %v1208_v52 = vpack.c.bf16 %v1205_v42, %v1205_v42 }
  0x2e   : > { %3897 = vmatmul.mubr.msk.bf16.vlgmr.msra.gmra.mxu0 %vm322_vm3, %v469_v3  ;;  %v555_v9 = vsel %vm308_vm4, %v554_v6, %v553_v8  ;;  %v1209_v53 = vpack.c.bf16 %v1206_v43, %v1206_v43  ;;  %v1068_v55 = vrot.slane %v1066_v45, 7  ;;  %v1070_v56 = vrot.slane %v1067_v46, 6  ;;  %v1197_v43 = vld [vmem:[%s4202_s19 + $0x2] sm:$0x1]  ;;  %v1199_v45 = vld [vmem:[%s4202_s19 + $0xa] sm:$0x1] }
  0x2f   : > { %v556_v10 = vpack.c.b16 %v555_v9, %v555_v9  ;;  %3908 = vmatprep.mubr.msk.bf16.mxu0 %vm4146_vm0, %v4145_v0  ;;  %v1143_v57 = vunpack.c.l.b16 %v1030_v47  ;;  %v1210_v58 = vpack.c.bf16 %v1207_v48, %v1207_v48  ;;  %v1144_v60 = vrot.slane %v1142_v51, 7  ;;  %v1200_v47 = vld [vmem:[%s4202_s19 + $0xe] sm:$0x1]  ;;  %v1288_v51 = vld [vmem:[%s4202_s19 + $0x3] sm:$0x1] }
  0x30   : > { %v1231_v61 = vunpack.c.l.b16 %v1208_v52  ;;  %v1232_v62 = vunpack.c.l.b16 %v1209_v53  ;;  %v1021_v1 = vpack.c.bf16 %v1017_v49, %v1017_v49  ;;  %v1069_v2 = vsel %vm302_vm1, %v1068_v55, %v1065_v44  ;;  %v1198_v44 = vld [vmem:[%s4202_s19 + $0x6] sm:$0x1]  ;;  %v1289_v52 = vld [vmem:[%s4202_s19 + $0x7] sm:$0x1]  ;;  %v1291_v55 = vld [vmem:[%s4202_s19 + $0xf] sm:$0x1] }
  0x31   : > { %3903 = vmatmul.mubr.msk.bf16.vlgmr.msra.gmra.mxu1 %vm322_vm3, %v556_v10  ;;  %v1146_v3 = vrot.slane %v1143_v57, 6  ;;  %v1233_v4 = vunpack.c.l.b16 %v1210_v58  ;;  %v1022_v5 = vpack.c.bf16 %v1018_v54, %v1018_v54  ;;  %v1071_v6 = vsel %vm305_vm2, %v1070_v56, %v1069_v2  ;;  %v1296_v10 = vld [vmem:[%s4208_s22 + $0x3] sm:$0x1]  ;;  %v1290_v54 = vld [vmem:[%s4202_s19 + $0xb] sm:$0x1] }
  0x32   : > { %3914 = vmatprep.mubr.msk.bf16.mxu1 %vm4146_vm0, %v4145_v0  ;;  %v1145_v7 = vsel %vm302_vm1, %v1144_v60, %v1141_v50  ;;  %v1234_v8 = vrot.slane %v1232_v62, 7  ;;  %v1023_v9 = vpack.c.bf16 %v1019_v59, %v1019_v59  ;;  %v1201_v48 = vpack.c.bf16 %v1197_v43, %v1197_v43  ;;  %v3737_v43 = vld [vmem:[%s4346_s26 + $0x8] sm:$0x1] }
  0x33   : > { %v1202_v49 = vpack.c.bf16 %v1198_v44, %v1198_v44  ;;  %v1203_v50 = vpack.c.bf16 %v1199_v45, %v1199_v45  ;;  %v1204_v53 = vpack.c.bf16 %v1200_v47, %v1200_v47  ;;  %v1292_v56 = vpack.c.bf16 %v1288_v51, %v1288_v51  ;;  %v3741_v44 = vld [vmem:[%s4346_s26 + $0x9] sm:$0x1] }
  0x34   : > { %v1293_v57 = vpack.c.bf16 %v1289_v52, %v1289_v52  ;;  %v1215_v58 = vunpack.c.l.b16 %v1201_v48  ;;  %v641_v47 = vpack.c.bf16 %v3737_v43, %v3737_v43  ;;  %v3742_v48 = vld [vmem:[%s4346_s26 + $0xd] sm:$0x1]  ;;  %v3740_v52 = vld [vmem:[%s4346_s26 + $0x5] sm:$0x1]  ;;  %vm2377_vm11 = vcmask 778752  }
  0x35   : > { %v1216_v59 = vunpack.c.l.b16 %v1202_v49  ;;  %v1217_v60 = vunpack.c.l.b16 %v1203_v50  ;;  %v1218_v62 = vunpack.c.l.b16 %v1204_v53  ;;  %v742_v49 = vpack.c.bf16 %v3741_v44, %v3741_v44  ;;  %v3736_v50 = vld [vmem:[%s4346_s26 + $0x4] sm:$0x1] }
  0x36   : > { %v1307_v2 = vunpack.c.l.b16 %v1293_v57  ;;  %v743_v53 = vpack.c.bf16 %v3742_v48, %v3742_v48  ;;  %vm3238_vm12 = vcmask 1041152  }
  0x37   : > { %v748_v57 = vunpack.c.l.b16 %v742_v49 }
  0xe2   : > { %v363_v11 = vpop.f32.mrf.mxu0 }
  0xe3   : > { %v435_v12 = vpop.f32.mrf.mxu1 }
  0xe4   : > { %v3886_v13 = vpop.f32.mrf.mxu0  ;;  %v436_v19 = vadd.f32 %v435_v12, %v363_v11  ;;  %v1072_v11 = vpack.c.b16 %v1071_v6, %v1071_v6  ;;  %v1147_v12 = vsel %vm305_vm2, %v1146_v3, %v1145_v7  ;;  %v1219_v3 = vrot.slane %v1216_v59, 7 }
  0xe5   : > { %v3892_v14 = vpop.f32.mrf.mxu1  ;;  %v1236_v13 = vrot.slane %v1233_v4, 6  ;;  %v1221_v4 = vrot.slane %v1217_v60, 6  ;;  %v1223_v6 = vrot.slane %v1218_v62, 5  ;;  %v749_v59 = vunpack.c.l.b16 %v743_v53 }
  0xe6   : > { %v366_v15 = vpop.f32.mrf.mxu0  ;;  %v1024_v14 = vpack.c.bf16 %v1020_v63, %v1020_v63  ;;  %1073 = vrot.lane.b32.xlu1 %v1072_v11, %s4147_s23  ;;  %v1295_v63 = vpack.c.bf16 %v1291_v55, %v1291_v55  ;;  %v647_v55 = vunpack.c.l.b16 %v641_v47 }
  0xe7   : > { %v438_v16 = vpop.f32.mrf.mxu1  ;;  %v1297_v15 = vld [vmem:[%s4208_s22 + $0x7] sm:$0x1] }
  0xe8   : > { %v3887_v17 = vpop.f32.mrf.mxu0  ;;  %v1298_v16 = vld [vmem:[%s4208_s22 + $0xb] sm:$0x1]  ;;  %v1309_v7 = vunpack.c.l.b16 %v1295_v63  ;;  %v750_v63 = vrot.slane %v748_v57, 7 }
  0xe9   : > { %v3893_v18 = vpop.f32.mrf.mxu1  ;;  %v1235_v17 = vsel %vm302_vm1, %v1234_v8, %v1231_v61  ;;  %v1294_v61 = vpack.c.bf16 %v1290_v54, %v1290_v54  ;;  %v1310_v8 = vrot.slane %v1307_v2, 7  ;;  %v640_v54 = vpack.c.bf16 %v3736_v50, %v3736_v50 }
  0xea   : > { %v1125_v18 = vunpack.c.l.b16 %v1021_v1  ;;  %v1306_v1 = vunpack.c.l.b16 %v1292_v56  ;;  %v741_v56 = vpack.c.bf16 %v3740_v52, %v3740_v52  ;;  %v752_v2 = vrot.slane %v749_v59, 6 }
  0xeb   : > { %v646_v60 = vunpack.c.l.b16 %v640_v54 }
  0xec   : > { %v747_v62 = vunpack.c.l.b16 %v741_v56 }
  0xee   : > { %v521_v20 = vpop.f32.mrf.mxu0 }
  0xef   : > { %v527_v21 = vadd.f32 %v521_v20, %v436_v19  ;;  %v1126_v19 = vunpack.c.l.b16 %v1022_v5  ;;  %v1148_v20 = vpack.c.b16 %v1147_v12, %v1147_v12  ;;  %v1308_v5 = vunpack.c.l.b16 %v1294_v61 }
  0xf0   : > { %v3898_v22 = vpop.f32.mrf.mxu0  ;;  %v1311_v12 = vsel %vm302_vm1, %v1310_v8, %v1306_v1  ;;  %v649_v61 = vrot.slane %v647_v55, 7  ;;  %v4148_v8 = vmov 65535  }
  0xf1   : > { %v608_v23 = vpop.f32.mrf.mxu1  ;;  %v1128_v22 = vunpack.c.l.b16 %v1024_v14  ;;  %1149 = vrot.lane.b32.xlu1 %v1148_v20, %s4147_s23 }
  0xf2   : > { %v4278_v24 = vadd.f32 %v608_v23, %v527_v21  ;;  %v524_v25 = vpop.f32.mrf.mxu0  ;;  %v1127_v21 = vunpack.c.l.b16 %v1023_v9  ;;  %v1299_v23 = vpack.c.bf16 %v1296_v10, %v1296_v10  ;;  %v1220_v9 = vsel %vm302_vm1, %v1219_v3, %v1215_v58 }
  0xf3   : > { %v3904_v26 = vpop.f32.mrf.mxu1  ;;  %v1237_v25 = vsel %vm305_vm2, %v1236_v13, %v1235_v17  ;;  %v1312_v10 = vrot.slane %v1308_v5, 6  ;;  %v1222_v11 = vsel %vm305_vm2, %v1221_v4, %v1220_v9  ;;  %v1314_v13 = vrot.slane %v1309_v7, 5 }
  0xf4   : > { %v3899_v27 = vpop.f32.mrf.mxu0  ;;  %v616_v28 = vsel %vm615_vm5, %v4278_v24, -inf  ;;  %v1129_v26 = vrot.slane %v1126_v19, 7  ;;  %v1322_v32 = vunpack.c.l.b16 %v1299_v23  ;;  %v1238_v35 = vpack.c.b16 %v1237_v25, %v1237_v25  ;;  %v1032_v23 = vld [vmem:[%s4202_s19 + $0x5] sm:$0x1]  ;;  %v1033_v25 = vld [vmem:[%s4202_s19 + $0x9] sm:$0x1] }
  0xf5   : > { %v611_v29 = vpop.f32.mrf.mxu1  ;;  %617 = vmax.xlane.f32.xlu0 %v616_v28  ;;  %v1300_v27 = vpack.c.bf16 %v1297_v15, %v1297_v15  ;;  %v1301_v28 = vpack.c.bf16 %v1298_v16, %v1298_v16  ;;  %v1224_v14 = vsel %vm308_vm4, %v1223_v6, %v1222_v11  ;;  %v1313_v15 = vsel %vm305_vm2, %v1312_v10, %v1311_v12 }
  0xf6   : > { %v1131_v29 = vrot.slane %v1127_v21, 6  ;;  %v1130_v31 = vsel %vm302_vm1, %v1129_v26, %v1125_v18  ;;  %1239 = vrot.lane.b32.xlu1 %v1238_v35, %s4147_s23  ;;  %v1225_v16 = vpack.c.b16 %v1224_v14, %v1224_v14  ;;  %v1315_v17 = vsel %vm308_vm4, %v1314_v13, %v1313_v15  ;;  %v3745_v14 = vld [vmem:[%s4346_s26 + $0xa] sm:$0x1]  ;;  %v3749_v15 = vld [vmem:[%s4346_s26 + $0xb] sm:$0x1] }
  0xf7   : > { %v3905_v30 = vpop.f32.mrf.mxu1  ;;  %v1323_v33 = vunpack.c.l.b16 %v1300_v27  ;;  %v1324_v34 = vunpack.c.l.b16 %v1301_v28  ;;  %v1316_v18 = vpack.c.b16 %v1315_v17, %v1315_v17  ;;  %v1036_v26 = vpack.c.bf16 %v1032_v23, %v1032_v23  ;;  %v1031_v28 = vld [vmem:[%s4202_s19 + $0x1] sm:$0x1]  ;;  %v3746_v17 = vld [vmem:[%s4346_s26 + $0xe] sm:$0x1] }
  0xf8   : > { %v1133_v30 = vrot.slane %v1128_v22, 5  ;;  %v1132_v36 = vsel %vm305_vm2, %v1131_v29, %v1130_v31  ;;  %v1037_v31 = vpack.c.bf16 %v1033_v25, %v1033_v25  ;;  %v650_v3 = vsel %vm302_vm1, %v649_v61, %v646_v60 }
  0xf9   : > { %v1325_v38 = vrot.slane %v1323_v33, 7  ;;  %v1327_v39 = vrot.slane %v1324_v34, 6  ;;  %v1050_v33 = vunpack.c.l.b16 %v1036_v26  ;;  %v751_v4 = vsel %vm302_vm1, %v750_v63, %v747_v62 }
  0xfa   : > { %v1134_v37 = vsel %vm308_vm4, %v1133_v30, %v1132_v36  ;;  %v1034_v30 = vld [vmem:[%s4202_s19 + $0xd] sm:$0x1]  ;;  %v753_v6 = vsel %vm305_vm2, %v752_v2, %v751_v4  ;;  %v659_v9 = vsel %vm633_vm6, 4294967295, %v4148_v8  ;;  %v836_v25 = vpack.c.bf16 %v3746_v17, %v3746_v17 }
  0xfb   : > { %v1326_v40 = vsel %vm302_vm1, %v1325_v38, %v1322_v32  ;;  %v1135_v41 = vpack.c.b16 %v1134_v37, %v1134_v37  ;;  %v1035_v32 = vpack.c.bf16 %v1031_v28, %v1031_v28  ;;  %v1038_v34 = vpack.c.bf16 %v1034_v30, %v1034_v30 }
  0xfc   : > { %v1328_v42 = vsel %vm305_vm2, %v1327_v39, %v1326_v40  ;;  %v1053_v36 = vrot.slane %v1050_v33, 7  ;;  %v754_v10 = vpack.c.b16 %v753_v6, %v753_v6  ;;  %v4360_v11 = vsel %vm658_vm7, %v659_v9, 0 }
  0xfd   : > { %1136 = vrot.lane.b32.xlu1 %v1135_v41, %s4147_s23  ;;  %v1329_v46 = vpack.c.b16 %v1328_v42, %v1328_v42  ;;  %v1049_v35 = vunpack.c.l.b16 %v1035_v32  ;;  %v1052_v37 = vunpack.c.l.b16 %v1038_v34  ;;  %v4149_v63 = vmov 1966171168  }
  0xfe   : > { %v756_v13 = vand.u32 %v754_v10, %v4360_v11  ;;  %v708_v2 = vlaneseq }
  0xff   : > { %v1054_v39 = vsel %vm302_vm1, %v1053_v36, %v1049_v35  ;;  %v1057_v40 = vrot.slane %v1052_v37, 5 }
 0x100   : > { %3913 = vmatpush3.bf16.msra.mxu1 %v756_v13  ;;  %v4414_v4 = vshrl.u32 %v708_v2, 7 }
 0x101   : > { %1330 = vrot.lane.b32.xlu1 %v1329_v46, %s4147_s23  ;;  %v3738_v46 = vld [vmem:[%s4346_s26 + $0xc] sm:$0x1]  ;;  %3924 = vmatprep.subr.bf16.mxu1 %v4145_v0 }
 0x102   : > { %v642_v51 = vpack.c.bf16 %v3738_v46, %v3738_v46 }
 0x104   : > { %v648_v58 = vunpack.c.l.b16 %v642_v51 }
 0x105   : > { %1226 = vrot.lane.b32.xlu1 %v1225_v16, %s4147_s23  ;;  %v3744_v16 = vld [vmem:[%s4346_s26 + $0x6] sm:$0x1] }
 0x106   : > { %v651_v1 = vrot.slane %v648_v58, 6  ;;  %v834_v23 = vpack.c.bf16 %v3744_v16, %v3744_v16 }
 0x108   : > { %v652_v5 = vsel %vm305_vm2, %v651_v1, %v650_v3  ;;  %v840_v33 = vunpack.c.l.b16 %v834_v23  ;;  %v706_v1 = vunpack.c.l.s4 %v4149_v63 }
 0x109   : > { %1317 = vrot.lane.b32.xlu1 %v1316_v18, %s4147_s23  ;;  %v653_v7 = vpack.c.b16 %v652_v5, %v652_v5  ;;  %v835_v18 = vpack.c.bf16 %v3745_v14, %v3745_v14 }
 0x10a   : > { %v707_v3 = vunpack.c.0.s8 %v706_v1 }
 0x10b   : > { %v662_v12 = vand.u32 %v4360_v11, %v653_v7  ;;  %v841_v28 = vunpack.c.l.b16 %v835_v18 }
 0x10c   : > { %v4417_v5 = vsub.s32 %v707_v3, %v4414_v4 }
 0x10d   : > { %3907 = vmatpush3.bf16.msra.mxu0 %v662_v12  ;;  %v843_v34 = vrot.slane %v841_v28, 7 }
 0x10e   : > { %3918 = vmatprep.subr.bf16.mxu0 %v4145_v0 }
 0x158   : > { %v1074_v36 = vpop.permute.xlu1 %1073 }
 0x159   : > { %v1079_v56 = vsel %vm322_vm3, %v1074_v36, 0 }
 0x163   : > { %v1150_v43 = vpop.permute.xlu1 %1149 }
 0x164   : > { %v1155_v55 = vsel %vm322_vm3, %v1150_v43, 0 }
 0x168   : > { %v1240_v53 = vpop.permute.xlu1 %1239 }
 0x169   : > { %v1245_v61 = vsel %vm322_vm3, %v1240_v53, 0 }
 0x17e   : > { %v618_v19 = vpop.xlane.xlu0 %617 }
 0x17f   : > { %v619_v20 = vsub.f32 %v4278_v24, %v618_v19  ;;  %v1051_v24 = vunpack.c.l.b16 %v1037_v31  ;;  %v3750_v19 = vld [vmem:[%s4346_s26 + $0xf] sm:$0x1]  ;;  %v842_v31 = vunpack.c.l.b16 %v836_v25 }
 0x180   : > { %v929_v26 = vpack.c.bf16 %v3750_v19, %v3750_v19 }
 0x181   : > { %v620_v21 = vmul.f32 0.088388346, %v619_v20  ;;  %v1055_v38 = vrot.slane %v1051_v24, 6  ;;  %v928_v20 = vpack.c.bf16 %v3749_v15, %v3749_v15  ;;  %v845_v37 = vrot.slane %v842_v31, 6 }
 0x182   : > { %v935_v32 = vunpack.c.l.b16 %v929_v26 }
 0x183   : > { %v621_v22 = vmul.f32 1.442695, %v620_v21  ;;  %v1056_v41 = vsel %vm305_vm2, %v1055_v38, %v1054_v39  ;;  %v3748_v21 = vld [vmem:[%s4346_s26 + $0x7] sm:$0x1]  ;;  %v934_v30 = vunpack.c.l.b16 %v928_v20  ;;  %v844_v39 = vsel %vm302_vm1, %v843_v34, %v840_v33 }
 0x184   : > { %v1058_v42 = vsel %vm308_vm4, %v1057_v40, %v1056_v41  ;;  %v938_v38 = vrot.slane %v935_v32, 6  ;;  %v846_v41 = vsel %vm305_vm2, %v845_v37, %v844_v39 }
 0x185   : > { %4105 = vpow2.f32 %v621_v22  ;;  %v1059_v45 = vpack.c.b16 %v1058_v42, %v1058_v42  ;;  %v936_v35 = vrot.slane %v934_v30, 7  ;;  %v847_v46 = vpack.c.b16 %v846_v41, %v846_v41 }
 0x187   : > { %v849_v51 = vand.u32 %v847_v46, %v4360_v11 }
 0x192   : > { %v4333_v27 = vpop.eup %4105 }
 0x193   : > { %v623_v29 = vsel %vm615_vm5, %v4333_v27, 0.0 }
 0x194   : > { %624 = vadd.xlane.f32.xlu0 %v623_v29  ;;  %v927_v29 = vpack.c.bf16 %v3748_v21, %v3748_v21 }
 0x196   : > { %v933_v24 = vunpack.c.l.b16 %v927_v29 }
 0x198   : > { %v937_v40 = vsel %vm302_vm1, %v936_v35, %v933_v24 }
 0x199   : > { %v939_v42 = vsel %vm305_vm2, %v938_v38, %v937_v40 }
 0x19a   : > { %v940_v47 = vpack.c.b16 %v939_v42, %v939_v42 }
 0x19c   : > { %v942_v52 = vand.u32 %v940_v47, %v4360_v11 }
 0x1aa   : > { %1060 = vrot.lane.b32.xlu0 %v1059_v45, %s4147_s23 }
 0x21d   : > { %v625_v22 = vpop.xlane.xlu0 %624 }
 0x21e   : > { %4107 = vrcp.f32 %v625_v22 }
 0x221   : > { %v1061_v58 = vpop.permute.xlu0 %1060 }
 0x22b   : > { %v4108_v44 = vpop.eup %4107 }
 0x22c   : > { %v627_v45 = vmul.f32 %v4108_v44, %v4333_v27  ;;  %v1137_v27 = vpop.permute.xlu1 %1136 }
 0x22e   : > { %v629_v48 = vrot.slane %v627_v45, 3  ;;  %v631_v49 = vrot.slane %v627_v45, 7 }
 0x230   : > { %v634_v50 = vsel %vm633_vm6, %v629_v48, %v631_v49  ;;  %v1331_v57 = vpop.permute.xlu1 %1330 }
 0x231   : > { %v635_v54 = vpack.c.bf16 %v634_v50, %v634_v50  ;;  %v1336_v59 = vsel %vm322_vm3, %v1331_v57, 0 }
 0x233   : > { %3909 = vmatmul.mubr.msk.bf16.vlgmr.msra.gmra.mxu0 %vm654_vm8, %v635_v54  ;;  %3915 = vmatmul.mubr.msk.bf16.vlgmr.msra.gmra.mxu1 %vm654_vm8, %v635_v54 }
 0x234   : > { %3919 = vmatpush3.bf16.msra.mxu0 %v849_v51  ;;  %3925 = vmatpush3.bf16.msra.mxu1 %v942_v52  ;;  %v1227_v60 = vpop.permute.xlu1 %1226 }
 0x235   : > { %3920 = vmatprep.mubr.msk.bf16.mxu0 %vm4146_vm0, %v4145_v0  ;;  %3926 = vmatprep.mubr.msk.bf16.mxu1 %vm4146_vm0, %v4145_v0 }
 0x236   : > { %3930 = vmatprep.subr.bf16.mxu0 %v4145_v0  ;;  %3936 = vmatprep.subr.bf16.mxu1 %v4145_v0 }
 0x238   : > { %v1318_v62 = vpop.permute.xlu1 %1317 }
 0x23b   : > { %3921 = vmatmul.mubr.msk.bf16.vlgmr.msra.gmra.mxu0 %vm654_vm8, %v635_v54  ;;  %3927 = vmatmul.mubr.msk.bf16.vlgmr.msra.gmra.mxu1 %vm654_vm8, %v635_v54 }
 0x23c   : > { %3931 = vmatpush3.bf16.xpose.msra.mxu0 %v1079_v56  ;;  %3937 = vmatpush3.bf16.xpose.msra.mxu1 %v1155_v55 }
 0x23d   : > { %3932 = vmatprep.mubr.msk.bf16.mxu0 %vm4146_vm0, %v4145_v0  ;;  %3938 = vmatprep.mubr.msk.bf16.mxu1 %vm4146_vm0, %v4145_v0 }
 0x23e   : > { %3942 = vmatprep.subr.bf16.mxu0 %v4145_v0  ;;  %3948 = vmatprep.subr.bf16.mxu1 %v4145_v0 }
 0x243   : > { %3933 = vmatmul.mubr.msk.bf16.vlgmr.msra.gmra.mxu0 %vm322_vm3, %v1061_v58  ;;  %3939 = vmatmul.mubr.msk.bf16.vlgmr.msra.gmra.mxu1 %vm322_vm3, %v1137_v27 }
 0x244   : > { %3943 = vmatpush3.bf16.xpose.msra.mxu0 %v1245_v61  ;;  %3949 = vmatpush3.bf16.xpose.msra.mxu1 %v1336_v59 }
 0x245   : > { %3944 = vmatprep.mubr.msk.bf16.mxu0 %vm4146_vm0, %v4145_v0  ;;  %3950 = vmatprep.mubr.msk.bf16.mxu1 %vm4146_vm0, %v4145_v0 }
 0x246   : > { %3954 = vmatprep.subr.bf16.mxu0 %v4145_v0  ;;  %3960 = vmatprep.subr.bf16.mxu1 %v4145_v0 }
 0x24b   : > { %3945 = vmatmul.mubr.msk.bf16.vlgmr.msra.gmra.mxu0 %vm322_vm3, %v1227_v60  ;;  %3951 = vmatmul.mubr.msk.bf16.vlgmr.msra.gmra.mxu1 %vm322_vm3, %v1318_v62 }
 0x24c   : > { %3956 = vmatprep.mubr.msk.bf16.mxu0 %vm4146_vm0, %v4145_v0  ;;  %3962 = vmatprep.mubr.msk.bf16.mxu1 %vm4146_vm0, %v4145_v0 }
 0x2f3   : > { %v698_v6 = vpop.f32.mrf.mxu0  ;;  %v792_v7 = vpop.f32.mrf.mxu1 }
 0x2f4   : > { %v711_v8 = vrot.slane %v698_v6, %v4417_v5  ;;  %v805_v9 = vrot.slane %v792_v7, %v4417_v5  ;;  %v3760_v6 = vld [vmem:[%s4346_s26 + $0x5] sm:$0x1]  ;;  %v3761_v7 = vld [vmem:[%s4346_s26 + $0x9] sm:$0x1] }
 0x2f5   : > { %v3910_v10 = vpop.f32.mrf.mxu0  ;;  %v3916_v12 = vpop.f32.mrf.mxu1 }
 0x2f6   : > { %v712_v13 = vcombine.high %v711_v8, %v711_v8  ;;  %v719_v14 = vrot.slane %v711_v8, %v4417_v5  ;;  %v806_v15 = vcombine.high %v805_v9, %v805_v9  ;;  %v813_v16 = vrot.slane %v805_v9, %v4417_v5  ;;  %v3762_v8 = vld [vmem:[%s4346_s26 + $0xd] sm:$0x1] }
 0x2f7   : > { %v701_v17 = vpop.f32.mrf.mxu0  ;;  %v795_v18 = vpop.f32.mrf.mxu1  ;;  %v1524_v9 = vpack.c.bf16 %v3760_v6, %v3760_v6  ;;  %v1525_v10 = vpack.c.bf16 %v3761_v7, %v3761_v7  ;;  %v1526_v12 = vpack.c.bf16 %v3762_v8, %v3762_v8 }
 0x2f8   : > { %v726_v19 = vrot.slane %v712_v13, %v4417_v5  ;;  %v727_v20 = vcombine.high %v719_v14, %v719_v14  ;;  %734 = vst.msk [vmem:[%s4425_s29] sm:$0x1] %vm733_vm9, %v719_v14  ;;  %v820_v21 = vrot.slane %v806_v15, %v4417_v5  ;;  %v821_v22 = vcombine.high %v813_v16, %v813_v16  ;;  %v3764_v13 = vld [vmem:[%s4346_s26 + $0x6] sm:$0x1]  ;;  %v3765_v14 = vld [vmem:[%s4346_s26 + $0xa] sm:$0x1] }
 0x2f9   : > { %827 = vst.msk [vmem:[%s4425_s29 + $0x1] sm:$0x1] %vm733_vm9, %v813_v16  ;;  %v3911_v23 = vpop.f32.mrf.mxu0  ;;  %v3917_v25 = vpop.f32.mrf.mxu1  ;;  %v3766_v15 = vld [vmem:[%s4346_s26 + $0xe] sm:$0x1]  ;;  %v1643_v16 = vpack.c.bf16 %v3764_v13, %v3764_v13  ;;  %v1644_v17 = vpack.c.bf16 %v3765_v14, %v3765_v14 }
 0x2fa   : > { %v728_v26 = vcombine.high %v726_v19, %v726_v19  ;;  %735 = vst.msk [vmem:[%s4425_s29 + $0x4] sm:$0x1] %vm733_vm9, %v726_v19  ;;  %736 = vst.msk [vmem:[%s4425_s29 + $0x8] sm:$0x1] %vm733_vm9, %v727_v20  ;;  %v822_v28 = vcombine.high %v820_v21, %v820_v21  ;;  %v1645_v18 = vpack.c.bf16 %v3766_v15, %v3766_v15  ;;  %v1530_v19 = vunpack.c.l.b16 %v1524_v9 }
 0x2fb   : > { %828 = vst.msk [vmem:[%s4425_s29 + $0x5] sm:$0x1] %vm733_vm9, %v820_v21  ;;  %829 = vst.msk [vmem:[%s4425_s29 + $0x9] sm:$0x1] %vm733_vm9, %v821_v22  ;;  %v885_v29 = vpop.f32.mrf.mxu0  ;;  %v978_v30 = vpop.f32.mrf.mxu1  ;;  %v1531_v20 = vunpack.c.l.b16 %v1525_v10  ;;  %v1532_v21 = vunpack.c.l.b16 %v1526_v12  ;;  %v1649_v22 = vunpack.c.l.b16 %v1643_v16  ;;  %v1650_v23 = vunpack.c.l.b16 %v1644_v17 }
 0x2fc   : > { %737 = vst.msk [vmem:[%s4425_s29 + $0xc] sm:$0x1] %vm733_vm9, %v728_v26  ;;  %830 = vst.msk [vmem:[%s4425_s29 + $0xd] sm:$0x1] %vm733_vm9, %v822_v28  ;;  %v898_v31 = vrot.slane %v885_v29, %v4417_v5  ;;  %v991_v32 = vrot.slane %v978_v30, %v4417_v5  ;;  %v1651_v25 = vunpack.c.l.b16 %v1645_v18  ;;  %v1900_v26 = vld [vmem:[%s4208_s22 + $0x1] sm:$0x1] }
 0x2fd   : > { %v3922_v33 = vpop.f32.mrf.mxu0  ;;  %v3928_v34 = vpop.f32.mrf.mxu1  ;;  %v1901_v28 = vld [vmem:[%s4208_s22 + $0x5] sm:$0x1]  ;;  %v1902_v29 = vld [vmem:[%s4208_s22 + $0x9] sm:$0x1]  ;;  %v1533_v30 = vrot.slane %v1531_v20, 7 }
 0x2fe   : > { %v899_v24 = vcombine.high %v898_v31, %v898_v31  ;;  %v906_v35 = vrot.slane %v898_v31, %v4417_v5  ;;  %v992_v36 = vcombine.high %v991_v32, %v991_v32  ;;  %v999_v37 = vrot.slane %v991_v32, %v4417_v5 }
 0x2ff   : > { %v888_v38 = vpop.f32.mrf.mxu0  ;;  %v981_v39 = vpop.f32.mrf.mxu1  ;;  %v1535_v31 = vrot.slane %v1532_v21, 6  ;;  %v1652_v32 = vrot.slane %v1650_v23, 7  ;;  %v1654_v33 = vrot.slane %v1651_v25, 6  ;;  %v1903_v34 = vpack.c.bf16 %v1900_v26, %v1900_v26  ;;  %v2058_v21 = vld [vmem:[%s4202_s19 + $0x2] sm:$0x1] }
 0x300   : > { %v913_v40 = vrot.slane %v899_v24, %v4417_v5  ;;  %v914_v41 = vcombine.high %v906_v35, %v906_v35  ;;  %920 = vst.msk [vmem:[%s4425_s29 + $0x2] sm:$0x1] %vm733_vm9, %v906_v35  ;;  %v1006_v42 = vrot.slane %v992_v36, %v4417_v5  ;;  %v1007_v43 = vcombine.high %v999_v37, %v999_v37  ;;  %v2060_v23 = vld [vmem:[%s4202_s19 + $0xa] sm:$0x1] }
 0x301   : > { %1013 = vst.msk [vmem:[%s4425_s29 + $0x3] sm:$0x1] %vm733_vm9, %v999_v37  ;;  %v3923_v44 = vpop.f32.mrf.mxu0  ;;  %v3929_v45 = vpop.f32.mrf.mxu1  ;;  %v1534_v24 = vsel %vm302_vm1, %v1533_v30, %v1530_v19  ;;  %v1904_v35 = vpack.c.bf16 %v1901_v28, %v1901_v28  ;;  %v1905_v36 = vpack.c.bf16 %v1902_v29, %v1902_v29  ;;  %v1653_v38 = vsel %vm302_vm1, %v1652_v32, %v1649_v22  ;;  %v2059_v22 = vld [vmem:[%s4202_s19 + $0x6] sm:$0x1]  ;;  %v2061_v29 = vld [vmem:[%s4202_s19 + $0xe] sm:$0x1] }
 0x302   : > { %v915_v46 = vcombine.high %v913_v40, %v913_v40  ;;  %921 = vst.msk [vmem:[%s4425_s29 + $0x6] sm:$0x1] %vm733_vm9, %v913_v40  ;;  %922 = vst.msk [vmem:[%s4425_s29 + $0xa] sm:$0x1] %vm733_vm9, %v914_v41  ;;  %v1008_v47 = vcombine.high %v1006_v42, %v1006_v42  ;;  %v1536_v37 = vsel %vm305_vm2, %v1535_v31, %v1534_v24  ;;  %v1926_v41 = vunpack.c.l.b16 %v1903_v34  ;;  %v1893_v45 = vld [vmem:[%s4202_s19 + $0x5] sm:$0x1] }
 0x303   : > { %1014 = vst.msk [vmem:[%s4425_s29 + $0x7] sm:$0x1] %vm733_vm9, %v1006_v42  ;;  %1015 = vst.msk [vmem:[%s4425_s29 + $0xb] sm:$0x1] %vm733_vm9, %v1007_v43  ;;  %v1115_v48 = vpop.f32.mrf.mxu0  ;;  %v1191_v49 = vpop.f32.mrf.mxu1  ;;  %v1537_v39 = vpack.c.b16 %v1536_v37, %v1536_v37  ;;  %v1655_v40 = vsel %vm305_vm2, %v1654_v33, %v1653_v38  ;;  %v1927_v42 = vunpack.c.l.b16 %v1904_v35  ;;  %v1892_v43 = vld [vmem:[%s4202_s19 + $0x1] sm:$0x1]  ;;  %v1928_v44 = vunpack.c.l.b16 %v1905_v36 }
 0x304   : > { %923 = vst.msk [vmem:[%s4425_s29 + $0xe] sm:$0x1] %vm733_vm9, %v915_v46  ;;  %1016 = vst.msk [vmem:[%s4425_s29 + $0xf] sm:$0x1] %vm733_vm9, %v1008_v47  ;;  %v1192_v55 = vadd.f32 %v1191_v49, %v1115_v48  ;;  %v1656_v46 = vpack.c.b16 %v1655_v40, %v1655_v40  ;;  %v1894_v48 = vld [vmem:[%s4202_s19 + $0x9] sm:$0x1]  ;;  %v2062_v31 = vpack.c.bf16 %v2058_v21, %v2058_v21 }
 0x305   : > { %v3934_v50 = vpop.f32.mrf.mxu0  ;;  %v3940_v51 = vpop.f32.mrf.mxu1  ;;  %v1929_v47 = vrot.slane %v1927_v42, 7  ;;  %v1895_v49 = vld [vmem:[%s4202_s19 + $0xd] sm:$0x1]  ;;  %v2063_v32 = vpack.c.bf16 %v2059_v22, %v2059_v22  ;;  %v2064_v33 = vpack.c.bf16 %v2060_v23, %v2060_v23  ;;  %v2065_v24 = vpack.c.bf16 %v2061_v29, %v2061_v29  ;;  %v2066_v23 = vld [vmem:[%s4208_s22 + $0x2] sm:$0x1] }
 0x306   : > { %v1931_v50 = vrot.slane %v1928_v44, 6  ;;  %v1896_v51 = vpack.c.bf16 %v1892_v43, %v1892_v43  ;;  %v2076_v36 = vunpack.c.l.b16 %v2062_v31 }
 0x307   : > { %v1118_v52 = vpop.f32.mrf.mxu0  ;;  %v1194_v53 = vpop.f32.mrf.mxu1  ;;  %v2077_v37 = vunpack.c.l.b16 %v2063_v32  ;;  %v2078_v38 = vunpack.c.l.b16 %v2064_v33  ;;  %v2079_v40 = vunpack.c.l.b16 %v2065_v24  ;;  %v2150_v33 = vld [vmem:[%s4202_s19 + $0x7] sm:$0x1] }
 0x308   : > { %v1930_v52 = vsel %vm302_vm1, %v1929_v47, %v1926_v41  ;;  %v1897_v53 = vpack.c.bf16 %v1893_v45, %v1893_v45 }
 0x309   : > { %v3935_v54 = vpop.f32.mrf.mxu0  ;;  %v3941_v27 = vpop.f32.mrf.mxu1  ;;  %v2080_v41 = vrot.slane %v2077_v37, 7  ;;  %v2082_v42 = vrot.slane %v2078_v38, 6  ;;  %v2084_v43 = vrot.slane %v2079_v40, 5  ;;  %v2159_v38 = vld [vmem:[%s4208_s22 + $0xb] sm:$0x1] }
 0x30a   : > { %v1932_v54 = vsel %vm305_vm2, %v1931_v50, %v1930_v52  ;;  %v1898_v27 = vpack.c.bf16 %v1894_v48, %v1894_v48  ;;  %v3757_v52 = vld [vmem:[%s4346_s26 + $0x8] sm:$0x1]  ;;  %v2157_v40 = vld [vmem:[%s4208_s22 + $0x3] sm:$0x1] }
 0x30b   : > { %v1281_v56 = vpop.f32.mrf.mxu0  ;;  %v1372_v57 = vpop.f32.mrf.mxu1  ;;  %v2081_v44 = vsel %vm302_vm1, %v2080_v41, %v2076_v36  ;;  %v2151_v41 = vld [vmem:[%s4202_s19 + $0xb] sm:$0x1] }
 0x30c   : > { %v1287_v58 = vadd.f32 %v1281_v56, %v1192_v55  ;;  %v1899_v55 = vpack.c.bf16 %v1895_v49, %v1895_v49  ;;  %v1878_v56 = vld [vmem:[%s4202_s19] sm:$0x1]  ;;  %v2083_v45 = vsel %vm305_vm2, %v2082_v42, %v2081_v44  ;;  %v2154_v42 = vpack.c.bf16 %v2150_v33, %v2150_v33 }
 0x30d   : > { %v3946_v59 = vpop.f32.mrf.mxu0  ;;  %v3952_v60 = vpop.f32.mrf.mxu1  ;;  %v1882_v6 = vpack.c.bf16 %v1878_v56, %v1878_v56  ;;  %v3769_v56 = vld [vmem:[%s4346_s26 + $0xb] sm:$0x1] }
 0x30e   : > { %v4469_v61 = vadd.f32 %v1372_v57, %v1287_v58  ;;  %v1933_v57 = vpack.c.b16 %v1932_v54, %v1932_v54  ;;  %v1910_v58 = vunpack.c.l.b16 %v1896_v51  ;;  %v1911_v59 = vunpack.c.l.b16 %v1897_v53  ;;  %v3758_v54 = vld [vmem:[%s4346_s26 + $0xc] sm:$0x1] }
 0x30f   : > { %v1284_v62 = vpop.f32.mrf.mxu0  ;;  %v1375_v63 = vpop.f32.mrf.mxu1  ;;  %v1912_v60 = vunpack.c.l.b16 %v1898_v27  ;;  %v1986_v16 = vunpack.c.l.b16 %v1882_v6 }
 0x310   : > { %v1379_v1 = vsel %vm615_vm5, %v4469_v61, -inf  ;;  %v1913_v62 = vunpack.c.l.b16 %v1899_v55  ;;  %v1879_v63 = vld [vmem:[%s4202_s19 + $0x4] sm:$0x1]  ;;  %v1402_v55 = vpack.c.bf16 %v3757_v52, %v3757_v52  ;;  %v2160_v52 = vpack.c.bf16 %v2157_v40, %v2157_v40 }
 0x311   : > { %v3947_v2 = vpop.f32.mrf.mxu0  ;;  %1380 = vmax.xlane.f32.xlu1 %v1379_v1  ;;  %v3953_v3 = vpop.f32.mrf.mxu1  ;;  %v1914_v1 = vrot.slane %v1911_v59, 7  ;;  %v1916_v7 = vrot.slane %v1912_v60, 6  ;;  %v1883_v12 = vpack.c.bf16 %v1879_v63, %v1879_v63  ;;  %v3770_v63 = vld [vmem:[%s4346_s26 + $0xf] sm:$0x1] }
 0x312   : > { %v1880_v2 = vld [vmem:[%s4202_s19 + $0x8] sm:$0x1]  ;;  %v1881_v3 = vld [vmem:[%s4202_s19 + $0xc] sm:$0x1]  ;;  %v1918_v8 = vrot.slane %v1913_v62, 5  ;;  %v1408_v60 = vunpack.c.l.b16 %v1402_v55  ;;  %v1764_v6 = vpack.c.bf16 %v3770_v63, %v3770_v63  ;;  %v2155_v55 = vpack.c.bf16 %v2151_v41, %v2151_v41 }
 0x313   : > { %v1915_v9 = vsel %vm302_vm1, %v1914_v1, %v1910_v58  ;;  %v1884_v13 = vpack.c.bf16 %v1880_v2, %v1880_v2  ;;  %v1885_v14 = vpack.c.bf16 %v1881_v3, %v1881_v3  ;;  %v1987_v18 = vunpack.c.l.b16 %v1883_v12  ;;  %v3768_v62 = vld [vmem:[%s4346_s26 + $0x7] sm:$0x1]  ;;  %v1887_v1 = vld [vmem:[%s4208_s22 + $0x4] sm:$0x1] }
 0x314   : > { %v1917_v10 = vsel %vm305_vm2, %v1916_v7, %v1915_v9  ;;  %v1763_v58 = vpack.c.bf16 %v3769_v56, %v3769_v56  ;;  %v1762_v3 = vpack.c.bf16 %v3768_v62, %v3768_v62  ;;  %v1410_v9 = vrot.slane %v1408_v60, 7 }
 0x315   : > { %v1919_v15 = vsel %vm308_vm4, %v1918_v8, %v1917_v10  ;;  %v1988_v19 = vunpack.c.l.b16 %v1884_v13  ;;  %v1989_v20 = vunpack.c.l.b16 %v1885_v14  ;;  %v1990_v25 = vrot.slane %v1987_v18, 7  ;;  %v1888_v10 = vld [vmem:[%s4208_s22 + $0x8] sm:$0x1]  ;;  %v1886_v13 = vld [vmem:[%s4208_s22] sm:$0x1] }
 0x316   : > { %v1920_v17 = vpack.c.b16 %v1919_v15, %v1919_v15  ;;  %v1769_v7 = vunpack.c.l.b16 %v1763_v58  ;;  %v1890_v12 = vpack.c.bf16 %v1887_v1, %v1887_v1  ;;  %v2067_v15 = vld [vmem:[%s4208_s22 + $0x6] sm:$0x1]  ;;  %v1889_v21 = vpack.c.bf16 %v1886_v13, %v1886_v13 }
 0x317   : > { %v1992_v26 = vrot.slane %v1988_v19, 6  ;;  %v1994_v28 = vrot.slane %v1989_v20, 5  ;;  %v1991_v30 = vsel %vm302_vm1, %v1990_v25, %v1986_v16  ;;  %v1768_v16 = vunpack.c.l.b16 %v1762_v3  ;;  %v2068_v25 = vld [vmem:[%s4208_s22 + $0xa] sm:$0x1] }
 0x318   : > { %v1771_v18 = vrot.slane %v1769_v7, 7  ;;  %v1891_v19 = vpack.c.bf16 %v1888_v10, %v1888_v10  ;;  %v2003_v22 = vunpack.c.l.b16 %v1890_v12  ;;  %v2071_v36 = vpack.c.bf16 %v2068_v25, %v2068_v25 }
 0x319   : > { %v1993_v34 = vsel %vm305_vm2, %v1992_v26, %v1991_v30  ;;  %v2070_v26 = vpack.c.bf16 %v2067_v15, %v2067_v15  ;;  %v2183_v1 = vunpack.c.l.b16 %v2160_v52  ;;  %v2169_v3 = vunpack.c.l.b16 %v2155_v55 }
 0x31a   : > { %v1995_v35 = vsel %vm308_vm4, %v1994_v28, %v1993_v34  ;;  %v2158_v28 = vld [vmem:[%s4208_s22 + $0x7] sm:$0x1]  ;;  %v1772_v30 = vsel %vm302_vm1, %v1771_v18, %v1768_v16  ;;  %v2004_v32 = vunpack.c.l.b16 %v1891_v19  ;;  %v2002_v34 = vunpack.c.l.b16 %v1889_v21 }
 0x31b   : > { %v2005_v24 = vrot.slane %v2003_v22, 7  ;;  %v2093_v37 = vunpack.c.l.b16 %v2070_v26  ;;  %v2173_v16 = vrot.slane %v2169_v3, 6 }
 0x322   : > { %1538 = vrot.lane.b32.xlu1 %v1537_v39, %s4147_s23  ;;  %v1996_v39 = vpack.c.b16 %v1995_v35, %v1995_v35  ;;  %v2069_v35 = vpack.c.bf16 %v2066_v23, %v2066_v23 }
 0x326   : > { %1657 = vrot.lane.b32.xlu1 %v1656_v46, %s4147_s23  ;;  %v2085_v46 = vsel %vm308_vm4, %v2084_v43, %v2083_v45  ;;  %v2007_v45 = vrot.slane %v2004_v32, 6 }
 0x327   : > { %v2086_v47 = vpack.c.b16 %v2085_v46, %v2085_v46  ;;  %v2149_v46 = vld [vmem:[%s4202_s19 + $0x3] sm:$0x1] }
 0x328   : > { %v2153_v56 = vpack.c.bf16 %v2149_v46, %v2149_v46 }
 0x32a   : > { %1934 = vrot.lane.b32.xlu1 %v1933_v57, %s4150_s30  ;;  %v3756_v57 = vld [vmem:[%s4346_s26 + $0x4] sm:$0x1] }
 0x32b   : > { %v1401_v59 = vpack.c.bf16 %v3756_v57, %v3756_v57  ;;  %v2168_v57 = vunpack.c.l.b16 %v2154_v42 }
 0x32d   : > { %v1407_v8 = vunpack.c.l.b16 %v1401_v59  ;;  %v2171_v7 = vrot.slane %v2168_v57, 7 }
 0x32e   : > { %1921 = vrot.lane.b32.xlu1 %v1920_v17, %s4150_s30  ;;  %v1770_v17 = vunpack.c.l.b16 %v1764_v6  ;;  %v2167_v6 = vunpack.c.l.b16 %v2153_v56 }
 0x32f   : > { %v1411_v20 = vsel %vm302_vm1, %v1410_v9, %v1407_v8 }
 0x330   : > { %v1773_v31 = vrot.slane %v1770_v17, 6  ;;  %v2172_v17 = vsel %vm302_vm1, %v2171_v7, %v2167_v6 }
 0x331   : > { %v2174_v21 = vsel %vm305_vm2, %v2173_v16, %v2172_v17 }
 0x332   : > { %1997 = vrot.lane.b32.xlu1 %v1996_v39, %s4150_s30  ;;  %v2161_v39 = vpack.c.bf16 %v2158_v28, %v2158_v28  ;;  %v1774_v44 = vsel %vm305_vm2, %v1773_v31, %v1772_v30 }
 0x336   : > { %2087 = vrot.lane.b32.xlu1 %v2086_v47, %s4150_s30  ;;  %v2006_v47 = vsel %vm302_vm1, %v2005_v24, %v2002_v34 }
 0x337   : > { %v2008_v58 = vsel %vm305_vm2, %v2007_v45, %v2006_v47 }
 0x338   : > { %v2009_v8 = vpack.c.b16 %v2008_v58, %v2008_v58 }
 0x39a   : > { %v1381_v48 = vpop.xlane.xlu1 %1380 }
 0x39b   : > { %v1382_v49 = vsub.f32 %v4469_v61, %v1381_v48  ;;  %v1403_v61 = vpack.c.bf16 %v3758_v54, %v3758_v54  ;;  %v2092_v48 = vunpack.c.l.b16 %v2069_v35  ;;  %v2184_v54 = vunpack.c.l.b16 %v2161_v39 }
 0x39d   : > { %v1383_v50 = vmul.f32 0.088388346, %v1382_v49  ;;  %v1409_v2 = vunpack.c.l.b16 %v1403_v61  ;;  %v2094_v49 = vunpack.c.l.b16 %v2071_v36  ;;  %v1775_v61 = vpack.c.b16 %v1774_v44, %v1774_v44 }
 0x39e   : > { %v1539_v9 = vpop.permute.xlu1 %1538 }
 0x39f   : > { %v1384_v51 = vmul.f32 1.442695, %v1383_v50  ;;  %v1412_v14 = vrot.slane %v1409_v2, 6  ;;  %v2162_v50 = vpack.c.bf16 %v2159_v38, %v2159_v38  ;;  %v2097_v59 = vrot.slane %v2094_v49, 6 }
 0x3a0   : > { %v2186_v2 = vrot.slane %v2184_v54, 7 }
 0x3a1   : > { %4109 = vpow2.f32 %v1384_v51  ;;  %v1413_v29 = vsel %vm305_vm2, %v1412_v14, %v1411_v20  ;;  %v2095_v51 = vrot.slane %v2093_v37, 7  ;;  %v2185_v60 = vunpack.c.l.b16 %v2162_v50 }
 0x3a2   : > { %v1414_v43 = vpack.c.b16 %v1413_v29, %v1413_v29  ;;  %v1541_v14 = vand.u32 %v1539_v9, %v4360_v11  ;;  %v2187_v15 = vsel %vm302_vm1, %v2186_v2, %v2183_v1  ;;  %v1658_v33 = vpop.permute.xlu1 %1657 }
 0x3a3   : > { %v2096_v63 = vsel %vm302_vm1, %v2095_v51, %v2092_v48  ;;  %v2188_v12 = vrot.slane %v2185_v60, 6  ;;  %v1660_v35 = vand.u32 %v1658_v33, %v4360_v11 }
 0x3a4   : > { %v2098_v10 = vsel %vm305_vm2, %v2097_v59, %v2096_v63  ;;  %3961 = vmatpush3.bf16.msra.mxu1 %v1541_v14 }
 0x3a5   : > { %v2099_v18 = vpack.c.b16 %v2098_v10, %v2098_v10  ;;  %3972 = vmatprep.subr.bf16.mxu1 %v4145_v0  ;;  %v2189_v19 = vsel %vm305_vm2, %v2188_v12, %v2187_v15 }
 0x3a6   : > { %v2190_v22 = vpack.c.b16 %v2189_v19, %v2189_v19  ;;  %v1935_v40 = vpop.permute.xlu1 %1934 }
 0x3a7   : > { %v1940_v41 = vsel %vm322_vm3, %v1935_v40, 0 }
 0x3ae   : > { %v4517_v53 = vpop.eup %4109 }
 0x3af   : > { %v1386_v27 = vsel %vm615_vm5, %v4517_v53, 0.0 }
 0x3b0   : > { %1387 = vadd.xlane.f32.xlu0 %v1386_v27  ;;  %v2152_v27 = vld [vmem:[%s4202_s19 + $0xf] sm:$0x1] }
 0x3b1   : > { %v2156_v62 = vpack.c.bf16 %v2152_v27, %v2152_v27 }
 0x3b3   : > { %v2170_v13 = vunpack.c.l.b16 %v2156_v62 }
 0x3b5   : > { %v2175_v20 = vrot.slane %v2170_v13, 5 }
 0x3b7   : > { %v2176_v23 = vsel %vm308_vm4, %v2175_v20, %v2174_v21 }
 0x3b8   : > { %v2177_v25 = vpack.c.b16 %v2176_v23, %v2176_v23 }
 0x3c6   : > { %1415 = vrot.lane.b32.xlu0 %v1414_v43, %s4147_s23  ;;  %v1922_v43 = vpop.permute.xlu1 %1921 }
 0x3ca   : > { %1776 = vrot.lane.b32.xlu0 %v1775_v61, %s4147_s23  ;;  %v1998_v45 = vpop.permute.xlu1 %1997 }
 0x3ce   : > { %2010 = vrot.lane.b32.xlu0 %v2009_v8, %s4150_s30  ;;  %v2088_v49 = vpop.permute.xlu1 %2087 }
 0x3d2   : > { %2100 = vrot.lane.b32.xlu0 %v2099_v18, %s4150_s30 }
 0x3d6   : > { %2191 = vrot.lane.b32.xlu0 %v2190_v22, %s4150_s30 }
 0x3da   : > { %2178 = vrot.lane.b32.xlu0 %v2177_v25, %s4150_s30 }
 0x439   : > { %v1388_v26 = vpop.xlane.xlu0 %1387 }
 0x43a   : > { %4111 = vrcp.f32 %v1388_v26 }
 0x43d   : > { %v1416_v28 = vpop.permute.xlu0 %1415 }
 0x43e   : > { %v1421_v29 = vand.u32 %v1416_v28, %v4360_v11  ;;  %v3780_v28 = vld [vmem:[%s4346_s26 + $0x5] sm:$0x1] }
 0x440   : > { %3955 = vmatpush3.bf16.msra.mxu0 %v1421_v29  ;;  %v3781_v29 = vld [vmem:[%s4346_s26 + $0x9] sm:$0x1] }
 0x441   : > { %3966 = vmatprep.subr.bf16.mxu0 %v4145_v0  ;;  %v1777_v32 = vpop.permute.xlu0 %1776 }
 0x442   : > { %v1779_v37 = vand.u32 %v1777_v32, %v4360_v11  ;;  %v2386_v32 = vpack.c.bf16 %v3781_v29, %v3781_v29 }
 0x444   : > { %v2392_v40 = vunpack.c.l.b16 %v2386_v32 }
 0x445   : > { %v2011_v39 = vpop.permute.xlu0 %2010 }
 0x446   : > { %v2016_v42 = vsel %vm322_vm3, %v2011_v39, 0 }
 0x447   : > { %v4112_v30 = vpop.eup %4111 }
 0x448   : > { %v1390_v31 = vmul.f32 %v4112_v30, %v4517_v53  ;;  %v3782_v30 = vld [vmem:[%s4346_s26 + $0xd] sm:$0x1] }
 0x449   : > { %v2101_v53 = vpop.permute.xlu0 %2100  ;;  %v2387_v33 = vpack.c.bf16 %v3782_v30, %v3782_v30  ;;  %v2741_v30 = vld [vmem:[%s4202_s19 + $0x8] sm:$0x1] }
 0x44a   : > { %v1392_v34 = vrot.slane %v1390_v31, 3  ;;  %v1394_v24 = vrot.slane %v1390_v31, 7  ;;  %v2106_v46 = vsel %vm322_vm3, %v2101_v53, 0  ;;  %v2385_v31 = vpack.c.bf16 %v3780_v28, %v3780_v28  ;;  %v2740_v28 = vld [vmem:[%s4202_s19 + $0x4] sm:$0x1] }
 0x44b   : > { %v2393_v53 = vunpack.c.l.b16 %v2387_v33 }
 0x44c   : > { %v1396_v36 = vsel %vm633_vm6, %v1392_v34, %v1394_v24  ;;  %v3784_v34 = vld [vmem:[%s4346_s26 + $0x6] sm:$0x1]  ;;  %v3785_v24 = vld [vmem:[%s4346_s26 + $0xa] sm:$0x1]  ;;  %v2391_v39 = vunpack.c.l.b16 %v2385_v31  ;;  %v2742_v31 = vld [vmem:[%s4202_s19 + $0xc] sm:$0x1] }
 0x44d   : > { %v1397_v38 = vpack.c.bf16 %v1396_v36, %v1396_v36  ;;  %v2192_v44 = vpop.permute.xlu0 %2191  ;;  %v2504_v36 = vpack.c.bf16 %v3784_v34, %v3784_v34 }
 0x44e   : > { %v2197_v47 = vsel %vm322_vm3, %v2192_v44, 0  ;;  %v2761_v44 = vld [vmem:[%s4208_s22 + $0x1] sm:$0x1] }
 0x44f   : > { %3957 = vmatmul.mubr.msk.bf16.vlgmr.msra.gmra.mxu0 %vm654_vm8, %v1397_v38  ;;  %3963 = vmatmul.mubr.msk.bf16.vlgmr.msra.gmra.mxu1 %vm654_vm8, %v1397_v38 }
 0x450   : > { %3967 = vmatpush3.bf16.msra.mxu0 %v1660_v35  ;;  %3973 = vmatpush3.bf16.msra.mxu1 %v1779_v37  ;;  %v3786_v35 = vld [vmem:[%s4346_s26 + $0xe] sm:$0x1]  ;;  %v2505_v37 = vpack.c.bf16 %v3785_v24, %v3785_v24 }
 0x451   : > { %3968 = vmatprep.mubr.msk.bf16.mxu0 %vm4146_vm0, %v4145_v0  ;;  %3974 = vmatprep.mubr.msk.bf16.mxu1 %vm4146_vm0, %v4145_v0  ;;  %v2179_v48 = vpop.permute.xlu0 %2178 }
 0x452   : > { %3978 = vmatprep.subr.bf16.mxu0 %v4145_v0  ;;  %3984 = vmatprep.subr.bf16.mxu1 %v4145_v0 }
 0x457   : > { %3969 = vmatmul.mubr.msk.bf16.vlgmr.msra.gmra.mxu0 %vm654_vm8, %v1397_v38  ;;  %3975 = vmatmul.mubr.msk.bf16.vlgmr.msra.gmra.mxu1 %vm654_vm8, %v1397_v38  ;;  %v2506_v38 = vpack.c.bf16 %v3786_v35, %v3786_v35 }
 0x458   : > { %3979 = vmatpush3.bf16.xpose.msra.mxu0 %v1940_v41  ;;  %3985 = vmatpush3.bf16.xpose.msra.mxu1 %v2016_v42  ;;  %v2510_v41 = vunpack.c.l.b16 %v2504_v36  ;;  %v2511_v42 = vunpack.c.l.b16 %v2505_v37  ;;  %v2744_v36 = vpack.c.bf16 %v2740_v28, %v2740_v28  ;;  %v2745_v37 = vpack.c.bf16 %v2741_v30, %v2741_v30 }
 0x459   : > { %3980 = vmatprep.mubr.msk.bf16.mxu0 %vm4146_vm0, %v4145_v0  ;;  %3986 = vmatprep.mubr.msk.bf16.mxu1 %vm4146_vm0, %v4145_v0 }
 0x45a   : > { %3990 = vmatprep.subr.bf16.mxu0 %v4145_v0  ;;  %3996 = vmatprep.subr.bf16.mxu1 %v4145_v0 }
 0x45f   : > { %3981 = vmatmul.mubr.msk.bf16.vlgmr.msra.gmra.mxu0 %vm322_vm3, %v1922_v43  ;;  %3987 = vmatmul.mubr.msk.bf16.vlgmr.msra.gmra.mxu1 %vm322_vm3, %v1998_v45  ;;  %v2512_v43 = vunpack.c.l.b16 %v2506_v38  ;;  %v2762_v45 = vld [vmem:[%s4208_s22 + $0x5] sm:$0x1]  ;;  %v2746_v38 = vpack.c.bf16 %v2742_v31, %v2742_v31  ;;  %v3788_v31 = vld [vmem:[%s4346_s26 + $0x7] sm:$0x1] }
 0x460   : > { %3991 = vmatpush3.bf16.xpose.msra.mxu0 %v2106_v46  ;;  %3997 = vmatpush3.bf16.xpose.msra.mxu1 %v2197_v47  ;;  %v2394_v46 = vrot.slane %v2392_v40, 7  ;;  %v2396_v47 = vrot.slane %v2393_v53, 6 }
 0x461   : > { %3992 = vmatprep.mubr.msk.bf16.mxu0 %vm4146_vm0, %v4145_v0  ;;  %3998 = vmatprep.mubr.msk.bf16.mxu1 %vm4146_vm0, %v4145_v0 }
 0x462   : > { %4002 = vmatprep.subr.bf16.mxu0 %v4145_v0  ;;  %4008 = vmatprep.subr.bf16.mxu1 %v4145_v0 }
 0x467   : > { %3993 = vmatmul.mubr.msk.bf16.vlgmr.msra.gmra.mxu0 %vm322_vm3, %v2088_v49  ;;  %3999 = vmatmul.mubr.msk.bf16.vlgmr.msra.gmra.mxu1 %vm322_vm3, %v2179_v48  ;;  %v2763_v48 = vld [vmem:[%s4208_s22 + $0x9] sm:$0x1]  ;;  %v2513_v49 = vrot.slane %v2511_v42, 7  ;;  %v2849_v42 = vunpack.c.l.b16 %v2745_v37 }
 0x468   : > { %4004 = vmatprep.mubr.msk.bf16.mxu0 %vm4146_vm0, %v4145_v0  ;;  %4010 = vmatprep.mubr.msk.bf16.mxu1 %vm4146_vm0, %v4145_v0 }
 0x50f   : > { %v4600_v50 = vpop.f32.mrf.mxu0  ;;  %v4602_v51 = vpop.f32.mrf.mxu1 }
 0x511   : > { %v3958_v52 = vpop.f32.mrf.mxu0  ;;  %v3964_v54 = vpop.f32.mrf.mxu1 }
 0x512   : > { %v2515_v52 = vrot.slane %v2512_v43, 6  ;;  %v2764_v54 = vpack.c.bf16 %v2761_v44, %v2761_v44  ;;  %v2850_v43 = vunpack.c.l.b16 %v2746_v38  ;;  %v2919_v44 = vld [vmem:[%s4202_s19 + $0x2] sm:$0x1] }
 0x513   : > { %v1460_v27 = vpop.f32.mrf.mxu0  ;;  %v1580_v55 = vpop.f32.mrf.mxu1 }
 0x514   : > { %v2395_v27 = vsel %vm302_vm1, %v2394_v46, %v2391_v39  ;;  %v2765_v55 = vpack.c.bf16 %v2762_v45, %v2762_v45  ;;  %v2920_v45 = vld [vmem:[%s4202_s19 + $0x6] sm:$0x1]  ;;  %v2921_v46 = vld [vmem:[%s4202_s19 + $0xa] sm:$0x1] }
 0x515   : > { %v3959_v56 = vpop.f32.mrf.mxu0  ;;  %v3965_v57 = vpop.f32.mrf.mxu1 }
 0x516   : > { %v2766_v56 = vpack.c.bf16 %v2763_v48, %v2763_v48  ;;  %v2397_v57 = vsel %vm305_vm2, %v2396_v47, %v2395_v27  ;;  %v2853_v48 = vrot.slane %v2849_v42, 6  ;;  %v2923_v27 = vpack.c.bf16 %v2919_v44, %v2919_v44  ;;  %v2928_v42 = vld [vmem:[%s4208_s22 + $0x6] sm:$0x1] }
 0x517   : > { %v4604_v61 = vpop.f32.mrf.mxu0  ;;  %v4606_v58 = vpop.f32.mrf.mxu1 }
 0x519   : > { %v3970_v59 = vpop.f32.mrf.mxu0  ;;  %v3976_v60 = vpop.f32.mrf.mxu1 }
 0x51a   : > { %v2514_v59 = vsel %vm302_vm1, %v2513_v49, %v2510_v41  ;;  %v2398_v60 = vpack.c.b16 %v2397_v57, %v2397_v57  ;;  %v2848_v41 = vunpack.c.l.b16 %v2744_v36  ;;  %v2855_v49 = vrot.slane %v2850_v43, 5 }
 0x51b   : > { %v1699_v62 = vpop.f32.mrf.mxu0  ;;  %v1818_v63 = vpop.f32.mrf.mxu1 }
 0x51c   : > { %v2516_v62 = vsel %vm305_vm2, %v2515_v52, %v2514_v59  ;;  %v2787_v63 = vunpack.c.l.b16 %v2764_v54  ;;  %v2851_v47 = vrot.slane %v2848_v41, 7  ;;  %v2922_v52 = vld [vmem:[%s4202_s19 + $0xe] sm:$0x1] }
 0x51d   : > { %v3971_v1 = vpop.f32.mrf.mxu0  ;;  %v3977_v2 = vpop.f32.mrf.mxu1  ;;  %v2926_v59 = vpack.c.bf16 %v2922_v52, %v2922_v52  ;;  %v2927_v52 = vld [vmem:[%s4208_s22 + $0x2] sm:$0x1] }
 0x51e   : > { %v2788_v1 = vunpack.c.l.b16 %v2765_v55  ;;  %v2753_v2 = vld [vmem:[%s4202_s19 + $0x1] sm:$0x1]  ;;  %v2924_v55 = vpack.c.bf16 %v2920_v45, %v2920_v45 }
 0x51f   : > { %v1976_v3 = vpop.f32.mrf.mxu0  ;;  %v2052_v6 = vpop.f32.mrf.mxu1 }
 0x520   : > { %v2053_v14 = vadd.f32 %v2052_v6, %v1976_v3  ;;  %v2789_v3 = vunpack.c.l.b16 %v2766_v56  ;;  %v2754_v6 = vld [vmem:[%s4202_s19 + $0x5] sm:$0x1]  ;;  %v2925_v56 = vpack.c.bf16 %v2921_v46, %v2921_v46 }
 0x521   : > { %v3982_v7 = vpop.f32.mrf.mxu0  ;;  %v3988_v8 = vpop.f32.mrf.mxu1 }
 0x522   : > { %v2517_v7 = vpack.c.b16 %v2516_v62, %v2516_v62  ;;  %v2790_v8 = vrot.slane %v2788_v1, 7  ;;  %v2937_v62 = vunpack.c.l.b16 %v2923_v27  ;;  %v2939_v1 = vunpack.c.l.b16 %v2925_v56 }
 0x523   : > { %v1979_v9 = vpop.f32.mrf.mxu0  ;;  %v2055_v10 = vpop.f32.mrf.mxu1  ;;  %v2931_v27 = vpack.c.bf16 %v2928_v42, %v2928_v42 }
 0x524   : > { %v2755_v9 = vld [vmem:[%s4202_s19 + $0x9] sm:$0x1]  ;;  %v2756_v10 = vld [vmem:[%s4202_s19 + $0xd] sm:$0x1] }
 0x525   : > { %v3983_v12 = vpop.f32.mrf.mxu0  ;;  %v3989_v13 = vpop.f32.mrf.mxu1 }
 0x526   : > { %v2792_v12 = vrot.slane %v2789_v3, 6  ;;  %v2757_v13 = vpack.c.bf16 %v2753_v2, %v2753_v2  ;;  %v2940_v3 = vunpack.c.l.b16 %v2926_v59 }
 0x527   : > { %v2142_v15 = vpop.f32.mrf.mxu0  ;;  %v2233_v16 = vpop.f32.mrf.mxu1 }
 0x528   : > { %v2148_v17 = vadd.f32 %v2142_v15, %v2053_v14  ;;  %v2791_v14 = vsel %vm302_vm1, %v2790_v8, %v2787_v63  ;;  %v2758_v15 = vpack.c.bf16 %v2754_v6, %v2754_v6  ;;  %v2938_v63 = vunpack.c.l.b16 %v2924_v55  ;;  %v3019_v55 = vld [vmem:[%s4208_s22 + $0x7] sm:$0x1] }
 0x529   : > { %v3994_v18 = vpop.f32.mrf.mxu0  ;;  %v4000_v19 = vpop.f32.mrf.mxu1  ;;  %v2945_v8 = vrot.slane %v2940_v3, 5 }
 0x52a   : > { %v4608_v20 = vadd.f32 %v2233_v16, %v2148_v17  ;;  %v2793_v16 = vsel %vm305_vm2, %v2792_v12, %v2791_v14  ;;  %v2759_v17 = vpack.c.bf16 %v2755_v9, %v2755_v9  ;;  %v2760_v18 = vpack.c.bf16 %v2756_v10, %v2756_v10  ;;  %v2739_v19 = vld [vmem:[%s4202_s19] sm:$0x1] }
 0x52b   : > { %v2145_v21 = vpop.f32.mrf.mxu0  ;;  %v2236_v22 = vpop.f32.mrf.mxu1  ;;  %v2743_v32 = vpack.c.bf16 %v2739_v19, %v2739_v19  ;;  %v2941_v6 = vrot.slane %v2938_v63, 7 }
 0x52c   : > { %v2240_v23 = vsel %vm615_vm5, %v4608_v20, -inf  ;;  %v2794_v21 = vpack.c.b16 %v2793_v16, %v2793_v16  ;;  %v2771_v22 = vunpack.c.l.b16 %v2757_v13 }
 0x52d   : > { %v3995_v25 = vpop.f32.mrf.mxu0  ;;  %2241 = vmax.xlane.f32.xlu1 %v2240_v23  ;;  %v4001_v26 = vpop.f32.mrf.mxu1  ;;  %v2772_v23 = vunpack.c.l.b16 %v2758_v15  ;;  %v2847_v40 = vunpack.c.l.b16 %v2743_v32  ;;  %v2942_v9 = vsel %vm302_vm1, %v2941_v6, %v2937_v62  ;;  %v3790_v32 = vld [vmem:[%s4346_s26 + $0xf] sm:$0x1]  ;;  %v3011_v62 = vld [vmem:[%s4202_s19 + $0x7] sm:$0x1]  ;;  %v2954_v6 = vunpack.c.l.b16 %v2931_v27 }
 0x52e   : > { %v2773_v25 = vunpack.c.l.b16 %v2759_v17  ;;  %v2774_v26 = vunpack.c.l.b16 %v2760_v18  ;;  %v3777_v18 = vld [vmem:[%s4346_s26 + $0x8] sm:$0x1] }
 0x52f   : > { %v2775_v29 = vrot.slane %v2772_v23, 7  ;;  %v2852_v54 = vsel %vm302_vm1, %v2851_v47, %v2847_v40  ;;  %v2263_v23 = vpack.c.bf16 %v3777_v18, %v3777_v18 }
 0x530   : > { %v2777_v33 = vrot.slane %v2773_v25, 6  ;;  %v2779_v34 = vrot.slane %v2774_v26, 5  ;;  %v2854_v57 = vsel %vm305_vm2, %v2853_v48, %v2852_v54  ;;  %v3789_v25 = vld [vmem:[%s4346_s26 + $0xb] sm:$0x1]  ;;  %v3776_v26 = vld [vmem:[%s4346_s26 + $0x4] sm:$0x1] }
 0x531   : > { %v2776_v24 = vsel %vm302_vm1, %v2775_v29, %v2771_v22  ;;  %v2624_v28 = vpack.c.bf16 %v3789_v25, %v3789_v25  ;;  %v2262_v29 = vpack.c.bf16 %v3776_v26, %v3776_v26  ;;  %v2269_v30 = vunpack.c.l.b16 %v2263_v23  ;;  %v2929_v54 = vld [vmem:[%s4208_s22 + $0xa] sm:$0x1] }
 0x532   : > { %v2778_v35 = vsel %vm305_vm2, %v2777_v33, %v2776_v24  ;;  %v2748_v33 = vld [vmem:[%s4208_s22 + $0x4] sm:$0x1]  ;;  %v2623_v24 = vpack.c.bf16 %v3788_v31, %v3788_v31  ;;  %v2932_v3 = vpack.c.bf16 %v2929_v54, %v2929_v54  ;;  %v2956_v23 = vrot.slane %v2954_v6, 7 }
 0x533   : > { %v2780_v39 = vsel %vm308_vm4, %v2779_v34, %v2778_v35  ;;  %v2625_v35 = vpack.c.bf16 %v3790_v32, %v3790_v32  ;;  %v2630_v36 = vunpack.c.l.b16 %v2624_v28  ;;  %v2268_v37 = vunpack.c.l.b16 %v2262_v29 }
 0x534   : > { %v2781_v53 = vpack.c.b16 %v2780_v39, %v2780_v39  ;;  %v2271_v38 = vrot.slane %v2269_v30, 7  ;;  %v2749_v39 = vld [vmem:[%s4208_s22 + $0x8] sm:$0x1]  ;;  %v2751_v40 = vpack.c.bf16 %v2748_v33, %v2748_v33  ;;  %v2629_v43 = vunpack.c.l.b16 %v2623_v24 }
 0x535   : > { %v2631_v44 = vunpack.c.l.b16 %v2625_v35  ;;  %v2632_v45 = vrot.slane %v2630_v36, 7  ;;  %v2752_v46 = vpack.c.bf16 %v2749_v39, %v2749_v39 }
 0x536   : > { %v2272_v47 = vsel %vm302_vm1, %v2271_v38, %v2268_v37 }
 0x537   : > { %v2634_v59 = vrot.slane %v2631_v44, 6 }
 0x53e   : > { %2399 = vrot.lane.b32.xlu1 %v2398_v60, %s4150_s30  ;;  %v2856_v60 = vsel %vm308_vm4, %v2855_v49, %v2854_v57  ;;  %v2864_v49 = vunpack.c.l.b16 %v2751_v40  ;;  %v2633_v57 = vsel %vm302_vm1, %v2632_v45, %v2629_v43 }
 0x53f   : > { %v2857_v2 = vpack.c.b16 %v2856_v60, %v2856_v60  ;;  %v2865_v60 = vunpack.c.l.b16 %v2752_v46 }
 0x542   : > { %2518 = vrot.lane.b32.xlu1 %v2517_v7, %s4150_s30  ;;  %v2943_v7 = vrot.slane %v2939_v1, 6  ;;  %v2866_v1 = vrot.slane %v2864_v49, 7 }
 0x544   : > { %v2944_v10 = vsel %vm305_vm2, %v2943_v7, %v2942_v9  ;;  %v3020_v7 = vld [vmem:[%s4208_s22 + $0xb] sm:$0x1]  ;;  %v3018_v9 = vld [vmem:[%s4208_s22 + $0x3] sm:$0x1] }
 0x545   : > { %v2946_v12 = vsel %vm308_vm4, %v2945_v8, %v2944_v10  ;;  %v3022_v8 = vpack.c.bf16 %v3019_v55, %v3019_v55  ;;  %v3012_v10 = vld [vmem:[%s4202_s19 + $0xb] sm:$0x1]  ;;  %v3021_v25 = vpack.c.bf16 %v3018_v9, %v3018_v9 }
 0x546   : > { %2795 = vrot.lane.b32.xlu1 %v2794_v21, %s4151_s4  ;;  %v2947_v13 = vpack.c.b16 %v2946_v12, %v2946_v12  ;;  %v3778_v21 = vld [vmem:[%s4346_s26 + $0xc] sm:$0x1]  ;;  %v3015_v12 = vpack.c.bf16 %v3011_v62, %v3011_v62  ;;  %v3016_v28 = vpack.c.bf16 %v3012_v10, %v3012_v10 }
 0x547   : > { %v3045_v26 = vunpack.c.l.b16 %v3022_v8  ;;  %v3044_v36 = vunpack.c.l.b16 %v3021_v25 }
 0x548   : > { %v3029_v30 = vunpack.c.l.b16 %v3015_v12  ;;  %v3030_v38 = vunpack.c.l.b16 %v3016_v28 }
 0x549   : > { %v3047_v37 = vrot.slane %v3045_v26, 7 }
 0x54a   : > { %2782 = vrot.lane.b32.xlu1 %v2781_v53, %s4151_s4  ;;  %v2747_v53 = vld [vmem:[%s4208_s22] sm:$0x1]  ;;  %v3032_v40 = vrot.slane %v3029_v30, 7 }
 0x54b   : > { %v2750_v48 = vpack.c.bf16 %v2747_v53, %v2747_v53  ;;  %v3048_v46 = vsel %vm302_vm1, %v3047_v37, %v3044_v36 }
 0x54d   : > { %v2863_v63 = vunpack.c.l.b16 %v2750_v48 }
 0x54e   : > { %2858 = vrot.lane.b32.xlu1 %v2857_v2, %s4151_s4  ;;  %v2930_v2 = vpack.c.bf16 %v2927_v52, %v2927_v52 }
 0x550   : > { %v2953_v18 = vunpack.c.l.b16 %v2930_v2 }
 0x552   : > { %2948 = vrot.lane.b32.xlu1 %v2947_v13, %s4151_s4  ;;  %v2957_v35 = vsel %vm302_vm1, %v2956_v23, %v2953_v18 }
 0x5b6   : > { %v2242_v14 = vpop.xlane.xlu1 %2241 }
 0x5b7   : > { %v2243_v15 = vsub.f32 %v4608_v20, %v2242_v14  ;;  %v2264_v20 = vpack.c.bf16 %v3778_v21, %v3778_v21  ;;  %v2635_v14 = vsel %vm305_vm2, %v2634_v59, %v2633_v57  ;;  %v2955_v21 = vunpack.c.l.b16 %v2932_v3 }
 0x5b8   : > { %v2636_v31 = vpack.c.b16 %v2635_v14, %v2635_v14 }
 0x5b9   : > { %v2244_v16 = vmul.f32 0.088388346, %v2243_v15  ;;  %v2270_v34 = vunpack.c.l.b16 %v2264_v20  ;;  %v2868_v15 = vrot.slane %v2865_v60, 6  ;;  %v3013_v20 = vld [vmem:[%s4202_s19 + $0xf] sm:$0x1]  ;;  %v2958_v33 = vrot.slane %v2955_v21, 6 }
 0x5ba   : > { %v3017_v24 = vpack.c.bf16 %v3013_v20, %v3013_v20 }
 0x5bb   : > { %v2245_v17 = vmul.f32 1.442695, %v2244_v16  ;;  %v2273_v41 = vrot.slane %v2270_v34, 6  ;;  %v3010_v16 = vld [vmem:[%s4202_s19 + $0x3] sm:$0x1]  ;;  %v2959_v42 = vsel %vm305_vm2, %v2958_v33, %v2957_v35 }
 0x5bc   : > { %v3014_v29 = vpack.c.bf16 %v3010_v16, %v3010_v16  ;;  %v3031_v44 = vunpack.c.l.b16 %v3017_v24  ;;  %v2960_v49 = vpack.c.b16 %v2959_v42, %v2959_v42 }
 0x5bd   : > { %4113 = vpow2.f32 %v2245_v17  ;;  %v2274_v56 = vsel %vm305_vm2, %v2273_v41, %v2272_v47  ;;  %v2867_v17 = vsel %vm302_vm1, %v2866_v1, %v2863_v63  ;;  %v2400_v41 = vpop.permute.xlu1 %2399  ;;  %v3034_v47 = vrot.slane %v3030_v38, 6 }
 0x5be   : > { %v2275_v13 = vpack.c.b16 %v2274_v56, %v2274_v56  ;;  %v2869_v32 = vsel %vm305_vm2, %v2868_v15, %v2867_v17  ;;  %v3028_v39 = vunpack.c.l.b16 %v3014_v29  ;;  %v2402_v45 = vand.u32 %v2400_v41, %v4360_v11 }
 0x5bf   : > { %v2870_v53 = vpack.c.b16 %v2869_v32, %v2869_v32  ;;  %v3036_v54 = vrot.slane %v3031_v44, 5 }
 0x5c0   : > { %v3033_v48 = vsel %vm302_vm1, %v3032_v40, %v3028_v39  ;;  %4009 = vmatpush3.bf16.msra.mxu1 %v2402_v45 }
 0x5c1   : > { %4020 = vmatprep.subr.bf16.mxu1 %v4145_v0  ;;  %v3035_v27 = vsel %vm305_vm2, %v3034_v47, %v3033_v48  ;;  %v2519_v3 = vpop.permute.xlu1 %2518 }
 0x5c2   : > { %v3037_v56 = vsel %vm308_vm4, %v3036_v54, %v3035_v27  ;;  %v2521_v8 = vand.u32 %v2519_v3, %v4360_v11 }
 0x5c3   : > { %v3038_v57 = vpack.c.b16 %v3037_v56, %v3037_v56  ;;  %v3802_v56 = vld [vmem:[%s4346_s26 + $0xd] sm:$0x1] }
 0x5c5   : > { %v2796_v14 = vpop.permute.xlu1 %2795 }
 0x5c6   : > { %v2801_v15 = vsel %vm322_vm3, %v2796_v14, 0 }
 0x5c9   : > { %v2783_v17 = vpop.permute.xlu1 %2782 }
 0x5ca   : > { %v4656_v19 = vpop.eup %4113 }
 0x5cb   : > { %v2247_v22 = vsel %vm615_vm5, %v4656_v19, 0.0 }
 0x5cc   : > { %2248 = vadd.xlane.f32.xlu0 %v2247_v22  ;;  %v3023_v22 = vpack.c.bf16 %v3020_v7, %v3020_v7 }
 0x5cd   : > { %v2859_v21 = vpop.permute.xlu1 %2858 }
 0x5ce   : > { %v3046_v34 = vunpack.c.l.b16 %v3023_v22 }
 0x5d0   : > { %v3049_v43 = vrot.slane %v3046_v34, 6 }
 0x5d1   : > { %v2949_v26 = vpop.permute.xlu1 %2948 }
 0x5d2   : > { %v3050_v52 = vsel %vm305_vm2, %v3049_v43, %v3048_v46 }
 0x5d3   : > { %v3051_v55 = vpack.c.b16 %v3050_v52, %v3050_v52 }
 0x5e2   : > { %2276 = vrot.lane.b32.xlu0 %v2275_v13, %s4150_s30 }
 0x5e6   : > { %2637 = vrot.lane.b32.xlu0 %v2636_v31, %s4150_s30 }
 0x5ea   : > { %2871 = vrot.lane.b32.xlu0 %v2870_v53, %s4151_s4 }
 0x5ee   : > { %2961 = vrot.lane.b32.xlu0 %v2960_v49, %s4151_s4  ;;  %v3801_v49 = vld [vmem:[%s4346_s26 + $0x9] sm:$0x1] }
 0x5f2   : > { %3052 = vrot.lane.b32.xlu0 %v3051_v55, %s4151_s4 }
 0x5f6   : > { %3039 = vrot.lane.b32.xlu0 %v3038_v57, %s4151_s4  ;;  %v3247_v57 = vpack.c.bf16 %v3801_v49, %v3801_v49 }
 0x655   : > { %v2249_v59 = vpop.xlane.xlu0 %2248 }
 0x656   : > { %4115 = vrcp.f32 %v2249_v59 }
 0x659   : > { %v2277_v60 = vpop.permute.xlu0 %2276 }
 0x65a   : > { %v2282_v62 = vand.u32 %v2277_v60, %v4360_v11 }
 0x65c   : > { %4003 = vmatpush3.bf16.msra.mxu0 %v2282_v62  ;;  %v3800_v62 = vld [vmem:[%s4346_s26 + $0x5] sm:$0x1] }
 0x65d   : > { %4014 = vmatprep.subr.bf16.mxu0 %v4145_v0  ;;  %v2638_v2 = vpop.permute.xlu0 %2637 }
 0x65e   : > { %v2640_v10 = vand.u32 %v2638_v2, %v4360_v11 }
 0x661   : > { %v2872_v13 = vpop.permute.xlu0 %2871 }
 0x662   : > { %v2877_v16 = vsel %vm322_vm3, %v2872_v13, 0 }
 0x663   : > { %v4116_v63 = vpop.eup %4115 }
 0x664   : > { %v2251_v1 = vmul.f32 %v4116_v63, %v4656_v19  ;;  %v3805_v63 = vld [vmem:[%s4346_s26 + $0xa] sm:$0x1] }
 0x665   : > { %v2962_v19 = vpop.permute.xlu0 %2961 }
 0x666   : > { %v2253_v6 = vrot.slane %v2251_v1, 3  ;;  %v2255_v7 = vrot.slane %v2251_v1, 7  ;;  %v2967_v22 = vsel %vm322_vm3, %v2962_v19, 0  ;;  %v3804_v19 = vld [vmem:[%s4346_s26 + $0x6] sm:$0x1] }
 0x668   : > { %v2257_v9 = vsel %vm633_vm6, %v2253_v6, %v2255_v7  ;;  %v3248_v6 = vpack.c.bf16 %v3802_v56, %v3802_v56 }
 0x669   : > { %v2258_v12 = vpack.c.bf16 %v2257_v9, %v2257_v9  ;;  %v3053_v18 = vpop.permute.xlu0 %3052  ;;  %v3253_v9 = vunpack.c.l.b16 %v3247_v57 }
 0x66a   : > { %v3058_v23 = vsel %vm322_vm3, %v3053_v18, 0 }
 0x66b   : > { %4005 = vmatmul.mubr.msk.bf16.vlgmr.msra.gmra.mxu0 %vm654_vm8, %v2258_v12  ;;  %4011 = vmatmul.mubr.msk.bf16.vlgmr.msra.gmra.mxu1 %vm654_vm8, %v2258_v12  ;;  %v3255_v18 = vrot.slane %v3253_v9, 7 }
 0x66c   : > { %4015 = vmatpush3.bf16.msra.mxu0 %v2521_v8  ;;  %4021 = vmatpush3.bf16.msra.mxu1 %v2640_v10  ;;  %v3246_v8 = vpack.c.bf16 %v3800_v62, %v3800_v62  ;;  %v3806_v10 = vld [vmem:[%s4346_s26 + $0xe] sm:$0x1] }
 0x66d   : > { %4016 = vmatprep.mubr.msk.bf16.mxu0 %vm4146_vm0, %v4145_v0  ;;  %4022 = vmatprep.mubr.msk.bf16.mxu1 %vm4146_vm0, %v4145_v0  ;;  %v3040_v25 = vpop.permute.xlu0 %3039 }
 0x66e   : > { %4026 = vmatprep.subr.bf16.mxu0 %v4145_v0  ;;  %4032 = vmatprep.subr.bf16.mxu1 %v4145_v0 }
 0x673   : > { %4017 = vmatmul.mubr.msk.bf16.vlgmr.msra.gmra.mxu0 %vm654_vm8, %v2258_v12  ;;  %4023 = vmatmul.mubr.msk.bf16.vlgmr.msra.gmra.mxu1 %vm654_vm8, %v2258_v12  ;;  %v3366_v12 = vpack.c.bf16 %v3805_v63, %v3805_v63 }
 0x674   : > { %4027 = vmatpush3.bf16.xpose.msra.mxu0 %v2801_v15  ;;  %4033 = vmatpush3.bf16.xpose.msra.mxu1 %v2877_v16  ;;  %v3254_v15 = vunpack.c.l.b16 %v3248_v6  ;;  %v3367_v16 = vpack.c.bf16 %v3806_v10, %v3806_v10 }
 0x675   : > { %4028 = vmatprep.mubr.msk.bf16.mxu0 %vm4146_vm0, %v4145_v0  ;;  %4034 = vmatprep.mubr.msk.bf16.mxu1 %vm4146_vm0, %v4145_v0 }
 0x676   : > { %4038 = vmatprep.subr.bf16.mxu0 %v4145_v0  ;;  %4044 = vmatprep.subr.bf16.mxu1 %v4145_v0 }
 0x67b   : > { %4029 = vmatmul.mubr.msk.bf16.vlgmr.msra.gmra.mxu0 %vm322_vm3, %v2783_v17  ;;  %4035 = vmatmul.mubr.msk.bf16.vlgmr.msra.gmra.mxu1 %vm322_vm3, %v2859_v21  ;;  %v3252_v17 = vunpack.c.l.b16 %v3246_v8  ;;  %v3365_v21 = vpack.c.bf16 %v3804_v19, %v3804_v19 }
 0x67c   : > { %4039 = vmatpush3.bf16.xpose.msra.mxu0 %v2967_v22  ;;  %4045 = vmatpush3.bf16.xpose.msra.mxu1 %v3058_v23  ;;  %v3372_v22 = vunpack.c.l.b16 %v3366_v12  ;;  %v3257_v23 = vrot.slane %v3254_v15, 6 }
 0x67d   : > { %4040 = vmatprep.mubr.msk.bf16.mxu0 %vm4146_vm0, %v4145_v0  ;;  %4046 = vmatprep.mubr.msk.bf16.mxu1 %vm4146_vm0, %v4145_v0 }
 0x67e   : > { %4050 = vmatprep.subr.bf16.mxu0 %v4145_v0  ;;  %4056 = vmatprep.subr.bf16.mxu1 %v4145_v0 }
 0x683   : > { %4041 = vmatmul.mubr.msk.bf16.vlgmr.msra.gmra.mxu0 %vm322_vm3, %v2949_v26  ;;  %4047 = vmatmul.mubr.msk.bf16.vlgmr.msra.gmra.mxu1 %vm322_vm3, %v3040_v25  ;;  %v3373_v25 = vunpack.c.l.b16 %v3367_v16  ;;  %v3256_v26 = vsel %vm302_vm1, %v3255_v18, %v3252_v17 }
 0x684   : > { %4052 = vmatprep.mubr.msk.bf16.mxu0 %vm4146_vm0, %v4145_v0  ;;  %4058 = vmatprep.mubr.msk.bf16.mxu1 %vm4146_vm0, %v4145_v0 }
 0x72b   : > { %v4739_v20 = vpop.f32.mrf.mxu0  ;;  %v4741_v28 = vpop.f32.mrf.mxu1 }
 0x72d   : > { %v4006_v29 = vpop.f32.mrf.mxu0  ;;  %v4012_v30 = vpop.f32.mrf.mxu1 }
 0x72e   : > { %v3371_v29 = vunpack.c.l.b16 %v3365_v21  ;;  %v3374_v30 = vrot.slane %v3372_v22, 7 }
 0x72f   : > { %v2321_v31 = vpop.f32.mrf.mxu0  ;;  %v2441_v32 = vpop.f32.mrf.mxu1 }
 0x730   : > { %v3258_v31 = vsel %vm305_vm2, %v3257_v23, %v3256_v26  ;;  %v3376_v32 = vrot.slane %v3373_v25, 6  ;;  %v3797_v23 = vld [vmem:[%s4346_s26 + $0x8] sm:$0x1] }
 0x731   : > { %v4007_v33 = vpop.f32.mrf.mxu0  ;;  %v4013_v34 = vpop.f32.mrf.mxu1 }
 0x732   : > { %v3375_v33 = vsel %vm302_vm1, %v3374_v30, %v3371_v29  ;;  %v3259_v34 = vpack.c.b16 %v3258_v31, %v3258_v31  ;;  %v3798_v30 = vld [vmem:[%s4346_s26 + $0xc] sm:$0x1]  ;;  %v3124_v31 = vpack.c.bf16 %v3797_v23, %v3797_v23 }
 0x733   : > { %v4743_v24 = vpop.f32.mrf.mxu0  ;;  %v4745_v35 = vpop.f32.mrf.mxu1 }
 0x734   : > { %v4834_v8 = vrot.slane %v4745_v35, %v4417_v5 }
 0x735   : > { %v4018_v36 = vpop.f32.mrf.mxu0  ;;  %v4024_v37 = vpop.f32.mrf.mxu1 }
 0x736   : > { %v3377_v36 = vsel %vm305_vm2, %v3376_v32, %v3375_v33  ;;  %v4763_v37 = vrot.slane %v4600_v50, %v4417_v5  ;;  %v3796_v32 = vld [vmem:[%s4346_s26 + $0x4] sm:$0x1]  ;;  %v3809_v33 = vld [vmem:[%s4346_s26 + $0xb] sm:$0x1] }
 0x737   : > { %v2560_v38 = vpop.f32.mrf.mxu0  ;;  %v2679_v39 = vpop.f32.mrf.mxu1 }
 0x738   : > { %v3378_v38 = vpack.c.b16 %v3377_v36, %v3377_v36  ;;  %v1478_v39 = vrot.slane %v4763_v37, %v4417_v5  ;;  %v3125_v36 = vpack.c.bf16 %v3798_v30, %v3798_v30 }
 0x739   : > { %v4019_v40 = vpop.f32.mrf.mxu0  ;;  %v4025_v53 = vpop.f32.mrf.mxu1 }
 0x73a   : > { %v4769_v40 = vsub.s32 0, %v4414_v4  ;;  %v1486_v53 = vcombine.high %v1478_v39, %v1478_v39 }
 0x73b   : > { %v2837_v41 = vpop.f32.mrf.mxu0  ;;  %v2913_v42 = vpop.f32.mrf.mxu1 }
 0x73c   : > { %v2914_v52 = vadd.f32 %v2913_v42, %v2837_v41  ;;  %v4774_v41 = vrot.slane %v4602_v51, %v4417_v5  ;;  %v1491_v42 = vrot.slane %v1478_v39, %v4769_v40  ;;  %v3130_v39 = vunpack.c.l.b16 %v3124_v31 }
 0x73d   : > { %v4030_v43 = vpop.f32.mrf.mxu0  ;;  %v4036_v44 = vpop.f32.mrf.mxu1 }
 0x73e   : > { %v1598_v50 = vrot.slane %v4774_v41, %v4417_v5  ;;  %v1499_v43 = vrot.slane %v1486_v53, %v4769_v40  ;;  %v4784_v44 = vrot.slane %v4604_v61, %v4417_v5  ;;  %v3810_v53 = vld [vmem:[%s4346_s26 + $0xf] sm:$0x1] }
 0x73f   : > { %v2840_v45 = vpop.f32.mrf.mxu0  ;;  %v2916_v46 = vpop.f32.mrf.mxu1 }
 0x740   : > { %v1606_v4 = vcombine.high %v1598_v50, %v1598_v50  ;;  %v1611_v45 = vrot.slane %v1598_v50, %v4769_v40  ;;  %v1717_v51 = vrot.slane %v4784_v44, %v4417_v5  ;;  %v3808_v50 = vld [vmem:[%s4346_s26 + $0x7] sm:$0x1] }
 0x741   : > { %v4031_v47 = vpop.f32.mrf.mxu0  ;;  %v4037_v48 = vpop.f32.mrf.mxu1 }
 0x742   : > { %v1619_v46 = vrot.slane %v1606_v4, %v4769_v40  ;;  %v1725_v47 = vcombine.high %v1717_v51, %v1717_v51  ;;  %v4794_v48 = vrot.slane %v4606_v58, %v4417_v5  ;;  %v1730_v49 = vrot.slane %v1717_v51, %v4769_v40 }
 0x743   : > { %v3003_v54 = vpop.f32.mrf.mxu0  ;;  %v3094_v27 = vpop.f32.mrf.mxu1  ;;  %v3131_v4 = vunpack.c.l.b16 %v3125_v36 }
 0x744   : > { %v3009_v55 = vadd.f32 %v3003_v54, %v2914_v52  ;;  %v1836_v61 = vrot.slane %v4794_v48, %v4417_v5  ;;  %v1738_v52 = vrot.slane %v1725_v47, %v4769_v40  ;;  %v3484_v47 = vpack.c.bf16 %v3808_v50, %v3808_v50 }
 0x745   : > { %v4042_v59 = vpop.f32.mrf.mxu0  ;;  %v4048_v60 = vpop.f32.mrf.mxu1 }
 0x746   : > { %v4751_v1 = vadd.f32 %v3094_v27, %v3009_v55  ;;  %v1844_v54 = vcombine.high %v1836_v61, %v1836_v61  ;;  %v4804_v27 = vrot.slane %v4739_v20, %v4417_v5  ;;  %v1849_v55 = vrot.slane %v1836_v61, %v4769_v40 }
 0x747   : > { %v3006_v2 = vpop.f32.mrf.mxu0  ;;  %v3097_v3 = vpop.f32.mrf.mxu1  ;;  %v4814_v59 = vrot.slane %v4741_v28, %v4417_v5 }
 0x748   : > { %v3101_v7 = vsel %vm615_vm5, %v4751_v1, -inf  ;;  %v2339_v58 = vrot.slane %v4804_v27, %v4417_v5  ;;  %v1857_v56 = vrot.slane %v1844_v54, %v4769_v40  ;;  %v4824_v2 = vrot.slane %v4743_v24, %v4417_v5 }
 0x749   : > { %v4043_v13 = vpop.f32.mrf.mxu0  ;;  %3102 = vmax.xlane.f32.xlu1 %v3101_v7  ;;  %v4049_v14 = vpop.f32.mrf.mxu1  ;;  %v2459_v20 = vrot.slane %v4814_v59, %v4417_v5  ;;  %v2697_v24 = vrot.slane %v4834_v8, %v4417_v5 }
 0x74a   : > { %v2347_v57 = vcombine.high %v2339_v58, %v2339_v58  ;;  %v2352_v60 = vrot.slane %v2339_v58, %v4769_v40  ;;  %v2578_v28 = vrot.slane %v4824_v2, %v4417_v5  ;;  %v3490_v58 = vunpack.c.l.b16 %v3484_v47 }
 0x74b   : > { %v2467_v63 = vcombine.high %v2459_v20, %v2459_v20  ;;  %v2472_v3 = vrot.slane %v2459_v20, %v4769_v40  ;;  %v2705_v12 = vcombine.high %v2697_v24, %v2697_v24  ;;  %v2710_v13 = vrot.slane %v2697_v24, %v4769_v40 }
 0x74c   : > { %v2360_v62 = vrot.slane %v2347_v57, %v4769_v40  ;;  %v2586_v7 = vcombine.high %v2578_v28, %v2578_v28  ;;  %v2591_v9 = vrot.slane %v2578_v28, %v4769_v40  ;;  %v2690_v47 = vcombine.high %v4834_v8, %v4834_v8 }
 0x74d   : > { %v2480_v6 = vrot.slane %v2467_v63, %v4769_v40  ;;  %v2718_v35 = vrot.slane %v2705_v12, %v4769_v40  ;;  %v1591_v12 = vcombine.high %v4774_v41, %v4774_v41  ;;  %v1710_v41 = vcombine.high %v4784_v44, %v4784_v44 }
 0x74e   : > { %v2599_v10 = vrot.slane %v2586_v7, %v4769_v40  ;;  %v1829_v44 = vcombine.high %v4794_v48, %v4794_v48  ;;  %v2332_v48 = vcombine.high %v4804_v27, %v4804_v27 }
 0x750   : > { %v1843_v31 = vrot.slane %v1829_v44, %v4417_v5 }
 0x752   : > { %v1845_v36 = vcombine.high %v1843_v31, %v1843_v31 }
 0x75a   : > { %3260 = vrot.lane.b32.xlu1 %v3259_v34, %s4151_s4 }
 0x75e   : > { %3379 = vrot.lane.b32.xlu1 %v3378_v38, %s4151_s4  ;;  %v3123_v38 = vpack.c.bf16 %v3796_v32, %v3796_v32 }
 0x760   : > { %v3129_v51 = vunpack.c.l.b16 %v3123_v38  ;;  %v2346_v38 = vrot.slane %v2332_v48, %v4417_v5 }
 0x762   : > { %1504 = vrot.lane.b32.xlu1 %v1491_v42, %s4151_s4  ;;  %v3485_v42 = vpack.c.bf16 %v3809_v33, %v3809_v33  ;;  %v2348_v50 = vcombine.high %v2346_v38, %v2346_v38 }
 0x766   : > { %1508 = vrot.lane.b32.xlu1 %v1499_v43, %s4151_s4 }
 0x76a   : > { %1624 = vrot.lane.b32.xlu1 %v1611_v45, %s4151_s4  ;;  %v3486_v45 = vpack.c.bf16 %v3810_v53, %v3810_v53  ;;  %v2452_v53 = vcombine.high %v4814_v59, %v4814_v59 }
 0x76c   : > { %v3492_v54 = vunpack.c.l.b16 %v3486_v45  ;;  %v2466_v27 = vrot.slane %v2452_v53, %v4417_v5 }
 0x76e   : > { %1628 = vrot.lane.b32.xlu1 %v1619_v46, %s4151_s4  ;;  %v3132_v46 = vrot.slane %v3130_v39, 7  ;;  %v3495_v20 = vrot.slane %v3492_v54, 6  ;;  %v1861_v39 = vrot.slane %v1845_v36, %v4769_v40  ;;  %v2476_v45 = vrot.slane %v2466_v27, %v4769_v40 }
 0x772   : > { %1743 = vrot.lane.b32.xlu1 %v1730_v49, %s4151_s4  ;;  %v3491_v49 = vunpack.c.l.b16 %v3485_v42  ;;  %v2356_v42 = vrot.slane %v2346_v38, %v4769_v40 }
 0x776   : > { %1747 = vrot.lane.b32.xlu1 %v1738_v52, %s4151_s4  ;;  %v3134_v52 = vrot.slane %v3131_v4, 6  ;;  %v2571_v4 = vcombine.high %v4824_v2, %v4824_v2  ;;  %v2704_v2 = vrot.slane %v2690_v47, %v4417_v5 }
 0x778   : > { %v2585_v59 = vrot.slane %v2571_v4, %v4417_v5  ;;  %v2714_v54 = vrot.slane %v2704_v2, %v4769_v40 }
 0x77a   : > { %1862 = vrot.lane.b32.xlu1 %v1849_v55, %s4151_s4  ;;  %v3133_v55 = vsel %vm302_vm1, %v3132_v46, %v3129_v51  ;;  %v2468_v51 = vcombine.high %v2466_v27, %v2466_v27 }
 0x77c   : > { %v2484_v46 = vrot.slane %v2468_v51, %v4769_v40 }
 0x77e   : > { %1866 = vrot.lane.b32.xlu1 %v1857_v56, %s4151_s4  ;;  %v3493_v56 = vrot.slane %v3491_v49, 7  ;;  %v2595_v49 = vrot.slane %v2585_v59, %v4769_v40 }
 0x782   : > { %2365 = vrot.lane.b32.xlu1 %v2352_v60, %s4150_s30  ;;  %v3135_v60 = vsel %vm305_vm2, %v3134_v52, %v3133_v55  ;;  %v2706_v55 = vcombine.high %v2704_v2, %v2704_v2 }
 0x786   : > { %2369 = vrot.lane.b32.xlu1 %v2360_v62, %s4150_s30  ;;  %v3494_v62 = vsel %vm302_vm1, %v3493_v56, %v3490_v58  ;;  %v2722_v58 = vrot.slane %v2706_v55, %v4769_v40 }
 0x787   : > { %v3496_v28 = vsel %vm305_vm2, %v3495_v20, %v3494_v62 }
 0x78a   : > { %2485 = vrot.lane.b32.xlu1 %v2472_v3, %s4150_s30  ;;  %v3136_v3 = vpack.c.b16 %v3135_v60, %v3135_v60 }
 0x78e   : > { %2489 = vrot.lane.b32.xlu1 %v2480_v6, %s4150_s30  ;;  %v1471_v6 = vcombine.high %v4763_v37, %v4763_v37 }
 0x790   : > { %v1485_v24 = vrot.slane %v1471_v6, %v4417_v5 }
 0x792   : > { %2604 = vrot.lane.b32.xlu1 %v2591_v9, %s4150_s30  ;;  %v3497_v9 = vpack.c.b16 %v3496_v28, %v3496_v28  ;;  %v1495_v37 = vrot.slane %v1485_v24, %v4769_v40 }
 0x796   : > { %2608 = vrot.lane.b32.xlu1 %v2599_v10, %s4150_s30 }
 0x79a   : > { %2723 = vrot.lane.b32.xlu1 %v2710_v13, %s4150_s30  ;;  %v1487_v13 = vcombine.high %v1485_v24, %v1485_v24 }
 0x79e   : > { %2727 = vrot.lane.b32.xlu1 %v2718_v35, %s4150_s30 }
 0x7d2   : > { %v3103_v14 = vpop.xlane.xlu1 %3102 }
 0x7d3   : > { %v3104_v19 = vsub.f32 %v4751_v1, %v3103_v14  ;;  %v1605_v14 = vrot.slane %v1591_v12, %v4417_v5 }
 0x7d5   : > { %v3105_v15 = vmul.f32 0.088388346, %v3104_v19  ;;  %v1503_v19 = vrot.slane %v1487_v13, %v4769_v40 }
 0x7d6   : > { %v3261_v16 = vpop.permute.xlu1 %3260 }
 0x7d7   : > { %v3106_v17 = vmul.f32 1.442695, %v3105_v15  ;;  %v3263_v18 = vand.u32 %v3261_v16, %v4360_v11  ;;  %v1615_v16 = vrot.slane %v1605_v14, %v4769_v40 }
 0x7d9   : > { %4117 = vpow2.f32 %v3106_v17  ;;  %4057 = vmatpush3.bf16.msra.mxu1 %v3263_v18  ;;  %v1607_v17 = vcombine.high %v1605_v14, %v1605_v14 }
 0x7da   : > { %v4848_v21 = vpop.permute.xlu1 %3379  ;;  %4068 = vmatprep.subr.bf16.mxu1 %v4145_v0 }
 0x7de   : > { %v1505_v22 = vpop.permute.xlu1 %1504 }
 0x7df   : > { %1517 = vst.msk [vmem:[%s4425_s29] sm:$0x1] %vm1516_vm10, %v1505_v22  ;;  %v1724_v22 = vrot.slane %v1710_v41, %v4417_v5 }
 0x7e2   : > { %v1509_v1 = vpop.permute.xlu1 %1508 }
 0x7e3   : > { %1519 = vst.msk [vmem:[%s4425_s29 + $0x8] sm:$0x1] %vm1516_vm10, %v1509_v1  ;;  %v1623_v1 = vrot.slane %v1607_v17, %v4769_v40 }
 0x7e6   : > { %v4856_v25 = vpop.eup %4117  ;;  %v1625_v26 = vpop.permute.xlu1 %1624 }
 0x7e7   : > { %1636 = vst.msk [vmem:[%s4425_s29 + $0x1] sm:$0x1] %vm1516_vm10, %v1625_v26  ;;  %v3108_v29 = vsel %vm615_vm5, %v4856_v25, 0.0  ;;  %v1734_v26 = vrot.slane %v1724_v22, %v4769_v40 }
 0x7e8   : > { %3109 = vadd.xlane.f32.xlu0 %v3108_v29  ;;  %v1726_v29 = vcombine.high %v1724_v22, %v1724_v22 }
 0x7ea   : > { %v1629_v34 = vpop.permute.xlu1 %1628  ;;  %v1742_v32 = vrot.slane %v1726_v29, %v4769_v40 }
 0x7eb   : > { %1638 = vst.msk [vmem:[%s4425_s29 + $0x9] sm:$0x1] %vm1516_vm10, %v1629_v34  ;;  %v1853_v34 = vrot.slane %v1843_v31, %v4769_v40 }
 0x7ee   : > { %v1744_v43 = vpop.permute.xlu1 %1743 }
 0x7ef   : > { %1755 = vst.msk [vmem:[%s4425_s29 + $0x2] sm:$0x1] %vm1516_vm10, %v1744_v43  ;;  %v2364_v43 = vrot.slane %v2348_v50, %v4769_v40 }
 0x7f2   : > { %v1748_v61 = vpop.permute.xlu1 %1747 }
 0x7f3   : > { %1757 = vst.msk [vmem:[%s4425_s29 + $0xa] sm:$0x1] %vm1516_vm10, %v1748_v61  ;;  %v2587_v61 = vcombine.high %v2585_v59, %v2585_v59 }
 0x7f5   : > { %v2603_v52 = vrot.slane %v2587_v61, %v4769_v40 }
 0x7f6   : > { %v1863_v57 = vpop.permute.xlu1 %1862 }
 0x7f7   : > { %1874 = vst.msk [vmem:[%s4425_s29 + $0x3] sm:$0x1] %vm1516_vm10, %v1863_v57 }
 0x7fa   : > { %v1867_v63 = vpop.permute.xlu1 %1866 }
 0x7fb   : > { %1876 = vst.msk [vmem:[%s4425_s29 + $0xb] sm:$0x1] %vm1516_vm10, %v1867_v63 }
 0x7fe   : > { %3137 = vrot.lane.b32.xlu0 %v3136_v3, %s4151_s4  ;;  %v2366_v7 = vpop.permute.xlu1 %2365 }
 0x7ff   : > { %2378 = vst.msk [vmem:[%s4425_s29] sm:$0x1] %vm2377_vm11, %v2366_v7  ;;  %v3382_v7 = vand.u32 %v4848_v21, %v4360_v11 }
 0x802   : > { %3498 = vrot.lane.b32.xlu0 %v3497_v9, %s4151_s4  ;;  %v2370_v10 = vpop.permute.xlu1 %2369 }
 0x803   : > { %2380 = vst.msk [vmem:[%s4425_s29 + $0x8] sm:$0x1] %vm2377_vm11, %v2370_v10 }
 0x806   : > { %1506 = vrot.lane.b32.xlu0 %v1495_v37, %s4151_s4  ;;  %v2486_v35 = vpop.permute.xlu1 %2485 }
 0x807   : > { %2497 = vst.msk [vmem:[%s4425_s29 + $0x1] sm:$0x1] %vm2377_vm11, %v2486_v35 }
 0x80a   : > { %1510 = vrot.lane.b32.xlu0 %v1503_v19, %s4151_s4  ;;  %v2490_v15 = vpop.permute.xlu1 %2489 }
 0x80b   : > { %2499 = vst.msk [vmem:[%s4425_s29 + $0x9] sm:$0x1] %vm2377_vm11, %v2490_v15 }
 0x80e   : > { %1626 = vrot.lane.b32.xlu0 %v1615_v16, %s4151_s4  ;;  %v2605_v18 = vpop.permute.xlu1 %2604 }
 0x80f   : > { %2616 = vst.msk [vmem:[%s4425_s29 + $0x2] sm:$0x1] %vm2377_vm11, %v2605_v18 }
 0x812   : > { %1630 = vrot.lane.b32.xlu0 %v1623_v1, %s4151_s4  ;;  %v2609_v23 = vpop.permute.xlu1 %2608 }
 0x813   : > { %2618 = vst.msk [vmem:[%s4425_s29 + $0xa] sm:$0x1] %vm2377_vm11, %v2609_v23 }
 0x816   : > { %1745 = vrot.lane.b32.xlu0 %v1734_v26, %s4151_s4  ;;  %v2724_v30 = vpop.permute.xlu1 %2723 }
 0x817   : > { %2735 = vst.msk [vmem:[%s4425_s29 + $0x3] sm:$0x1] %vm2377_vm11, %v2724_v30 }
 0x81a   : > { %1749 = vrot.lane.b32.xlu0 %v1742_v32, %s4151_s4  ;;  %v2728_v33 = vpop.permute.xlu1 %2727 }
 0x81b   : > { %2737 = vst.msk [vmem:[%s4425_s29 + $0xb] sm:$0x1] %vm2377_vm11, %v2728_v33 }
 0x81e   : > { %1864 = vrot.lane.b32.xlu0 %v1853_v34, %s4151_s4 }
 0x822   : > { %1868 = vrot.lane.b32.xlu0 %v1861_v39, %s4151_s4 }
 0x826   : > { %2367 = vrot.lane.b32.xlu0 %v2356_v42, %s4150_s30 }
 0x82a   : > { %2371 = vrot.lane.b32.xlu0 %v2364_v43, %s4150_s30 }
 0x82e   : > { %2487 = vrot.lane.b32.xlu0 %v2476_v45, %s4150_s30 }
 0x832   : > { %2491 = vrot.lane.b32.xlu0 %v2484_v46, %s4150_s30 }
 0x836   : > { %2606 = vrot.lane.b32.xlu0 %v2595_v49, %s4150_s30 }
 0x83a   : > { %2610 = vrot.lane.b32.xlu0 %v2603_v52, %s4150_s30 }
 0x83e   : > { %2725 = vrot.lane.b32.xlu0 %v2714_v54, %s4150_s30 }
 0x842   : > { %2729 = vrot.lane.b32.xlu0 %v2722_v58, %s4150_s30 }
 0x871   : > { %v3110_v8 = vpop.xlane.xlu0 %3109 }
 0x872   : > { %4119 = vrcp.f32 %v3110_v8 }
 0x875   : > { %v3138_v56 = vpop.permute.xlu0 %3137 }
 0x876   : > { %v3143_v57 = vand.u32 %v3138_v56, %v4360_v11 }
 0x878   : > { %4051 = vmatpush3.bf16.msra.mxu0 %v3143_v57 }
 0x879   : > { %v3499_v60 = vpop.permute.xlu0 %3498  ;;  %4062 = vmatprep.subr.bf16.mxu0 %v4145_v0 }
 0x87a   : > { %v3501_v9 = vand.u32 %v3499_v60, %v4360_v11 }
 0x87d   : > { %v1507_v20 = vpop.permute.xlu0 %1506 }
 0x87e   : > { %1518 = vst.msk [vmem:[%s4425_s29 + $0x4] sm:$0x1] %vm1516_vm10, %v1507_v20 }
 0x87f   : > { %v4120_v62 = vpop.eup %4119 }
 0x880   : > { %v3112_v63 = vmul.f32 %v4120_v62, %v4856_v25 }
 0x881   : > { %v1511_v3 = vpop.permute.xlu0 %1510 }
 0x882   : > { %v3114_v28 = vrot.slane %v3112_v63, 3  ;;  %v3116_v6 = vrot.slane %v3112_v63, 7  ;;  %1520 = vst.msk [vmem:[%s4425_s29 + $0xc] sm:$0x1] %vm1516_vm10, %v1511_v3 }
 0x884   : > { %v3118_v24 = vsel %vm633_vm6, %v3114_v28, %v3116_v6 }
 0x885   : > { %v1627_v10 = vpop.permute.xlu0 %1626  ;;  %v3119_v12 = vpack.c.bf16 %v3118_v24, %v3118_v24 }
 0x886   : > { %1637 = vst.msk [vmem:[%s4425_s29 + $0x5] sm:$0x1] %vm1516_vm10, %v1627_v10 }
 0x887   : > { %4053 = vmatmul.mubr.msk.bf16.vlgmr.msra.gmra.mxu0 %vm654_vm8, %v3119_v12  ;;  %4059 = vmatmul.mubr.msk.bf16.vlgmr.msra.gmra.mxu1 %vm654_vm8, %v3119_v12 }
 0x888   : > { %4063 = vmatpush3.bf16.msra.mxu0 %v3382_v7  ;;  %4069 = vmatpush3.bf16.msra.mxu1 %v3501_v9 }
 0x889   : > { %v1631_v25 = vpop.permute.xlu0 %1630  ;;  %4064 = vmatprep.mubr.msk.bf16.mxu0 %vm4146_vm0, %v4145_v0  ;;  %4070 = vmatprep.mubr.msk.bf16.mxu1 %vm4146_vm0, %v4145_v0 }
 0x88a   : > { %1639 = vst.msk [vmem:[%s4425_s29 + $0xd] sm:$0x1] %vm1516_vm10, %v1631_v25 }
 0x88d   : > { %v1746_v11 = vpop.permute.xlu0 %1745 }
 0x88e   : > { %1756 = vst.msk [vmem:[%s4425_s29 + $0x6] sm:$0x1] %vm1516_vm10, %v1746_v11 }
 0x88f   : > { %4065 = vmatmul.mubr.msk.bf16.vlgmr.msra.gmra.mxu0 %vm654_vm8, %v3119_v12  ;;  %4071 = vmatmul.mubr.msk.bf16.vlgmr.msra.gmra.mxu1 %vm654_vm8, %v3119_v12 }
 0x891   : > { %v1750_v21 = vpop.permute.xlu0 %1749 }
 0x892   : > { %1758 = vst.msk [vmem:[%s4425_s29 + $0xe] sm:$0x1] %vm1516_vm10, %v1750_v21 }
 0x895   : > { %v1865_v37 = vpop.permute.xlu0 %1864 }
 0x896   : > { %1875 = vst.msk [vmem:[%s4425_s29 + $0x7] sm:$0x1] %vm1516_vm10, %v1865_v37 }
 0x899   : > { %v1869_v0 = vpop.permute.xlu0 %1868 }
 0x89a   : > { %1877 = vst.msk [vmem:[%s4425_s29 + $0xf] sm:$0x1] %vm1516_vm10, %v1869_v0 }
 0x89d   : > { %v2368_v13 = vpop.permute.xlu0 %2367 }
 0x89e   : > { %2379 = vst.msk [vmem:[%s4425_s29 + $0x4] sm:$0x1] %vm2377_vm11, %v2368_v13 }
 0x8a1   : > { %v2372_v35 = vpop.permute.xlu0 %2371 }
 0x8a2   : > { %2381 = vst.msk [vmem:[%s4425_s29 + $0xc] sm:$0x1] %vm2377_vm11, %v2372_v35 }
 0x8a5   : > { %v2488_v14 = vpop.permute.xlu0 %2487 }
 0x8a6   : > { %2498 = vst.msk [vmem:[%s4425_s29 + $0x5] sm:$0x1] %vm2377_vm11, %v2488_v14 }
 0x8a9   : > { %v2492_v19 = vpop.permute.xlu0 %2491 }
 0x8aa   : > { %2500 = vst.msk [vmem:[%s4425_s29 + $0xd] sm:$0x1] %vm2377_vm11, %v2492_v19 }
 0x8ad   : > { %v2607_v15 = vpop.permute.xlu0 %2606 }
 0x8ae   : > { %2617 = vst.msk [vmem:[%s4425_s29 + $0x6] sm:$0x1] %vm2377_vm11, %v2607_v15 }
 0x8b1   : > { %v2611_v41 = vpop.permute.xlu0 %2610 }
 0x8b2   : > { %2619 = vst.msk [vmem:[%s4425_s29 + $0xe] sm:$0x1] %vm2377_vm11, %v2611_v41 }
 0x8b5   : > { %v2726_v16 = vpop.permute.xlu0 %2725 }
 0x8b6   : > { %2736 = vst.msk [vmem:[%s4425_s29 + $0x7] sm:$0x1] %vm2377_vm11, %v2726_v16 }
 0x8b9   : > { %v2730_v17 = vpop.permute.xlu0 %2729 }
 0x8ba   : > { %2738 = vst.msk [vmem:[%s4425_s29 + $0xf] sm:$0x1] %vm2377_vm11, %v2730_v17 }
 0x947   : > { %v3179_v18 = vpop.f32.mrf.mxu0  ;;  %v3299_v22 = vpop.f32.mrf.mxu1 }
 0x948   : > { %v3192_v1 = vrot.slane %v3179_v18, %v4417_v5  ;;  %v3312_v23 = vrot.slane %v3299_v22, %v4417_v5 }
 0x949   : > { %v4054_v44 = vpop.f32.mrf.mxu0  ;;  %v4060_v26 = vpop.f32.mrf.mxu1 }
 0x94a   : > { %v3193_v29 = vcombine.high %v3192_v1, %v3192_v1  ;;  %v3200_v30 = vrot.slane %v3192_v1, %v4417_v5  ;;  %v3313_v31 = vcombine.high %v3312_v23, %v3312_v23  ;;  %v3320_v34 = vrot.slane %v3312_v23, %v4417_v5 }
 0x94b   : > { %v3182_v32 = vpop.f32.mrf.mxu0  ;;  %v3302_v33 = vpop.f32.mrf.mxu1 }
 0x94c   : > { %v3207_v48 = vrot.slane %v3193_v29, %v4417_v5  ;;  %v3213_v39 = vrot.slane %v3200_v30, %v4769_v40  ;;  %v3327_v53 = vrot.slane %v3313_v31, %v4417_v5  ;;  %v3208_v43 = vcombine.high %v3200_v30, %v3200_v30 }
 0x94d   : > { %v4055_v36 = vpop.f32.mrf.mxu0  ;;  %v4061_v38 = vpop.f32.mrf.mxu1  ;;  %v3333_v51 = vrot.slane %v3320_v34, %v4769_v40  ;;  %v3328_v2 = vcombine.high %v3320_v34, %v3320_v34 }
 0x94e   : > { %v3217_v42 = vrot.slane %v3207_v48, %v4769_v40  ;;  %3226 = vrot.lane.b32.xlu1 %v3213_v39, %s4147_s23  ;;  %v3337_v46 = vrot.slane %v3327_v53, %v4769_v40  ;;  %v3209_v47 = vcombine.high %v3207_v48, %v3207_v48  ;;  %v3221_v55 = vrot.slane %v3208_v43, %v4769_v40 }
 0x94f   : > { %v3418_v50 = vpop.f32.mrf.mxu0  ;;  %v3537_v27 = vpop.f32.mrf.mxu1  ;;  %v3329_v57 = vcombine.high %v3327_v53, %v3327_v53  ;;  %v3341_v20 = vrot.slane %v3328_v2, %v4769_v40 }
 0x950   : > { %3228 = vrot.lane.b32.xlu0 %v3217_v42, %s4147_s23  ;;  %v3431_v59 = vrot.slane %v3418_v50, %v4417_v5  ;;  %v3550_v8 = vrot.slane %v3537_v27, %v4417_v5  ;;  %v3225_v56 = vrot.slane %v3209_v47, %v4769_v40 }
 0x951   : > { %v4066_v4 = vpop.f32.mrf.mxu0  ;;  %v4072_v45 = vpop.f32.mrf.mxu1  ;;  %v3345_v3 = vrot.slane %v3329_v57, %v4769_v40 }
 0x952   : > { %3346 = vrot.lane.b32.xlu1 %v3333_v51, %s4147_s23  ;;  %v3432_v58 = vcombine.high %v3431_v59, %v3431_v59  ;;  %v3439_v60 = vrot.slane %v3431_v59, %v4417_v5  ;;  %v3551_v63 = vcombine.high %v3550_v8, %v3550_v8  ;;  %v3558_v28 = vrot.slane %v3550_v8, %v4417_v5 }
 0x953   : > { %v3421_v49 = vpop.f32.mrf.mxu0  ;;  %v3540_v61 = vpop.f32.mrf.mxu1 }
 0x954   : > { %3348 = vrot.lane.b32.xlu0 %v3337_v46, %s4147_s23  ;;  %v3446_v62 = vrot.slane %v3432_v58, %v4417_v5  ;;  %v3452_v6 = vrot.slane %v3439_v60, %v4769_v40  ;;  %v3565_v7 = vrot.slane %v3551_v63, %v4417_v5  ;;  %v3447_v24 = vcombine.high %v3439_v60, %v3439_v60 }
 0x955   : > { %v4067_v52 = vpop.f32.mrf.mxu0  ;;  %v4073_v54 = vpop.f32.mrf.mxu1  ;;  %v3571_v10 = vrot.slane %v3558_v28, %v4769_v40  ;;  %v3566_v11 = vcombine.high %v3558_v28, %v3558_v28 }
 0x956   : > { %3230 = vrot.lane.b32.xlu1 %v3221_v55, %s4147_s23  ;;  %v3456_v9 = vrot.slane %v3446_v62, %v4769_v40  ;;  %v3575_v12 = vrot.slane %v3565_v7, %v4769_v40  ;;  %v3448_v25 = vcombine.high %v3446_v62, %v3446_v62  ;;  %v3460_v5 = vrot.slane %v3447_v24, %v4769_v40 }
 0x957   : > { %v3567_v37 = vcombine.high %v3565_v7, %v3565_v7  ;;  %v3579_v0 = vrot.slane %v3566_v11, %v4769_v40 }
 0x958   : > { %3232 = vrot.lane.b32.xlu0 %v3225_v56, %s4147_s23  ;;  %v3464_v21 = vrot.slane %v3448_v25, %v4769_v40 }
 0x959   : > { %v3583_v13 = vrot.slane %v3567_v37, %v4769_v40 }
 0x95a   : > { %3350 = vrot.lane.b32.xlu1 %v3341_v20, %s4147_s23 }
 0x95c   : > { %3352 = vrot.lane.b32.xlu0 %v3345_v3, %s4147_s23 }
 0x95e   : > { %3465 = vrot.lane.b32.xlu1 %v3452_v6, %s4147_s23 }
 0x960   : > { %3467 = vrot.lane.b32.xlu0 %v3456_v9, %s4147_s23 }
 0x962   : > { %3584 = vrot.lane.b32.xlu1 %v3571_v10, %s4147_s23 }
 0x964   : > { %3586 = vrot.lane.b32.xlu0 %v3575_v12, %s4147_s23 }
 0x966   : > { %3469 = vrot.lane.b32.xlu1 %v3460_v5, %s4147_s23 }
 0x968   : > { %3471 = vrot.lane.b32.xlu0 %v3464_v21, %s4147_s23 }
 0x96a   : > { %3588 = vrot.lane.b32.xlu1 %v3579_v0, %s4147_s23 }
 0x96c   : > { %3590 = vrot.lane.b32.xlu0 %v3583_v13, %s4147_s23 }
 0x9c0   : > { %v3227_v35 = vpop.permute.xlu1 %3226 }
 0x9c1   : > { %3239 = vst.msk [vmem:[%s4425_s29] sm:$0x1] %vm3238_vm12, %v3227_v35 }
 0x9c2   : > { %v3229_v14 = vpop.permute.xlu0 %3228 }
 0x9c3   : > { %3240 = vst.msk [vmem:[%s4425_s29 + $0x4] sm:$0x1] %vm3238_vm12, %v3229_v14 }
 0x9c4   : > { %v3347_v19 = vpop.permute.xlu1 %3346 }
 0x9c5   : > { %3358 = vst.msk [vmem:[%s4425_s29 + $0x1] sm:$0x1] %vm3238_vm12, %v3347_v19 }
 0x9c6   : > { %v3349_v40 = vpop.permute.xlu0 %3348 }
 0x9c7   : > { %3359 = vst.msk [vmem:[%s4425_s29 + $0x5] sm:$0x1] %vm3238_vm12, %v3349_v40 }
 0x9c8   : > { %v3231_v15 = vpop.permute.xlu1 %3230 }
 0x9c9   : > { %3241 = vst.msk [vmem:[%s4425_s29 + $0x8] sm:$0x1] %vm3238_vm12, %v3231_v15 }
 0x9ca   : > { %v3233_v41 = vpop.permute.xlu0 %3232 }
 0x9cb   : > { %3242 = vst.msk [vmem:[%s4425_s29 + $0xc] sm:$0x1] %vm3238_vm12, %v3233_v41 }
 0x9cc   : > { %v3351_v16 = vpop.permute.xlu1 %3350 }
 0x9cd   : > { %3360 = vst.msk [vmem:[%s4425_s29 + $0x9] sm:$0x1] %vm3238_vm12, %v3351_v16 }
 0x9ce   : > { %v3353_v17 = vpop.permute.xlu0 %3352 }
 0x9cf   : > { %3361 = vst.msk [vmem:[%s4425_s29 + $0xd] sm:$0x1] %vm3238_vm12, %v3353_v17 }
 0x9d0   : > { %v3466_v18 = vpop.permute.xlu1 %3465 }
 0x9d1   : > { %3477 = vst.msk [vmem:[%s4425_s29 + $0x2] sm:$0x1] %vm3238_vm12, %v3466_v18 }
 0x9d2   : > { %v3468_v22 = vpop.permute.xlu0 %3467 }
 0x9d3   : > { %3478 = vst.msk [vmem:[%s4425_s29 + $0x6] sm:$0x1] %vm3238_vm12, %v3468_v22 }
 0x9d4   : > { %v3585_v1 = vpop.permute.xlu1 %3584 }
 0x9d5   : > { %3596 = vst.msk [vmem:[%s4425_s29 + $0x3] sm:$0x1] %vm3238_vm12, %v3585_v1 }
 0x9d6   : > { %v3587_v23 = vpop.permute.xlu0 %3586 }
 0x9d7   : > { %3597 = vst.msk [vmem:[%s4425_s29 + $0x7] sm:$0x1] %vm3238_vm12, %v3587_v23 }
 0x9d8   : > { %v3470_v44 = vpop.permute.xlu1 %3469 }
 0x9d9   : > { %3479 = vst.msk [vmem:[%s4425_s29 + $0xa] sm:$0x1] %vm3238_vm12, %v3470_v44 }
 0x9da   : > { %v3472_v26 = vpop.permute.xlu0 %3471 }
 0x9db   : > { %3480 = vst.msk [vmem:[%s4425_s29 + $0xe] sm:$0x1] %vm3238_vm12, %v3472_v26 }
 0x9dc   : > { %v3589_v29 = vpop.permute.xlu1 %3588 }
 0x9dd   : > { %3598 = vst.msk [vmem:[%s4425_s29 + $0xb] sm:$0x1] %vm3238_vm12, %v3589_v29 }
 0x9de   : > { %v3591_v30 = vpop.permute.xlu0 %3590 }
 0x9df   : > { %3599 = vst.msk [vmem:[%s4425_s29 + $0xf] sm:$0x1] %vm3238_vm12, %v3591_v30 }
 0x9e0 PF: > { %s13_s14 = sadd.s32 1, %s4143_s14   ;;  %s5091_s12 = smov %s4139_s13 }
 0x9e1   : > { %p10_p5 = scmp.ge.s32.totalorder %s13_s14, 4   ;;  %s5092_s13 = smov %s5094_s15 }
 0x9e3   :  { %12 = sbr.rel (!%p10_p5) target bundleno = 2 (0x2), region = 69 }

</bundles_post_ra>
